<compile_context>
chip_gen: v6e
topology: v6e:2x2x1
jax: 0.10.0
libtpu: 0.0.40
codegen_flags: <defaults>
</compile_context>

<pallas_src>
import functools
import math

import jax
import jax.numpy as jnp
from jax import lax
from jax.experimental import pallas as pl
from jax.experimental.pallas import tpu as pltpu


# -----------------------------------------------------------------------------
# Kernel: RCAB forward for B_TILE images per grid step.
#   conv3x3 -> ReLU -> conv3x3 -> CALayer(GAP, 1x1, ReLU, 1x1, sigmoid, scale)
#   -> + residual
# -----------------------------------------------------------------------------
def rcab_kernel(x_ref, w1_ref, b1_ref, w2_ref, b2_ref,
                wdu1_ref, bdu1_ref, wdu2_ref, bdu2_ref,
                out_ref, pad_scr, *, width, pad, b_tile):
    cdt = pad_scr.dtype                      # MXU operand dtype (bf16 or f32)
    _, C, HW = x_ref.shape
    slab_w = HW + 2 * width

    # Column-boundary masks for the dw = -1 / +1 tap groups.  Built ONCE per
    # grid step (amortised over b_tile images); slab lane p feeds output lane
    # j with p % width == j % width, so masking the slab == masking every tap.
    slab_col = lax.broadcasted_iota(jnp.int32, (C, slab_w), 1) % width
    mask_not_first = slab_col != 0              # valid lanes for dw = -1 taps
    mask_not_last = slab_col != (width - 1)     # valid lanes for dw = +1 taps

    # Zero only the two 128-lane-aligned halos (aligned, unmasked stores).
    # Interior stores below never touch them, so they stay zero across both
    # convs and all b_tile images.  Re-zeroed every step so a per-core scratch
    # under a megacore split is always initialised.
    pad_scr[:, 0:pad] = jnp.zeros((C, pad), cdt)
    pad_scr[:, pad + HW:pad + HW + pad] = jnp.zeros((C, pad), cdt)

    def conv3x3(w_ref, b_ref):
        # Three accumulated MXU matmuls (K = 3*C), one per dw group.  The
        # three dh taps of a group are plain lane slices of one pre-masked
        # slab, so the full (9C, HW) im2col tensor is never materialised.
        acc = None
        for g, dw in enumerate((-1, 0, 1)):
            start = pad - width + dw
            slab = pad_scr[:, start:start + slab_w]            # (C, HW + 2W)
            if dw == -1:
                slab = jnp.where(mask_not_first, slab, 0)
            elif dw == 1:
                slab = jnp.where(mask_not_last, slab, 0)
            patches = jnp.concatenate(
                [slab[:, 0:HW],                                 # dh = -1
                 slab[:, width:width + HW],                     # dh =  0
                 slab[:, 2 * width:2 * width + HW]],            # dh = +1
                axis=0)                                         # (3C, HW)
            part = jnp.dot(w_ref[g], patches,
                           preferred_element_type=jnp.float32)  # (C, HW) f32
            acc = part if acc is None else acc + part
        return acc + b_ref[...]                                 # bias (C,1)

    def one_image(b, carry):
        # ---- conv1 + ReLU (128-aligned interior store) ----------------------
        pad_scr[:, pad:pad + HW] = x_ref[b].astype(cdt)
        h1 = jnp.maximum(conv3x3(w1_ref, b1_ref), 0.0)          # (C, HW) f32

        # ---- conv2 (reuse scratch; halo is still zero) -----------------------
        pad_scr[:, pad:pad + HW] = h1.astype(cdt)
        res = conv3x3(w2_ref, b2_ref)                           # (C, HW) f32

        # ---- CALayer: GAP -> 1x1 -> ReLU -> 1x1 -> sigmoid (tiny, VPU/XLU) ---
        pooled = jnp.mean(res, axis=1, keepdims=True)           # (C, 1)
        y = jnp.sum(wdu1_ref[...] * pooled, axis=0, keepdims=True) + bdu1_ref[...]
        y = jnp.maximum(y, 0.0)                                 # (1, C//r)
        att = jnp.sum(wdu2_ref[...] * y, axis=1, keepdims=True) + bdu2_ref[...]
        att = jax.nn.sigmoid(att)                               # (C, 1)

        # ---- channel scale + residual, fused into one lane-dense store -------
        out_ref[b] = (res * att + x_ref[b].astype(jnp.float32)).astype(out_ref.dtype)
        return carry

    lax.fori_loop(0, b_tile, one_image, 0, unroll=True)


# -----------------------------------------------------------------------------
# Wrapper: NCHW in / NCHW out, weights in PyTorch layouts.
# -----------------------------------------------------------------------------
@functools.partial(jax.jit, static_argnames=("compute_dtype", "b_tile"))
def rcab_pallas(x, w1, b1, w2, b2, wdu1, bdu1, wdu2, bdu2,
                compute_dtype=jnp.bfloat16, b_tile=None):
    N, C, H, W = x.shape
    K = w1.shape[2]
    Cr = wdu1.shape[0]
    HW = H * W
    pad = 128                              # 128-lane-aligned halo (>= W + 1)
    cdt = jnp.dtype(compute_dtype)

    # Sublane packing: 8 rows/vreg for f32, 16 for bf16.
    sub = 16 if cdt.itemsize < 4 else 8
    assert C % sub == 0 and HW % 128 == 0, \
        "need C %% (8 or 16 for bf16) == 0 and H*W %% 128 == 0"
    assert pad >= W + 1, "halo must cover one image row + one lane"

    # Images per grid step (static).  Must divide N; gcd picks a valid divisor.
    if b_tile is None:
        b_tile = min(N, 8)
    b_tile = max(1, math.gcd(N, int(b_tile)))

    # Lane-dense view: channels on sublanes, flattened spatial on lanes.
    x_flat = x.reshape(N, C, HW)

    # Conv weights (Cout, Cin, Kh, Kw) -> (Kw, Cout, Kh*Cin):
    #   leading axis = dw group (static index in-kernel, sublane-aligned load),
    #   column order (kh, cin) matches the per-dh concatenation of taps.
    w1m = jnp.transpose(w1, (3, 0, 2, 1)).reshape(K, C, K * C).astype(cdt)
    w2m = jnp.transpose(w2, (3, 0, 2, 1)).reshape(K, C, K * C).astype(cdt)
    b1c = b1.reshape(C, 1).astype(jnp.float32)
    b2c = b2.reshape(C, 1).astype(jnp.float32)
    # CALayer 1x1 convs, arranged for broadcast-multiply + reduce in-kernel.
    wdu1t = wdu1[:, :, 0, 0].T.astype(jnp.float32)              # (C, Cr)
    bdu1r = bdu1.reshape(1, Cr).astype(jnp.float32)
    wdu2t = wdu2[:, :, 0, 0].astype(jnp.float32)                # (C, Cr)
    bdu2c = bdu2.reshape(C, 1).astype(jnp.float32)

    full2d = lambda n: (0, 0)
    full3d = lambda n: (0, 0, 0)
    grid_spec = pltpu.PrefetchScalarGridSpec(
        num_scalar_prefetch=0,
        grid=(N // b_tile,),
        in_specs=[
            pl.BlockSpec((b_tile, C, HW), lambda n: (n, 0, 0)),  # x (lane-dense)
            pl.BlockSpec(w1m.shape, full3d),
            pl.BlockSpec(b1c.shape, full2d),
            pl.BlockSpec(w2m.shape, full3d),
            pl.BlockSpec(b2c.shape, full2d),
            pl.BlockSpec(wdu1t.shape, full2d),
            pl.BlockSpec(bdu1r.shape, full2d),
            pl.BlockSpec(wdu2t.shape, full2d),
            pl.BlockSpec(bdu2c.shape, full2d),
        ],
        out_specs=pl.BlockSpec((b_tile, C, HW), lambda n: (n, 0, 0)),
        scratch_shapes=[pltpu.VMEM((C, HW + 2 * pad), cdt)],
    )

    out_flat = pl.pallas_call(
        functools.partial(rcab_kernel, width=W, pad=pad, b_tile=b_tile),
        out_shape=jax.ShapeDtypeStruct((N, C, HW), x.dtype),
        grid_spec=grid_spec,
        compiler_params=pltpu.CompilerParams(
            # Batch-block axis -> both v7x TensorCores.  Verify the split in
            # xprof; if one TC is idle, switch to an explicit core split.
            dimension_semantics=("parallel",),
            # Plenty at demo shapes; re-budget per generation (v7x 64 MiB
            # physical, v5e/v6e 128 MiB) once spatial tiling is added.
            vmem_limit_bytes=32 * 1024 * 1024,
        ),
    )(x_flat, w1m, b1c, w2m, b2c, wdu1t, bdu1r, wdu2t, bdu2c)
    return out_flat.reshape(N, C, H, W)


# -----------------------------------------------------------------------------
# Pure-JAX reference (NCHW, PyTorch-layout weights) for the correctness check.
# -----------------------------------------------------------------------------
def rcab_ref(x, w1, b1, w2, b2, wdu1, bdu1, wdu2, bdu2):
    dn = ("NCHW", "OIHW", "NCHW")

    def conv2d(v, w, b, padding):
        out = lax.conv_general_dilated(v, w, (1, 1), padding,
                                       dimension_numbers=dn)
        return out + b.reshape(1, -1, 1, 1)

    h = jax.nn.relu(conv2d(x, w1, b1, "SAME"))
    res = conv2d(h, w2, b2, "SAME")
    pooled = jnp.mean(res, axis=(2, 3), keepdims=True)
    y = jax.nn.relu(conv2d(pooled, wdu1, bdu1, "VALID"))
    y = jax.nn.sigmoid(conv2d(y, wdu2, bdu2, "VALID"))
    return res * y + x


if __name__ == "__main__":
    N, C, H, W = 4, 32, 16, 16        # n_feat=32
    K, reduction = 3, 16              # kernel_size=3, reduction=16
    Cr = C // reduction               # 2

    key = jax.random.PRNGKey(0)
    ks = jax.random.split(key, 9)
    s = 0.1
    x    = jax.random.normal(ks[0], (N, C, H, W), jnp.float32)
    w1   = jax.random.normal(ks[1], (C, C, K, K), jnp.float32) * s
    b1   = jax.random.normal(ks[2], (C,), jnp.float32) * s
    w2   = jax.random.normal(ks[3], (C, C, K, K), jnp.float32) * s
    b2   = jax.random.normal(ks[4], (C,), jnp.float32) * s
    wdu1 = jax.random.normal(ks[5], (Cr, C, 1, 1), jnp.float32) * s
    bdu1 = jax.random.normal(ks[6], (Cr,), jnp.float32) * s
    wdu2 = jax.random.normal(ks[7], (C, Cr, 1, 1), jnp.float32) * s
    bdu2 = jax.random.normal(ks[8], (C,), jnp.float32) * s

    ref = rcab_ref(x, w1, b1, w2, b2, wdu1, bdu1, wdu2, bdu2)

    # 1) f32 MXU operands, b_tile=2 (grid of 2 steps): tight structural check.
    out_f32 = jax.block_until_ready(
        rcab_pallas(x, w1, b1, w2, b2, wdu1, bdu1, wdu2, bdu2,
                    compute_dtype=jnp.float32, b_tile=2))
    assert out_f32.shape == (N, C, H, W)
    assert jnp.allclose(out_f32, ref, atol=1e-3, rtol=1e-3), "f32 mismatch"

    # 2) bf16 MXU operands (recommended on v6e/v7x), default b_tile (whole
    #    batch in one grid step); accumulation / element-wise math stay f32.
    out_bf16 = jax.block_until_ready(
        rcab_pallas(x, w1, b1, w2, b2, wdu1, bdu1, wdu2, bdu2,
                    compute_dtype=jnp.bfloat16))
    assert out_bf16.shape == (N, C, H, W)
    assert jnp.allclose(out_bf16, ref, atol=1e-1, rtol=5e-2), "bf16 mismatch"

    print("KERNEL_OK")
</pallas_src>

<mosaic_0001>
module attributes {stable_mosaic.version = 11 : i64} {
  func.func @rcab_kernel(%arg0: i32, %arg1: memref<2x32x256xf32, #tpu.memory_space<vmem>>, %arg2: memref<3x32x96xf32, #tpu.memory_space<vmem>>, %arg3: memref<32x1xf32, #tpu.memory_space<vmem>>, %arg4: memref<3x32x96xf32, #tpu.memory_space<vmem>>, %arg5: memref<32x1xf32, #tpu.memory_space<vmem>>, %arg6: memref<32x2xf32, #tpu.memory_space<vmem>>, %arg7: memref<1x2xf32, #tpu.memory_space<vmem>>, %arg8: memref<32x2xf32, #tpu.memory_space<vmem>>, %arg9: memref<32x1xf32, #tpu.memory_space<vmem>>, %arg10: memref<2x32x256xf32, #tpu.memory_space<vmem>>, %arg11: memref<32x512xf32, #tpu.memory_space<vmem>>) attributes {dimension_semantics = [#tpu.dimension_semantics<parallel>], iteration_bounds = array<i64: 2>, scalar_prefetch = 0 : i64, scratch_operands = 1 : i64, tpu.core_type = #tpu.core_type<tc>, window_params = [{transform_indices = @transform_0, window_bounds = array<i64: 2, 32, 256>}, {pipeline_mode = #tpu.pipeline_mode<synchronous>, transform_indices = @transform_1, window_bounds = array<i64: 3, 32, 96>}, {pipeline_mode = #tpu.pipeline_mode<synchronous>, transform_indices = @transform_2, window_bounds = array<i64: 32, 1>}, {pipeline_mode = #tpu.pipeline_mode<synchronous>, transform_indices = @transform_3, window_bounds = array<i64: 3, 32, 96>}, {pipeline_mode = #tpu.pipeline_mode<synchronous>, transform_indices = @transform_4, window_bounds = array<i64: 32, 1>}, {pipeline_mode = #tpu.pipeline_mode<synchronous>, transform_indices = @transform_5, window_bounds = array<i64: 32, 2>}, {pipeline_mode = #tpu.pipeline_mode<synchronous>, transform_indices = @transform_6, window_bounds = array<i64: 1, 2>}, {pipeline_mode = #tpu.pipeline_mode<synchronous>, transform_indices = @transform_7, window_bounds = array<i64: 32, 2>}, {pipeline_mode = #tpu.pipeline_mode<synchronous>, transform_indices = @transform_8, window_bounds = array<i64: 32, 1>}, {transform_indices = @transform_9, window_bounds = array<i64: 2, 32, 256>}]} {
    %0 = tpu.iota {dimensions = array<i32: 1>} : vector<32x288xi32>
    %c16_i32 = arith.constant 16 : i32
    %c0_i32 = arith.constant 0 : i32
    %1 = arith.cmpi eq, %c16_i32, %c0_i32 : i32
    %c1_i32 = arith.constant 1 : i32
    %2 = arith.select %1, %c1_i32, %c16_i32 : i32
    %3 = vector.broadcast %2 : i32 to vector<32x288xi32>
    %4 = arith.remsi %0, %3 : vector<32x288xi32>
    %c0_i32_0 = arith.constant 0 : i32
    %5 = vector.broadcast %c0_i32_0 : i32 to vector<32x288xi32>
    %6 = arith.cmpi ne, %4, %5 : vector<32x288xi32>
    %c0_i32_1 = arith.constant 0 : i32
    %7 = vector.broadcast %c0_i32_1 : i32 to vector<32x288xi32>
    %8 = arith.cmpi slt, %4, %7 : vector<32x288xi32>
    %c0_i32_2 = arith.constant 0 : i32
    %9 = arith.cmpi slt, %2, %c0_i32_2 : i32
    %10 = vector.broadcast %9 : i1 to vector<32x288xi1>
    %11 = vector.broadcast %10 : vector<32x288xi1> to vector<32x288xi1>
    %12 = arith.xori %8, %11 : vector<32x288xi1>
    %13 = arith.andi %12, %6 : vector<32x288xi1>
    %14 = vector.broadcast %2 : i32 to vector<32x288xi32>
    %15 = arith.addi %4, %14 : vector<32x288xi32>
    %16 = arith.select %13, %15, %4 : vector<32x288xi1>, vector<32x288xi32>
    %c0_i32_3 = arith.constant 0 : i32
    %17 = vector.broadcast %c0_i32_3 : i32 to vector<32x288xi32>
    %18 = arith.cmpi ne, %16, %17 : vector<32x288xi32>
    %c15_i32 = arith.constant 15 : i32
    %19 = vector.broadcast %c15_i32 : i32 to vector<32x288xi32>
    %20 = arith.cmpi ne, %16, %19 : vector<32x288xi32>
    %cst = arith.constant 0.000000e+00 : f32
    %21 = vector.broadcast %cst : f32 to vector<32x128xf32>
    %c0 = arith.constant 0 : index
    %c0_4 = arith.constant 0 : index
    %22 = vector.load %arg11[%c0, %c0_4] : memref<32x512xf32, #tpu.memory_space<vmem>>, vector<32x128xf32>
    tpu.vector_store %arg11[%c0, %c0_4], %21 {strides = array<i32>} : memref<32x512xf32, #tpu.memory_space<vmem>>, vector<32x128xf32>,
    %cst_5 = arith.constant 0.000000e+00 : f32
    %23 = vector.broadcast %cst_5 : f32 to vector<32x128xf32>
    %c0_6 = arith.constant 0 : index
    %c384 = arith.constant 384 : index
    %24 = vector.load %arg11[%c0_6, %c384] : memref<32x512xf32, #tpu.memory_space<vmem>>, vector<32x128xf32>
    tpu.vector_store %arg11[%c0_6, %c384], %23 {strides = array<i32>} : memref<32x512xf32, #tpu.memory_space<vmem>>, vector<32x128xf32>,
    %c0_i32_7 = arith.constant 0 : i32
    %25 = arith.index_cast %c0_i32_7 : i32 to index
    %c0_8 = arith.constant 0 : index
    %c0_9 = arith.constant 0 : index
    %26 = vector.load %arg1[%25, %c0_8, %c0_9] : memref<2x32x256xf32, #tpu.memory_space<vmem>>, vector<1x32x256xf32>
    %27 = vector.shape_cast %26 : vector<1x32x256xf32> to vector<32x256xf32>
    %c0_10 = arith.constant 0 : index
    %c128 = arith.constant 128 : index
    %28 = vector.load %arg11[%c0_10, %c128] : memref<32x512xf32, #tpu.memory_space<vmem>>, vector<32x256xf32>
    tpu.vector_store %arg11[%c0_10, %c128], %27 {strides = array<i32>} : memref<32x512xf32, #tpu.memory_space<vmem>>, vector<32x256xf32>,
    %c0_11 = arith.constant 0 : index
    %c111 = arith.constant 111 : index
    %29 = vector.load %arg11[%c0_11, %c111] : memref<32x512xf32, #tpu.memory_space<vmem>>, vector<32x288xf32>
    %c0_i32_12 = arith.constant 0 : i32
    %30 = arith.sitofp %c0_i32_12 : i32 to f32
    %31 = vector.broadcast %30 : f32 to vector<32x288xf32>
    %32 = arith.select %18, %29, %31 : vector<32x288xi1>, vector<32x288xf32>
    %33 = vector.extract_strided_slice %32 {offsets = [0, 0], sizes = [32, 256], strides = [1, 1]} : vector<32x288xf32> to vector<32x256xf32>
    %34 = vector.extract_strided_slice %32 {offsets = [0, 16], sizes = [32, 256], strides = [1, 1]} : vector<32x288xf32> to vector<32x256xf32>
    %35 = vector.extract_strided_slice %32 {offsets = [0, 32], sizes = [32, 256], strides = [1, 1]} : vector<32x288xf32> to vector<32x256xf32>
    %36 = tpu.concatenate %33, %34, %35 in 0 : vector<32x256xf32>, vector<32x256xf32>, vector<32x256xf32> -> vector<96x256xf32>
    %c0_13 = arith.constant 0 : index
    %c0_14 = arith.constant 0 : index
    %c0_15 = arith.constant 0 : index
    %37 = vector.load %arg2[%c0_13, %c0_14, %c0_15] : memref<3x32x96xf32, #tpu.memory_space<vmem>>, vector<1x32x96xf32>
    %38 = vector.shape_cast %37 : vector<1x32x96xf32> to vector<32x96xf32>
    %cst_16 = arith.constant dense<0.000000e+00> : vector<32x256xf32>
    %39 = tpu.matmul %38, %36, %cst_16 {dimension_numbers = #tpu.dot_dimension_numbers<[1], [0], [0], [1], [0, 0, 1, 1], [], []>} : vector<32x96xf32>, vector<96x256xf32>, vector<32x256xf32> -> vector<32x256xf32>
    %c0_17 = arith.constant 0 : index
    %c112 = arith.constant 112 : index
    %40 = vector.load %arg11[%c0_17, %c112] : memref<32x512xf32, #tpu.memory_space<vmem>>, vector<32x288xf32>
    %41 = vector.extract_strided_slice %40 {offsets = [0, 0], sizes = [32, 256], strides = [1, 1]} : vector<32x288xf32> to vector<32x256xf32>
    %42 = vector.extract_strided_slice %40 {offsets = [0, 16], sizes = [32, 256], strides = [1, 1]} : vector<32x288xf32> to vector<32x256xf32>
    %43 = vector.extract_strided_slice %40 {offsets = [0, 32], sizes = [32, 256], strides = [1, 1]} : vector<32x288xf32> to vector<32x256xf32>
    %44 = tpu.concatenate %41, %42, %43 in 0 : vector<32x256xf32>, vector<32x256xf32>, vector<32x256xf32> -> vector<96x256xf32>
    %c1 = arith.constant 1 : index
    %c0_18 = arith.constant 0 : index
    %c0_19 = arith.constant 0 : index
    %45 = vector.load %arg2[%c1, %c0_18, %c0_19] : memref<3x32x96xf32, #tpu.memory_space<vmem>>, vector<1x32x96xf32>
    %46 = vector.shape_cast %45 : vector<1x32x96xf32> to vector<32x96xf32>
    %cst_20 = arith.constant dense<0.000000e+00> : vector<32x256xf32>
    %47 = tpu.matmul %46, %44, %cst_20 {dimension_numbers = #tpu.dot_dimension_numbers<[1], [0], [0], [1], [0, 0, 1, 1], [], []>} : vector<32x96xf32>, vector<96x256xf32>, vector<32x256xf32> -> vector<32x256xf32>
    %48 = arith.addf %39, %47 : vector<32x256xf32>
    %c0_21 = arith.constant 0 : index
    %c113 = arith.constant 113 : index
    %49 = vector.load %arg11[%c0_21, %c113] : memref<32x512xf32, #tpu.memory_space<vmem>>, vector<32x288xf32>
    %c0_i32_22 = arith.constant 0 : i32
    %50 = arith.sitofp %c0_i32_22 : i32 to f32
    %51 = vector.broadcast %50 : f32 to vector<32x288xf32>
    %52 = arith.select %20, %49, %51 : vector<32x288xi1>, vector<32x288xf32>
    %53 = vector.extract_strided_slice %52 {offsets = [0, 0], sizes = [32, 256], strides = [1, 1]} : vector<32x288xf32> to vector<32x256xf32>
    %54 = vector.extract_strided_slice %52 {offsets = [0, 16], sizes = [32, 256], strides = [1, 1]} : vector<32x288xf32> to vector<32x256xf32>
    %55 = vector.extract_strided_slice %52 {offsets = [0, 32], sizes = [32, 256], strides = [1, 1]} : vector<32x288xf32> to vector<32x256xf32>
    %56 = tpu.concatenate %53, %54, %55 in 0 : vector<32x256xf32>, vector<32x256xf32>, vector<32x256xf32> -> vector<96x256xf32>
    %c2 = arith.constant 2 : index
    %c0_23 = arith.constant 0 : index
    %c0_24 = arith.constant 0 : index
    %57 = vector.load %arg2[%c2, %c0_23, %c0_24] : memref<3x32x96xf32, #tpu.memory_space<vmem>>, vector<1x32x96xf32>
    %58 = vector.shape_cast %57 : vector<1x32x96xf32> to vector<32x96xf32>
    %cst_25 = arith.constant dense<0.000000e+00> : vector<32x256xf32>
    %59 = tpu.matmul %58, %56, %cst_25 {dimension_numbers = #tpu.dot_dimension_numbers<[1], [0], [0], [1], [0, 0, 1, 1], [], []>} : vector<32x96xf32>, vector<96x256xf32>, vector<32x256xf32> -> vector<32x256xf32>
    %60 = arith.addf %48, %59 : vector<32x256xf32>
    %c0_26 = arith.constant 0 : index
    %c0_27 = arith.constant 0 : index
    %61 = vector.load %arg3[%c0_26, %c0_27] : memref<32x1xf32, #tpu.memory_space<vmem>>, vector<32x1xf32>
    %62 = vector.broadcast %61 : vector<32x1xf32> to vector<32x256xf32>
    %63 = arith.addf %60, %62 : vector<32x256xf32>
    %cst_28 = arith.constant 0.000000e+00 : f32
    %64 = vector.broadcast %cst_28 : f32 to vector<32x256xf32>
    %65 = arith.maximumf %63, %64 : vector<32x256xf32>
    %c0_29 = arith.constant 0 : index
    %c128_30 = arith.constant 128 : index
    %66 = vector.load %arg11[%c0_29, %c128_30] : memref<32x512xf32, #tpu.memory_space<vmem>>, vector<32x256xf32>
    tpu.vector_store %arg11[%c0_29, %c128_30], %65 {strides = array<i32>} : memref<32x512xf32, #tpu.memory_space<vmem>>, vector<32x256xf32>,
    %c0_31 = arith.constant 0 : index
    %c111_32 = arith.constant 111 : index
    %67 = vector.load %arg11[%c0_31, %c111_32] : memref<32x512xf32, #tpu.memory_space<vmem>>, vector<32x288xf32>
    %c0_i32_33 = arith.constant 0 : i32
    %68 = arith.sitofp %c0_i32_33 : i32 to f32
    %69 = vector.broadcast %68 : f32 to vector<32x288xf32>
    %70 = arith.select %18, %67, %69 : vector<32x288xi1>, vector<32x288xf32>
    %71 = vector.extract_strided_slice %70 {offsets = [0, 0], sizes = [32, 256], strides = [1, 1]} : vector<32x288xf32> to vector<32x256xf32>
    %72 = vector.extract_strided_slice %70 {offsets = [0, 16], sizes = [32, 256], strides = [1, 1]} : vector<32x288xf32> to vector<32x256xf32>
    %73 = vector.extract_strided_slice %70 {offsets = [0, 32], sizes = [32, 256], strides = [1, 1]} : vector<32x288xf32> to vector<32x256xf32>
    %74 = tpu.concatenate %71, %72, %73 in 0 : vector<32x256xf32>, vector<32x256xf32>, vector<32x256xf32> -> vector<96x256xf32>
    %c0_34 = arith.constant 0 : index
    %c0_35 = arith.constant 0 : index
    %c0_36 = arith.constant 0 : index
    %75 = vector.load %arg4[%c0_34, %c0_35, %c0_36] : memref<3x32x96xf32, #tpu.memory_space<vmem>>, vector<1x32x96xf32>
    %76 = vector.shape_cast %75 : vector<1x32x96xf32> to vector<32x96xf32>
    %cst_37 = arith.constant dense<0.000000e+00> : vector<32x256xf32>
    %77 = tpu.matmul %76, %74, %cst_37 {dimension_numbers = #tpu.dot_dimension_numbers<[1], [0], [0], [1], [0, 0, 1, 1], [], []>} : vector<32x96xf32>, vector<96x256xf32>, vector<32x256xf32> -> vector<32x256xf32>
    %c0_38 = arith.constant 0 : index
    %c112_39 = arith.constant 112 : index
    %78 = vector.load %arg11[%c0_38, %c112_39] : memref<32x512xf32, #tpu.memory_space<vmem>>, vector<32x288xf32>
    %79 = vector.extract_strided_slice %78 {offsets = [0, 0], sizes = [32, 256], strides = [1, 1]} : vector<32x288xf32> to vector<32x256xf32>
    %80 = vector.extract_strided_slice %78 {offsets = [0, 16], sizes = [32, 256], strides = [1, 1]} : vector<32x288xf32> to vector<32x256xf32>
    %81 = vector.extract_strided_slice %78 {offsets = [0, 32], sizes = [32, 256], strides = [1, 1]} : vector<32x288xf32> to vector<32x256xf32>
    %82 = tpu.concatenate %79, %80, %81 in 0 : vector<32x256xf32>, vector<32x256xf32>, vector<32x256xf32> -> vector<96x256xf32>
    %c1_40 = arith.constant 1 : index
    %c0_41 = arith.constant 0 : index
    %c0_42 = arith.constant 0 : index
    %83 = vector.load %arg4[%c1_40, %c0_41, %c0_42] : memref<3x32x96xf32, #tpu.memory_space<vmem>>, vector<1x32x96xf32>
    %84 = vector.shape_cast %83 : vector<1x32x96xf32> to vector<32x96xf32>
    %cst_43 = arith.constant dense<0.000000e+00> : vector<32x256xf32>
    %85 = tpu.matmul %84, %82, %cst_43 {dimension_numbers = #tpu.dot_dimension_numbers<[1], [0], [0], [1], [0, 0, 1, 1], [], []>} : vector<32x96xf32>, vector<96x256xf32>, vector<32x256xf32> -> vector<32x256xf32>
    %86 = arith.addf %77, %85 : vector<32x256xf32>
    %c0_44 = arith.constant 0 : index
    %c113_45 = arith.constant 113 : index
    %87 = vector.load %arg11[%c0_44, %c113_45] : memref<32x512xf32, #tpu.memory_space<vmem>>, vector<32x288xf32>
    %c0_i32_46 = arith.constant 0 : i32
    %88 = arith.sitofp %c0_i32_46 : i32 to f32
    %89 = vector.broadcast %88 : f32 to vector<32x288xf32>
    %90 = arith.select %20, %87, %89 : vector<32x288xi1>, vector<32x288xf32>
    %91 = vector.extract_strided_slice %90 {offsets = [0, 0], sizes = [32, 256], strides = [1, 1]} : vector<32x288xf32> to vector<32x256xf32>
    %92 = vector.extract_strided_slice %90 {offsets = [0, 16], sizes = [32, 256], strides = [1, 1]} : vector<32x288xf32> to vector<32x256xf32>
    %93 = vector.extract_strided_slice %90 {offsets = [0, 32], sizes = [32, 256], strides = [1, 1]} : vector<32x288xf32> to vector<32x256xf32>
    %94 = tpu.concatenate %91, %92, %93 in 0 : vector<32x256xf32>, vector<32x256xf32>, vector<32x256xf32> -> vector<96x256xf32>
    %c2_47 = arith.constant 2 : index
    %c0_48 = arith.constant 0 : index
    %c0_49 = arith.constant 0 : index
    %95 = vector.load %arg4[%c2_47, %c0_48, %c0_49] : memref<3x32x96xf32, #tpu.memory_space<vmem>>, vector<1x32x96xf32>
    %96 = vector.shape_cast %95 : vector<1x32x96xf32> to vector<32x96xf32>
    %cst_50 = arith.constant dense<0.000000e+00> : vector<32x256xf32>
    %97 = tpu.matmul %96, %94, %cst_50 {dimension_numbers = #tpu.dot_dimension_numbers<[1], [0], [0], [1], [0, 0, 1, 1], [], []>} : vector<32x96xf32>, vector<96x256xf32>, vector<32x256xf32> -> vector<32x256xf32>
    %98 = arith.addf %86, %97 : vector<32x256xf32>
    %c0_51 = arith.constant 0 : index
    %c0_52 = arith.constant 0 : index
    %99 = vector.load %arg5[%c0_51, %c0_52] : memref<32x1xf32, #tpu.memory_space<vmem>>, vector<32x1xf32>
    %100 = vector.broadcast %99 : vector<32x1xf32> to vector<32x256xf32>
    %101 = arith.addf %98, %100 : vector<32x256xf32>
    %cst_53 = arith.constant dense<0.000000e+00> : vector<32xf32>
    %102 = vector.multi_reduction <add>, %101, %cst_53 [1] : vector<32x256xf32> to vector<32xf32>
    %103 = vector.shape_cast %102 : vector<32xf32> to vector<32x1xf32>
    %cst_54 = arith.constant 2.560000e+02 : f32
    %104 = vector.broadcast %cst_54 : f32 to vector<32x1xf32>
    %105 = arith.divf %103, %104 : vector<32x1xf32>
    %c0_55 = arith.constant 0 : index
    %c0_56 = arith.constant 0 : index
    %106 = vector.load %arg6[%c0_55, %c0_56] : memref<32x2xf32, #tpu.memory_space<vmem>>, vector<32x2xf32>
    %107 = vector.broadcast %105 : vector<32x1xf32> to vector<32x2xf32>
    %108 = arith.mulf %106, %107 : vector<32x2xf32>
    %cst_57 = arith.constant dense<0.000000e+00> : vector<2xf32>
    %109 = vector.multi_reduction <add>, %108, %cst_57 [0] : vector<32x2xf32> to vector<2xf32>
    %110 = vector.shape_cast %109 : vector<2xf32> to vector<1x2xf32>
    %c0_58 = arith.constant 0 : index
    %c0_59 = arith.constant 0 : index
    %111 = vector.load %arg7[%c0_58, %c0_59] : memref<1x2xf32, #tpu.memory_space<vmem>>, vector<1x2xf32>
    %112 = arith.addf %110, %111 : vector<1x2xf32>
    %cst_60 = arith.constant 0.000000e+00 : f32
    %113 = vector.broadcast %cst_60 : f32 to vector<1x2xf32>
    %114 = arith.maximumf %112, %113 : vector<1x2xf32>
    %c0_61 = arith.constant 0 : index
    %c0_62 = arith.constant 0 : index
    %115 = vector.load %arg8[%c0_61, %c0_62] : memref<32x2xf32, #tpu.memory_space<vmem>>, vector<32x2xf32>
    %116 = vector.broadcast %114 : vector<1x2xf32> to vector<32x2xf32>
    %117 = arith.mulf %115, %116 : vector<32x2xf32>
    %cst_63 = arith.constant dense<0.000000e+00> : vector<32xf32>
    %118 = vector.multi_reduction <add>, %117, %cst_63 [1] : vector<32x2xf32> to vector<32xf32>
    %119 = vector.shape_cast %118 : vector<32xf32> to vector<32x1xf32>
    %c0_64 = arith.constant 0 : index
    %c0_65 = arith.constant 0 : index
    %120 = vector.load %arg9[%c0_64, %c0_65] : memref<32x1xf32, #tpu.memory_space<vmem>>, vector<32x1xf32>
    %121 = arith.addf %119, %120 : vector<32x1xf32>
    %122 = arith.negf %121 : vector<32x1xf32>
    %123 = math.exp %122 : vector<32x1xf32>
    %cst_66 = arith.constant 1.000000e+00 : f32
    %124 = vector.broadcast %cst_66 : f32 to vector<32x1xf32>
    %125 = arith.addf %124, %123 : vector<32x1xf32>
    %126 = arith.divf %124, %125 : vector<32x1xf32>
    %127 = vector.broadcast %126 : vector<32x1xf32> to vector<32x256xf32>
    %128 = arith.mulf %101, %127 : vector<32x256xf32>
    %129 = arith.index_cast %c0_i32_7 : i32 to index
    %c0_67 = arith.constant 0 : index
    %c0_68 = arith.constant 0 : index
    %130 = vector.load %arg1[%129, %c0_67, %c0_68] : memref<2x32x256xf32, #tpu.memory_space<vmem>>, vector<1x32x256xf32>
    %131 = vector.shape_cast %130 : vector<1x32x256xf32> to vector<32x256xf32>
    %132 = arith.addf %128, %131 : vector<32x256xf32>
    %133 = arith.index_cast %c0_i32_7 : i32 to index
    %c0_69 = arith.constant 0 : index
    %c0_70 = arith.constant 0 : index
    %134 = vector.load %arg10[%133, %c0_69, %c0_70] : memref<2x32x256xf32, #tpu.memory_space<vmem>>, vector<1x32x256xf32>
    %135 = vector.shape_cast %134 : vector<1x32x256xf32> to vector<32x256xf32>
    %136 = vector.shape_cast %132 : vector<32x256xf32> to vector<1x32x256xf32>
    tpu.vector_store %arg10[%133, %c0_69, %c0_70], %136 {strides = array<i32>} : memref<2x32x256xf32, #tpu.memory_space<vmem>>, vector<1x32x256xf32>,
    %c1_i32_71 = arith.constant 1 : i32
    %137 = arith.index_cast %c1_i32_71 : i32 to index
    %c0_72 = arith.constant 0 : index
    %c0_73 = arith.constant 0 : index
    %138 = vector.load %arg1[%137, %c0_72, %c0_73] : memref<2x32x256xf32, #tpu.memory_space<vmem>>, vector<1x32x256xf32>
    %139 = vector.shape_cast %138 : vector<1x32x256xf32> to vector<32x256xf32>
    %c0_74 = arith.constant 0 : index
    %c128_75 = arith.constant 128 : index
    %140 = vector.load %arg11[%c0_74, %c128_75] : memref<32x512xf32, #tpu.memory_space<vmem>>, vector<32x256xf32>
    tpu.vector_store %arg11[%c0_74, %c128_75], %139 {strides = array<i32>} : memref<32x512xf32, #tpu.memory_space<vmem>>, vector<32x256xf32>,
    %c0_76 = arith.constant 0 : index
    %c111_77 = arith.constant 111 : index
    %141 = vector.load %arg11[%c0_76, %c111_77] : memref<32x512xf32, #tpu.memory_space<vmem>>, vector<32x288xf32>
    %c0_i32_78 = arith.constant 0 : i32
    %142 = arith.sitofp %c0_i32_78 : i32 to f32
    %143 = vector.broadcast %142 : f32 to vector<32x288xf32>
    %144 = arith.select %18, %141, %143 : vector<32x288xi1>, vector<32x288xf32>
    %145 = vector.extract_strided_slice %144 {offsets = [0, 0], sizes = [32, 256], strides = [1, 1]} : vector<32x288xf32> to vector<32x256xf32>
    %146 = vector.extract_strided_slice %144 {offsets = [0, 16], sizes = [32, 256], strides = [1, 1]} : vector<32x288xf32> to vector<32x256xf32>
    %147 = vector.extract_strided_slice %144 {offsets = [0, 32], sizes = [32, 256], strides = [1, 1]} : vector<32x288xf32> to vector<32x256xf32>
    %148 = tpu.concatenate %145, %146, %147 in 0 : vector<32x256xf32>, vector<32x256xf32>, vector<32x256xf32> -> vector<96x256xf32>
    %c0_79 = arith.constant 0 : index
    %c0_80 = arith.constant 0 : index
    %c0_81 = arith.constant 0 : index
    %149 = vector.load %arg2[%c0_79, %c0_80, %c0_81] : memref<3x32x96xf32, #tpu.memory_space<vmem>>, vector<1x32x96xf32>
    %150 = vector.shape_cast %149 : vector<1x32x96xf32> to vector<32x96xf32>
    %cst_82 = arith.constant dense<0.000000e+00> : vector<32x256xf32>
    %151 = tpu.matmul %150, %148, %cst_82 {dimension_numbers = #tpu.dot_dimension_numbers<[1], [0], [0], [1], [0, 0, 1, 1], [], []>} : vector<32x96xf32>, vector<96x256xf32>, vector<32x256xf32> -> vector<32x256xf32>
    %c0_83 = arith.constant 0 : index
    %c112_84 = arith.constant 112 : index
    %152 = vector.load %arg11[%c0_83, %c112_84] : memref<32x512xf32, #tpu.memory_space<vmem>>, vector<32x288xf32>
    %153 = vector.extract_strided_slice %152 {offsets = [0, 0], sizes = [32, 256], strides = [1, 1]} : vector<32x288xf32> to vector<32x256xf32>
    %154 = vector.extract_strided_slice %152 {offsets = [0, 16], sizes = [32, 256], strides = [1, 1]} : vector<32x288xf32> to vector<32x256xf32>
    %155 = vector.extract_strided_slice %152 {offsets = [0, 32], sizes = [32, 256], strides = [1, 1]} : vector<32x288xf32> to vector<32x256xf32>
    %156 = tpu.concatenate %153, %154, %155 in 0 : vector<32x256xf32>, vector<32x256xf32>, vector<32x256xf32> -> vector<96x256xf32>
    %c1_85 = arith.constant 1 : index
    %c0_86 = arith.constant 0 : index
    %c0_87 = arith.constant 0 : index
    %157 = vector.load %arg2[%c1_85, %c0_86, %c0_87] : memref<3x32x96xf32, #tpu.memory_space<vmem>>, vector<1x32x96xf32>
    %158 = vector.shape_cast %157 : vector<1x32x96xf32> to vector<32x96xf32>
    %cst_88 = arith.constant dense<0.000000e+00> : vector<32x256xf32>
    %159 = tpu.matmul %158, %156, %cst_88 {dimension_numbers = #tpu.dot_dimension_numbers<[1], [0], [0], [1], [0, 0, 1, 1], [], []>} : vector<32x96xf32>, vector<96x256xf32>, vector<32x256xf32> -> vector<32x256xf32>
    %160 = arith.addf %151, %159 : vector<32x256xf32>
    %c0_89 = arith.constant 0 : index
    %c113_90 = arith.constant 113 : index
    %161 = vector.load %arg11[%c0_89, %c113_90] : memref<32x512xf32, #tpu.memory_space<vmem>>, vector<32x288xf32>
    %c0_i32_91 = arith.constant 0 : i32
    %162 = arith.sitofp %c0_i32_91 : i32 to f32
    %163 = vector.broadcast %162 : f32 to vector<32x288xf32>
    %164 = arith.select %20, %161, %163 : vector<32x288xi1>, vector<32x288xf32>
    %165 = vector.extract_strided_slice %164 {offsets = [0, 0], sizes = [32, 256], strides = [1, 1]} : vector<32x288xf32> to vector<32x256xf32>
    %166 = vector.extract_strided_slice %164 {offsets = [0, 16], sizes = [32, 256], strides = [1, 1]} : vector<32x288xf32> to vector<32x256xf32>
    %167 = vector.extract_strided_slice %164 {offsets = [0, 32], sizes = [32, 256], strides = [1, 1]} : vector<32x288xf32> to vector<32x256xf32>
    %168 = tpu.concatenate %165, %166, %167 in 0 : vector<32x256xf32>, vector<32x256xf32>, vector<32x256xf32> -> vector<96x256xf32>
    %c2_92 = arith.constant 2 : index
    %c0_93 = arith.constant 0 : index
    %c0_94 = arith.constant 0 : index
    %169 = vector.load %arg2[%c2_92, %c0_93, %c0_94] : memref<3x32x96xf32, #tpu.memory_space<vmem>>, vector<1x32x96xf32>
    %170 = vector.shape_cast %169 : vector<1x32x96xf32> to vector<32x96xf32>
    %cst_95 = arith.constant dense<0.000000e+00> : vector<32x256xf32>
    %171 = tpu.matmul %170, %168, %cst_95 {dimension_numbers = #tpu.dot_dimension_numbers<[1], [0], [0], [1], [0, 0, 1, 1], [], []>} : vector<32x96xf32>, vector<96x256xf32>, vector<32x256xf32> -> vector<32x256xf32>
    %172 = arith.addf %160, %171 : vector<32x256xf32>
    %c0_96 = arith.constant 0 : index
    %c0_97 = arith.constant 0 : index
    %173 = vector.load %arg3[%c0_96, %c0_97] : memref<32x1xf32, #tpu.memory_space<vmem>>, vector<32x1xf32>
    %174 = vector.broadcast %173 : vector<32x1xf32> to vector<32x256xf32>
    %175 = arith.addf %172, %174 : vector<32x256xf32>
    %cst_98 = arith.constant 0.000000e+00 : f32
    %176 = vector.broadcast %cst_98 : f32 to vector<32x256xf32>
    %177 = arith.maximumf %175, %176 : vector<32x256xf32>
    %c0_99 = arith.constant 0 : index
    %c128_100 = arith.constant 128 : index
    %178 = vector.load %arg11[%c0_99, %c128_100] : memref<32x512xf32, #tpu.memory_space<vmem>>, vector<32x256xf32>
    tpu.vector_store %arg11[%c0_99, %c128_100], %177 {strides = array<i32>} : memref<32x512xf32, #tpu.memory_space<vmem>>, vector<32x256xf32>,
    %c0_101 = arith.constant 0 : index
    %c111_102 = arith.constant 111 : index
    %179 = vector.load %arg11[%c0_101, %c111_102] : memref<32x512xf32, #tpu.memory_space<vmem>>, vector<32x288xf32>
    %c0_i32_103 = arith.constant 0 : i32
    %180 = arith.sitofp %c0_i32_103 : i32 to f32
    %181 = vector.broadcast %180 : f32 to vector<32x288xf32>
    %182 = arith.select %18, %179, %181 : vector<32x288xi1>, vector<32x288xf32>
    %183 = vector.extract_strided_slice %182 {offsets = [0, 0], sizes = [32, 256], strides = [1, 1]} : vector<32x288xf32> to vector<32x256xf32>
    %184 = vector.extract_strided_slice %182 {offsets = [0, 16], sizes = [32, 256], strides = [1, 1]} : vector<32x288xf32> to vector<32x256xf32>
    %185 = vector.extract_strided_slice %182 {offsets = [0, 32], sizes = [32, 256], strides = [1, 1]} : vector<32x288xf32> to vector<32x256xf32>
    %186 = tpu.concatenate %183, %184, %185 in 0 : vector<32x256xf32>, vector<32x256xf32>, vector<32x256xf32> -> vector<96x256xf32>
    %c0_104 = arith.constant 0 : index
    %c0_105 = arith.constant 0 : index
    %c0_106 = arith.constant 0 : index
    %187 = vector.load %arg4[%c0_104, %c0_105, %c0_106] : memref<3x32x96xf32, #tpu.memory_space<vmem>>, vector<1x32x96xf32>
    %188 = vector.shape_cast %187 : vector<1x32x96xf32> to vector<32x96xf32>
    %cst_107 = arith.constant dense<0.000000e+00> : vector<32x256xf32>
    %189 = tpu.matmul %188, %186, %cst_107 {dimension_numbers = #tpu.dot_dimension_numbers<[1], [0], [0], [1], [0, 0, 1, 1], [], []>} : vector<32x96xf32>, vector<96x256xf32>, vector<32x256xf32> -> vector<32x256xf32>
    %c0_108 = arith.constant 0 : index
    %c112_109 = arith.constant 112 : index
    %190 = vector.load %arg11[%c0_108, %c112_109] : memref<32x512xf32, #tpu.memory_space<vmem>>, vector<32x288xf32>
    %191 = vector.extract_strided_slice %190 {offsets = [0, 0], sizes = [32, 256], strides = [1, 1]} : vector<32x288xf32> to vector<32x256xf32>
    %192 = vector.extract_strided_slice %190 {offsets = [0, 16], sizes = [32, 256], strides = [1, 1]} : vector<32x288xf32> to vector<32x256xf32>
    %193 = vector.extract_strided_slice %190 {offsets = [0, 32], sizes = [32, 256], strides = [1, 1]} : vector<32x288xf32> to vector<32x256xf32>
    %194 = tpu.concatenate %191, %192, %193 in 0 : vector<32x256xf32>, vector<32x256xf32>, vector<32x256xf32> -> vector<96x256xf32>
    %c1_110 = arith.constant 1 : index
    %c0_111 = arith.constant 0 : index
    %c0_112 = arith.constant 0 : index
    %195 = vector.load %arg4[%c1_110, %c0_111, %c0_112] : memref<3x32x96xf32, #tpu.memory_space<vmem>>, vector<1x32x96xf32>
    %196 = vector.shape_cast %195 : vector<1x32x96xf32> to vector<32x96xf32>
    %cst_113 = arith.constant dense<0.000000e+00> : vector<32x256xf32>
    %197 = tpu.matmul %196, %194, %cst_113 {dimension_numbers = #tpu.dot_dimension_numbers<[1], [0], [0], [1], [0, 0, 1, 1], [], []>} : vector<32x96xf32>, vector<96x256xf32>, vector<32x256xf32> -> vector<32x256xf32>
    %198 = arith.addf %189, %197 : vector<32x256xf32>
    %c0_114 = arith.constant 0 : index
    %c113_115 = arith.constant 113 : index
    %199 = vector.load %arg11[%c0_114, %c113_115] : memref<32x512xf32, #tpu.memory_space<vmem>>, vector<32x288xf32>
    %c0_i32_116 = arith.constant 0 : i32
    %200 = arith.sitofp %c0_i32_116 : i32 to f32
    %201 = vector.broadcast %200 : f32 to vector<32x288xf32>
    %202 = arith.select %20, %199, %201 : vector<32x288xi1>, vector<32x288xf32>
    %203 = vector.extract_strided_slice %202 {offsets = [0, 0], sizes = [32, 256], strides = [1, 1]} : vector<32x288xf32> to vector<32x256xf32>
    %204 = vector.extract_strided_slice %202 {offsets = [0, 16], sizes = [32, 256], strides = [1, 1]} : vector<32x288xf32> to vector<32x256xf32>
    %205 = vector.extract_strided_slice %202 {offsets = [0, 32], sizes = [32, 256], strides = [1, 1]} : vector<32x288xf32> to vector<32x256xf32>
    %206 = tpu.concatenate %203, %204, %205 in 0 : vector<32x256xf32>, vector<32x256xf32>, vector<32x256xf32> -> vector<96x256xf32>
    %c2_117 = arith.constant 2 : index
    %c0_118 = arith.constant 0 : index
    %c0_119 = arith.constant 0 : index
    %207 = vector.load %arg4[%c2_117, %c0_118, %c0_119] : memref<3x32x96xf32, #tpu.memory_space<vmem>>, vector<1x32x96xf32>
    %208 = vector.shape_cast %207 : vector<1x32x96xf32> to vector<32x96xf32>
    %cst_120 = arith.constant dense<0.000000e+00> : vector<32x256xf32>
    %209 = tpu.matmul %208, %206, %cst_120 {dimension_numbers = #tpu.dot_dimension_numbers<[1], [0], [0], [1], [0, 0, 1, 1], [], []>} : vector<32x96xf32>, vector<96x256xf32>, vector<32x256xf32> -> vector<32x256xf32>
    %210 = arith.addf %198, %209 : vector<32x256xf32>
    %c0_121 = arith.constant 0 : index
    %c0_122 = arith.constant 0 : index
    %211 = vector.load %arg5[%c0_121, %c0_122] : memref<32x1xf32, #tpu.memory_space<vmem>>, vector<32x1xf32>
    %212 = vector.broadcast %211 : vector<32x1xf32> to vector<32x256xf32>
    %213 = arith.addf %210, %212 : vector<32x256xf32>
    %cst_123 = arith.constant dense<0.000000e+00> : vector<32xf32>
    %214 = vector.multi_reduction <add>, %213, %cst_123 [1] : vector<32x256xf32> to vector<32xf32>
    %215 = vector.shape_cast %214 : vector<32xf32> to vector<32x1xf32>
    %cst_124 = arith.constant 2.560000e+02 : f32
    %216 = vector.broadcast %cst_124 : f32 to vector<32x1xf32>
    %217 = arith.divf %215, %216 : vector<32x1xf32>
    %c0_125 = arith.constant 0 : index
    %c0_126 = arith.constant 0 : index
    %218 = vector.load %arg6[%c0_125, %c0_126] : memref<32x2xf32, #tpu.memory_space<vmem>>, vector<32x2xf32>
    %219 = vector.broadcast %217 : vector<32x1xf32> to vector<32x2xf32>
    %220 = arith.mulf %218, %219 : vector<32x2xf32>
    %cst_127 = arith.constant dense<0.000000e+00> : vector<2xf32>
    %221 = vector.multi_reduction <add>, %220, %cst_127 [0] : vector<32x2xf32> to vector<2xf32>
    %222 = vector.shape_cast %221 : vector<2xf32> to vector<1x2xf32>
    %c0_128 = arith.constant 0 : index
    %c0_129 = arith.constant 0 : index
    %223 = vector.load %arg7[%c0_128, %c0_129] : memref<1x2xf32, #tpu.memory_space<vmem>>, vector<1x2xf32>
    %224 = arith.addf %222, %223 : vector<1x2xf32>
    %cst_130 = arith.constant 0.000000e+00 : f32
    %225 = vector.broadcast %cst_130 : f32 to vector<1x2xf32>
    %226 = arith.maximumf %224, %225 : vector<1x2xf32>
    %c0_131 = arith.constant 0 : index
    %c0_132 = arith.constant 0 : index
    %227 = vector.load %arg8[%c0_131, %c0_132] : memref<32x2xf32, #tpu.memory_space<vmem>>, vector<32x2xf32>
    %228 = vector.broadcast %226 : vector<1x2xf32> to vector<32x2xf32>
    %229 = arith.mulf %227, %228 : vector<32x2xf32>
    %cst_133 = arith.constant dense<0.000000e+00> : vector<32xf32>
    %230 = vector.multi_reduction <add>, %229, %cst_133 [1] : vector<32x2xf32> to vector<32xf32>
    %231 = vector.shape_cast %230 : vector<32xf32> to vector<32x1xf32>
    %c0_134 = arith.constant 0 : index
    %c0_135 = arith.constant 0 : index
    %232 = vector.load %arg9[%c0_134, %c0_135] : memref<32x1xf32, #tpu.memory_space<vmem>>, vector<32x1xf32>
    %233 = arith.addf %231, %232 : vector<32x1xf32>
    %234 = arith.negf %233 : vector<32x1xf32>
    %235 = math.exp %234 : vector<32x1xf32>
    %cst_136 = arith.constant 1.000000e+00 : f32
    %236 = vector.broadcast %cst_136 : f32 to vector<32x1xf32>
    %237 = arith.addf %236, %235 : vector<32x1xf32>
    %238 = arith.divf %236, %237 : vector<32x1xf32>
    %239 = vector.broadcast %238 : vector<32x1xf32> to vector<32x256xf32>
    %240 = arith.mulf %213, %239 : vector<32x256xf32>
    %241 = arith.index_cast %c1_i32_71 : i32 to index
    %c0_137 = arith.constant 0 : index
    %c0_138 = arith.constant 0 : index
    %242 = vector.load %arg1[%241, %c0_137, %c0_138] : memref<2x32x256xf32, #tpu.memory_space<vmem>>, vector<1x32x256xf32>
    %243 = vector.shape_cast %242 : vector<1x32x256xf32> to vector<32x256xf32>
    %244 = arith.addf %240, %243 : vector<32x256xf32>
    %245 = arith.index_cast %c1_i32_71 : i32 to index
    %c0_139 = arith.constant 0 : index
    %c0_140 = arith.constant 0 : index
    %246 = vector.load %arg10[%245, %c0_139, %c0_140] : memref<2x32x256xf32, #tpu.memory_space<vmem>>, vector<1x32x256xf32>
    %247 = vector.shape_cast %246 : vector<1x32x256xf32> to vector<32x256xf32>
    %248 = vector.shape_cast %244 : vector<32x256xf32> to vector<1x32x256xf32>
    tpu.vector_store %arg10[%245, %c0_139, %c0_140], %248 {strides = array<i32>} : memref<2x32x256xf32, #tpu.memory_space<vmem>>, vector<1x32x256xf32>,
    %c2_i32 = arith.constant 2 : i32
    return
  }
  func.func @transform_0(%arg0: i32) -> (i32, i32, i32) {
    %c0_i32 = arith.constant 0 : i32
    %c0_i32_0 = arith.constant 0 : i32
    %c0_i32_1 = arith.constant 0 : i32
    return %arg0, %c0_i32, %c0_i32_0 : i32, i32, i32
  }
  func.func @transform_1(%arg0: i32) -> (i32, i32, i32) {
    %c0_i32 = arith.constant 0 : i32
    %c0_i32_0 = arith.constant 0 : i32
    %c0_i32_1 = arith.constant 0 : i32
    %c0_i32_2 = arith.constant 0 : i32
    return %c0_i32, %c0_i32_0, %c0_i32_1 : i32, i32, i32
  }
  func.func @transform_2(%arg0: i32) -> (i32, i32) {
    %c0_i32 = arith.constant 0 : i32
    %c0_i32_0 = arith.constant 0 : i32
    %c0_i32_1 = arith.constant 0 : i32
    return %c0_i32, %c0_i32_0 : i32, i32
  }
  func.func @transform_3(%arg0: i32) -> (i32, i32, i32) {
    %c0_i32 = arith.constant 0 : i32
    %c0_i32_0 = arith.constant 0 : i32
    %c0_i32_1 = arith.constant 0 : i32
    %c0_i32_2 = arith.constant 0 : i32
    return %c0_i32, %c0_i32_0, %c0_i32_1 : i32, i32, i32
  }
  func.func @transform_4(%arg0: i32) -> (i32, i32) {
    %c0_i32 = arith.constant 0 : i32
    %c0_i32_0 = arith.constant 0 : i32
    %c0_i32_1 = arith.constant 0 : i32
    return %c0_i32, %c0_i32_0 : i32, i32
  }
  func.func @transform_5(%arg0: i32) -> (i32, i32) {
    %c0_i32 = arith.constant 0 : i32
    %c0_i32_0 = arith.constant 0 : i32
    %c0_i32_1 = arith.constant 0 : i32
    return %c0_i32, %c0_i32_0 : i32, i32
  }
  func.func @transform_6(%arg0: i32) -> (i32, i32) {
    %c0_i32 = arith.constant 0 : i32
    %c0_i32_0 = arith.constant 0 : i32
    %c0_i32_1 = arith.constant 0 : i32
    return %c0_i32, %c0_i32_0 : i32, i32
  }
  func.func @transform_7(%arg0: i32) -> (i32, i32) {
    %c0_i32 = arith.constant 0 : i32
    %c0_i32_0 = arith.constant 0 : i32
    %c0_i32_1 = arith.constant 0 : i32
    return %c0_i32, %c0_i32_0 : i32, i32
  }
  func.func @transform_8(%arg0: i32) -> (i32, i32) {
    %c0_i32 = arith.constant 0 : i32
    %c0_i32_0 = arith.constant 0 : i32
    %c0_i32_1 = arith.constant 0 : i32
    return %c0_i32, %c0_i32_0 : i32, i32
  }
  func.func @transform_9(%arg0: i32) -> (i32, i32, i32) {
    %c0_i32 = arith.constant 0 : i32
    %c0_i32_0 = arith.constant 0 : i32
    %c0_i32_1 = arith.constant 0 : i32
    return %arg0, %c0_i32, %c0_i32_0 : i32, i32, i32
  }
}

</mosaic_0001>

<bundles_post_ra>
// kernel: rcab_pallas.1
= control target key start
LH: loop header
LB: loop body
LE: loop exit
PB: predicated region body
PF: predicated region fallthrough
CT: control target
= control target key end

     0   :  { %s4895_s30 = smov 0   ;;  %s8032_s0 = inlined_call_operand.vmem [shape: f32[4,32,256], index: 0, kind: input, shape index: {}]   ;;  %s8033_s1 = inlined_call_operand.vmem [shape: f32[3,32,96], index: 1, kind: input, shape index: {}]   ;;  %s8034_s2 = inlined_call_operand.vmem [shape: f32[32,1], index: 2, kind: input, shape index: {}]   ;;  %s8035_s3 = inlined_call_operand.vmem [shape: f32[3,32,96], index: 3, kind: input, shape index: {}]   ;;  %s8036_s4 = inlined_call_operand.vmem [shape: f32[32,1], index: 4, kind: input, shape index: {}]   ;;  %s8037_s5 = inlined_call_operand.vmem [shape: f32[32,2], index: 5, kind: input, shape index: {}]   ;;  %s8038_s6 = inlined_call_operand.vmem [shape: f32[1,2], index: 6, kind: input, shape index: {}]   ;;  %s8039_s7 = inlined_call_operand.vmem [shape: f32[32,2], index: 7, kind: input, shape index: {}]   ;;  %s8040_s8 = inlined_call_operand.vmem [shape: f32[32,1], index: 8, kind: input, shape index: {}]   ;;  %s8041_s9 = inlined_call_operand.vmem [shape: f32[4,32,256], index: 9, kind: output, shape index: {}]  }
   0x1 LB: > { %s4342_s10 = sadd.s32 4294967295, %s4836_s30   ;;  %p4346_p0 = scmp.ge.s32.totalorder %s4836_s30, 1  ;;  %s4836_s30 = sphi %s4895_s30, %s19_s30  }
   0x2   : > { %p289_p1 = scmp.lt.s32.totalorder %s4836_s30, 3 }
   0x4   : > { %p290_p2 = pnand %p4346_p0, %p289_p1 }
   0x6   : > { %293 = sbr.rel (%p290_p2) target bundleno = 2444 (0x98c), region = 56 }
   0xb   : > { %s4347_s11 = sshll.u32 %s4342_s10, 1  ;;  %v8043_v0 = vmov 0.0   ;;  %s4839_s12 = smov 96   ;;  %vm589_vm0 = vcmask 785408   ;;  %vm548_vm1 = vcmask 916480   ;;  %v8042_v46 = vlaneseq }
   0xc   : > { %p328_p3 = scmp.lt.s32.totalorder %s4347_s11, 3  ;;  %864 = vmatprep.mubr.f32.mxu0 %v8043_v0  ;;  %965 = vmatprep.mubr.f32.mxu1 %v8043_v0  ;;  %s4840_s17 = smov 112   ;;  %vm475_vm2 = vcmask 138240   ;;  %v8128_v57 = vmov 0  ;;  %v8131_v61 = vmov 0  ;;  %vm1022_vm6 = vcmask 121856  }
   0xd   : > { %4549 = vrot.lane.b32.xlu1 %v8043_v0, %s4839_s12  ;;  %s4841_s18 = smov 17   ;;  %s4842_s19 = smov 15   ;;  %v342_v49 = vand.u32 127, %v8042_v46  ;;  %vm739_vm10 = vcmask 130048   ;;  %vm2219_vm11 = vcmask 15360  }
   0xe   : > { %s8378_s11 = smov (!%p328_p3, %s4347_s11), 3  ;;  %s4843_s20 = smov 16  }
   0xf   : > { %s4531_s13 = sshll.u32 %s8378_s11, 6  ;;  %v344_v50 = vadd.s32 256, %v342_v49  ;;  %v343_v51 = vadd.s32 128, %v342_v49 }
  0x10   : > { %s4915_s16 = scalar_lea.vmem %s8032_s0, %s4531_s13  ;;  %s7985_s14 = scalar_lea.vmem %s8041_s9, %s4531_s13 }
  0x11   : > { %v4918_v1 = vld [vmem:[%s4915_s16 + $0x30] sm:$0xff]  ;;  %v4921_v2 = vld [vmem:[%s4915_s16 + $0x20] sm:$0xff]  ;;  %v4928_v3 = vld [vmem:[%s4915_s16 + $0x38] sm:$0xff]  ;;  %v363_v55 = vand.u32 15, %v344_v50  ;;  %v356_v56 = vand.u32 15, %v343_v51 }
  0x12   : > { %648 = vrot.lane.b32.xlu0 %v4918_v1, %s4839_s12  ;;  %642 = vrot.lane.b32.xlu1 %v4921_v2, %s4839_s12  ;;  %v4931_v4 = vld [vmem:[%s4915_s16 + $0x10] sm:$0xff]  ;;  %v4938_v5 = vld [vmem:[%s4915_s16 + $0x28] sm:$0xff] }
  0x13   : > { %v4945_v6 = vld [vmem:[%s4915_s16 + $0x18] sm:$0xff]  ;;  %v4948_v7 = vld [vmem:[%s4915_s16 + $0x8] sm:$0xff]  ;;  %v4955_v8 = vld [vmem:[%s4915_s16] sm:$0xff]  ;;  %vm5072_vm3 = vcmp.ne.s32.totalorder %v363_v55, 0  ;;  %vm5081_vm4 = vcmp.ne.s32.totalorder %v356_v56, 0  ;;  %vm5125_vm7 = vcmp.ne.s32.totalorder %v356_v56, 15 }
  0x14   : > { %v8129_v57 = vsel %vm5072_vm3, 4294967295, %v8128_v57  ;;  %v8132_v61 = vsel %vm5081_vm4, 4294967295, %v8131_v61  ;;  %vm5150_vm8 = vcmp.ne.s32.totalorder %v363_v55, 15 }
  0x15   : > { %8130 = vst [vmem:[#allocation3_spill] sm:$0xff] %v8129_v57  ;;  %8133 = vst [vmem:[#allocation4_spill] sm:$0xff] %v8132_v61 }
  0x16   : > { %650 = vrot.lane.b32.xlu0 %v4928_v3, %s4839_s12  ;;  %636 = vrot.lane.b32.xlu1 %v4931_v4, %s4839_s12 }
  0x1a   : > { %644 = vrot.lane.b32.xlu0 %v4938_v5, %s4839_s12  ;;  %4554 = vrot.lane.b32.xlu1 %v8043_v0, %s4839_s12 }
  0x1e   : > { %638 = vrot.lane.b32.xlu0 %v4945_v6, %s4839_s12  ;;  %632 = vrot.lane.b32.xlu1 %v4948_v7, %s4839_s12 }
  0x22   : > { %630 = vrot.lane.b32.xlu0 %v4955_v8, %s4839_s12  ;;  %624 = vrot.lane.b32.xlu1 %v4928_v3, %s4840_s17 }
  0x26   : > { %622 = vrot.lane.b32.xlu0 %v4918_v1, %s4840_s17  ;;  %620 = vrot.lane.b32.xlu1 %v4938_v5, %s4840_s17 }
  0x2a   : > { %618 = vrot.lane.b32.xlu0 %v4921_v2, %s4840_s17  ;;  %616 = vrot.lane.b32.xlu1 %v4945_v6, %s4840_s17 }
  0x2e   : > { %614 = vrot.lane.b32.xlu0 %v4931_v4, %s4840_s17  ;;  %612 = vrot.lane.b32.xlu1 %v4948_v7, %s4840_s17 }
  0x32   : > { %610 = vrot.lane.b32.xlu0 %v4955_v8, %s4840_s17  ;;  %471 = vrot.lane.b32.xlu1 %v4928_v3, %s4841_s18 }
  0x36   : > { %469 = vrot.lane.b32.xlu0 %v4918_v1, %s4841_s18  ;;  %461 = vrot.lane.b32.xlu1 %v4921_v2, %s4841_s18 }
  0x3a   : > { %4559 = vrot.lane.b32.xlu0 %v8043_v0, %s4841_s18  ;;  %4564 = vrot.lane.b32.xlu1 %v8043_v0, %s4841_s18 }
  0x3e   : > { %463 = vrot.lane.b32.xlu0 %v4938_v5, %s4841_s18  ;;  %1018 = vrot.lane.b32.xlu1 %v4928_v3, %s4842_s19 }
  0x42   : > { %1016 = vrot.lane.b32.xlu0 %v4918_v1, %s4842_s19  ;;  %453 = vrot.lane.b32.xlu1 %v4931_v4, %s4841_s18 }
  0x46   : > { %4569 = vrot.lane.b32.xlu0 %v8043_v0, %s4842_s19  ;;  %4574 = vrot.lane.b32.xlu1 %v8043_v0, %s4841_s18 }
  0x4a   : > { %455 = vrot.lane.b32.xlu0 %v4945_v6, %s4841_s18  ;;  %1010 = vrot.lane.b32.xlu1 %v4938_v5, %s4842_s19 }
  0x4e   : > { %1008 = vrot.lane.b32.xlu0 %v4921_v2, %s4842_s19  ;;  %445 = vrot.lane.b32.xlu1 %v4955_v8, %s4841_s18 }
  0x52   : > { %4579 = vrot.lane.b32.xlu0 %v8043_v0, %s4842_s19  ;;  %4584 = vrot.lane.b32.xlu1 %v8043_v0, %s4841_s18 }
  0x56   : > { %447 = vrot.lane.b32.xlu0 %v4948_v7, %s4841_s18  ;;  %1002 = vrot.lane.b32.xlu1 %v4945_v6, %s4842_s19 }
  0x5a   : > { %1000 = vrot.lane.b32.xlu0 %v4931_v4, %s4842_s19  ;;  %992 = vrot.lane.b32.xlu1 %v4955_v8, %s4842_s19 }
  0x5e   : > { %4589 = vrot.lane.b32.xlu0 %v8043_v0, %s4842_s19  ;;  %4594 = vrot.lane.b32.xlu1 %v8043_v0, %s4842_s19 }
  0x62   : > { %994 = vrot.lane.b32.xlu0 %v4948_v7, %s4842_s19 }
  0x7f   : > { %v4550_v9 = vpop.permute.xlu1 %4549 }
  0x80   : > { %v4551_v25 = vunpack.i.l.bf16 %v4550_v9  ;;  %v4552_v28 = vunpack.i.h.bf16 %v4550_v9  ;;  %v8134_v9 = vmov 0 }
  0x84   : > { %v649_v10 = vpop.permute.xlu0 %648  ;;  %v643_v11 = vpop.permute.xlu1 %642 }
  0x85   : > { %733 = vrot.lane.b32.xlu0 %v649_v10, %s4843_s20  ;;  %727 = vrot.lane.b32.xlu1 %v643_v11, %s4843_s20 }
  0x88   : > { %v651_v12 = vpop.permute.xlu0 %650  ;;  %v637_v13 = vpop.permute.xlu1 %636 }
  0x89   : > { %721 = vrot.lane.b32.xlu0 %v637_v13, %s4843_s20  ;;  %v661_v26 = vsel %vm589_vm0, %v651_v12, %v4551_v25  ;;  %v660_v27 = vsel %vm589_vm0, %v649_v10, %v651_v12 }
  0x8c   : > { %v645_v14 = vpop.permute.xlu0 %644  ;;  %v4555_v15 = vpop.permute.xlu1 %4554 }
  0x8d   : > { %v4556_v29 = vunpack.i.l.bf16 %v4555_v15  ;;  %v658_v30 = vsel %vm589_vm0, %v643_v11, %v645_v14  ;;  %v659_v31 = vsel %vm589_vm0, %v645_v14, %v4552_v28  ;;  %v4557_v32 = vunpack.i.h.bf16 %v4555_v15 }
  0x90   : > { %v639_v16 = vpop.permute.xlu0 %638  ;;  %v633_v17 = vpop.permute.xlu1 %632 }
  0x91   : > { %v657_v33 = vsel %vm589_vm0, %v639_v16, %v4556_v29  ;;  %v656_v34 = vsel %vm589_vm0, %v637_v13, %v639_v16  ;;  %v655_v36 = vsel %vm589_vm0, %v633_v17, %v4557_v32  ;;  %v8137_v13 = vmov 0 }
  0x92   : > { %v8138_v13 = vsel %vm5125_vm7, 4294967295, %v8137_v13 }
  0x93   : > { %8139 = vst [vmem:[#allocation6_spill] sm:$0xff] %v8138_v13 }
  0x94   : > { %v631_v18 = vpop.permute.xlu0 %630  ;;  %v625_v19 = vpop.permute.xlu1 %624 }
  0x95   : > { %715 = vrot.lane.b32.xlu1 %v631_v18, %s4843_s20  ;;  %v654_v35 = vsel %vm589_vm0, %v631_v18, %v633_v17 }
  0x98   : > { %v623_v20 = vpop.permute.xlu0 %622  ;;  %v621_v21 = vpop.permute.xlu1 %620 }
  0x99   : > { %713 = vrot.lane.b32.xlu1 %v625_v19, %s4843_s20  ;;  %709 = vrot.lane.b32.xlu0 %v623_v20, %s4843_s20  ;;  %v629_v40 = vsel %vm548_vm1, %v623_v20, %v625_v19 }
  0x9c   : > { %v619_v22 = vpop.permute.xlu0 %618  ;;  %v617_v23 = vpop.permute.xlu1 %616 }
  0x9d   : > { %707 = vrot.lane.b32.xlu0 %v621_v21, %s4843_s20  ;;  %703 = vrot.lane.b32.xlu1 %v619_v22, %s4843_s20  ;;  %v628_v39 = vsel %vm548_vm1, %v619_v22, %v621_v21  ;;  %v8140_v22 = vmov 0 }
  0x9e   : > { %v8141_v22 = vsel %vm5150_vm8, 4294967295, %v8140_v22 }
  0x9f   : > { %8142 = vst [vmem:[#allocation7_spill] sm:$0xff] %v8141_v22 }
  0xa0   : > { %v615_v24 = vpop.permute.xlu0 %614  ;;  %v613_v38 = vpop.permute.xlu1 %612 }
  0xa1   : > { %701 = vrot.lane.b32.xlu1 %v617_v23, %s4843_s20  ;;  %697 = vrot.lane.b32.xlu0 %v615_v24, %s4843_s20  ;;  %v627_v43 = vsel %vm548_vm1, %v615_v24, %v617_v23 }
  0xa4   : > { %v611_v37 = vpop.permute.xlu0 %610  ;;  %v472_v44 = vpop.permute.xlu1 %471 }
  0xa5   : > { %737 = vrot.lane.b32.xlu1 %v661_v26, %s4843_s20  ;;  %735 = vrot.lane.b32.xlu0 %v660_v27, %s4843_s20  ;;  %v626_v41 = vsel %vm548_vm1, %v611_v37, %v613_v38 }
  0xa8   : > { %v470_v42 = vpop.permute.xlu0 %469  ;;  %v462_v47 = vpop.permute.xlu1 %461 }
  0xa9   : > { %729 = vrot.lane.b32.xlu1 %v658_v30, %s4843_s20  ;;  %731 = vrot.lane.b32.xlu0 %v659_v31, %s4843_s20  ;;  %v5086_v62 = vsel %vm475_vm2, %v470_v42, %v472_v44  ;;  %v8143_v30 = vmov 0 }
  0xac   : > { %v4560_v45 = vpop.permute.xlu0 %4559  ;;  %v4565_v52 = vpop.permute.xlu1 %4564 }
  0xad   : > { %725 = vrot.lane.b32.xlu1 %v657_v33, %s4843_s20  ;;  %723 = vrot.lane.b32.xlu0 %v656_v34, %s4843_s20  ;;  %v4561_v54 = vunpack.i.l.bf16 %v4560_v45  ;;  %v4567_v15 = vunpack.i.h.bf16 %v4565_v52 }
  0xaf   : > { %v487_v58 = vsel %vm475_vm2, %v472_v44, %v4561_v54  ;;  %v5156_v24 = vsel %vm475_vm2, %v4567_v15, %v462_v47 }
  0xb0   : > { %v464_v48 = vpop.permute.xlu0 %463  ;;  %v1019_v59 = vpop.permute.xlu1 %1018  ;;  %v5090_v63 = vsel %vm5072_vm3, %v487_v58, 0.0 }
  0xb1   : > { %717 = vrot.lane.b32.xlu1 %v654_v35, %s4843_s20  ;;  %719 = vrot.lane.b32.xlu0 %v655_v36, %s4843_s20  ;;  %v5113_v11 = vsel %vm475_vm2, %v462_v47, %v464_v48 }
  0xb4   : > { %v1017_v53 = vpop.permute.xlu0 %1016 }
  0xb5   : > { %705 = vrot.lane.b32.xlu1 %v628_v39, %s4843_s20  ;;  %711 = vrot.lane.b32.xlu0 %v629_v40, %s4843_s20  ;;  %v5135_v18 = vsel %vm1022_vm6, %v1017_v53, %v1019_v59 }
  0xb6   : > { %v5144_v20 = vsel %vm5125_vm7, %v5135_v18, 0.0 }
  0xb8   : > { %v4570_v60 = vpop.permute.xlu0 %4569 }
  0xb9   : > { %699 = vrot.lane.b32.xlu0 %v627_v43, %s4843_s20  ;;  %693 = vrot.lane.b32.xlu1 %v626_v41, %s4843_s20  ;;  %v4571_v16 = vunpack.i.l.bf16 %v4570_v60  ;;  %v4572_v21 = vunpack.i.h.bf16 %v4570_v60 }
  0xbb   : > { %v1034_v23 = vsel %vm1022_vm6, %v1019_v59, %v4571_v16  ;;  %v5176_v31 = vsel %vm1022_vm6, %v4572_v21, %v1017_v53 }
  0xbc   : > { %v5160_v27 = vsel %vm5150_vm8, %v1034_v23, 0.0 }
  0xbd   : > { %695 = vrot.lane.b32.xlu0 %v613_v38, %s4843_s20  ;;  %691 = vrot.lane.b32.xlu1 %v611_v37, %s4843_s20 }
  0xc1   : > { %687 = vrot.lane.b32.xlu0 %v4918_v1, %s4843_s20  ;;  %689 = vrot.lane.b32.xlu1 %v4928_v3, %s4843_s20  ;;  %v5095_v1 = vsel %vm5081_vm4, %v5086_v62, 0.0  ;;  %v349_v3 = vand.u32 15, %v342_v49 }
  0xc3   : > { %vm5105_vm5 = vcmp.ne.s32.totalorder %v349_v3, 0  ;;  %vm5171_vm9 = vcmp.ne.s32.totalorder %v349_v3, 15 }
  0xc4   : > { %v8135_v9 = vsel %vm5105_vm5, 4294967295, %v8134_v9  ;;  %v5165_v28 = vsel %vm5105_vm5, %v5156_v24, 0.0  ;;  %v8144_v30 = vsel %vm5171_vm9, 4294967295, %v8143_v30  ;;  %v5184_v34 = vsel %vm5171_vm9, %v5176_v31, 0.0 }
  0xc5   : > { %4599 = vrot.lane.b32.xlu0 %v8043_v0, %s4843_s20  ;;  %681 = vrot.lane.b32.xlu1 %v4921_v2, %s4843_s20  ;;  %v4562_v2 = vunpack.i.h.bf16 %v4560_v45  ;;  %8136 = vst [vmem:[#allocation5_spill] sm:$0xff] %v8135_v9  ;;  %8145 = vst [vmem:[#allocation8_spill] sm:$0xff] %v8144_v30 }
  0xc7   : > { %v5110_v10 = vsel %vm475_vm2, %v4562_v2, %v470_v42 }
  0xc8   : > { %v5118_v12 = vsel %vm5105_vm5, %v5110_v10, 0.0 }
  0xc9   : > { %683 = vrot.lane.b32.xlu0 %v4938_v5, %s4843_s20  ;;  %675 = vrot.lane.b32.xlu1 %v4931_v4, %s4843_s20  ;;  %v454_v4 = vpop.permute.xlu1 %453  ;;  %v456_v5 = vpop.permute.xlu0 %455 }
  0xca   : > { %v5179_v32 = vsel %vm475_vm2, %v454_v4, %v456_v5 }
  0xcb   : > { %v5189_v35 = vsel %vm5081_vm4, %v5179_v32, 0.0 }
  0xcd   : > { %677 = vrot.lane.b32.xlu0 %v4945_v6, %s4843_s20  ;;  %4604 = vrot.lane.b32.xlu1 %v8043_v0, %s4843_s20  ;;  %v4566_v6 = vunpack.i.l.bf16 %v4565_v52  ;;  %v1009_v14 = vpop.permute.xlu0 %1008 }
  0xcf   : > { %v484_v17 = vsel %vm475_vm2, %v464_v48, %v4566_v6 }
  0xd0   : > { %v5139_v19 = vsel %vm5072_vm3, %v484_v17, 0.0 }
  0xd1   : > { %585 = vrot.lane.b32.xlu0 %v5095_v1, %s4839_s12  ;;  %587 = vrot.lane.b32.xlu1 %v5090_v63, %s4839_s12  ;;  %v4580_v26 = vpop.permute.xlu0 %4579 }
  0xd2   : > { %v4581_v38 = vunpack.i.l.bf16 %v4580_v26  ;;  %v4582_v43 = vunpack.i.h.bf16 %v4580_v26 }
  0xd4   : > { %v5230_v52 = vsel %vm1022_vm6, %v4582_v43, %v1009_v14 }
  0xd5   : > { %669 = vrot.lane.b32.xlu0 %v4955_v8, %s4843_s20  ;;  %671 = vrot.lane.b32.xlu1 %v4948_v7, %s4843_s20  ;;  %v5123_v7 = vsel %vm5081_vm4, %v5113_v11, 0.0  ;;  %v4575_v8 = vpop.permute.xlu1 %4574  ;;  %v448_v36 = vpop.permute.xlu0 %447  ;;  %v5238_v56 = vsel %vm5171_vm9, %v5230_v52, 0.0 }
  0xd6   : > { %v4576_v29 = vunpack.i.l.bf16 %v4575_v8  ;;  %v4577_v37 = vunpack.i.h.bf16 %v4575_v8 }
  0xd8   : > { %v481_v39 = vsel %vm475_vm2, %v456_v5, %v4576_v29  ;;  %v5214_v45 = vsel %vm475_vm2, %v4577_v37, %v454_v4 }
  0xd9   : > { %583 = vrot.lane.b32.xlu0 %v5118_v12, %s4839_s12  ;;  %579 = vrot.lane.b32.xlu1 %v5123_v7, %s4839_s12  ;;  %v1011_v25 = vpop.permute.xlu1 %1010  ;;  %v5201_v41 = vsel %vm5072_vm3, %v481_v39, 0.0  ;;  %v1001_v48 = vpop.permute.xlu0 %1000  ;;  %v5223_v50 = vsel %vm5105_vm5, %v5214_v45, 0.0 }
  0xda   : > { %v5197_v40 = vsel %vm1022_vm6, %v1009_v14, %v1011_v25  ;;  %v1031_v44 = vsel %vm1022_vm6, %v1011_v25, %v4581_v38 }
  0xdb   : > { %v5206_v42 = vsel %vm5125_vm7, %v5197_v40, 0.0  ;;  %v5218_v49 = vsel %vm5150_vm8, %v1031_v44, 0.0 }
  0xdd   : > { %581 = vrot.lane.b32.xlu0 %v5139_v19, %s4839_s12  ;;  %1131 = vrot.lane.b32.xlu1 %v5144_v20, %s4839_s12  ;;  %v446_v33 = vpop.permute.xlu1 %445  ;;  %v4590_v55 = vpop.permute.xlu0 %4589 }
  0xde   : > { %v5233_v53 = vsel %vm475_vm2, %v446_v33, %v448_v36  ;;  %v4591_v60 = vunpack.i.l.bf16 %v4590_v55  ;;  %v4592_v6 = vunpack.i.h.bf16 %v4590_v55 }
  0xdf   : > { %v5243_v58 = vsel %vm5081_vm4, %v5233_v53, 0.0 }
  0xe0   : > { %v5284_v21 = vsel %vm1022_vm6, %v4592_v6, %v1001_v48 }
  0xe1   : > { %1133 = vrot.lane.b32.xlu0 %v5160_v27, %s4839_s12  ;;  %577 = vrot.lane.b32.xlu1 %v5165_v28, %s4839_s12  ;;  %v4585_v47 = vpop.permute.xlu1 %4584  ;;  %v995_v23 = vpop.permute.xlu0 %994  ;;  %v5289_v26 = vsel %vm5171_vm9, %v5284_v21, 0.0 }
  0xe2   : > { %v4586_v51 = vunpack.i.l.bf16 %v4585_v47  ;;  %v4587_v59 = vunpack.i.h.bf16 %v4585_v47 }
  0xe4   : > { %v478_v2 = vsel %vm475_vm2, %v448_v36, %v4586_v51  ;;  %v5268_v14 = vsel %vm475_vm2, %v4587_v59, %v446_v33 }
  0xe5   : > { %1129 = vrot.lane.b32.xlu0 %v5184_v34, %s4839_s12  ;;  %573 = vrot.lane.b32.xlu1 %v5189_v35, %s4839_s12  ;;  %v1003_v54 = vpop.permute.xlu1 %1002  ;;  %v5255_v4 = vsel %vm5072_vm3, %v478_v2, 0.0  ;;  %v5277_v17 = vsel %vm5105_vm5, %v5268_v14, 0.0 }
  0xe6   : > { %v5251_v3 = vsel %vm1022_vm6, %v1001_v48, %v1003_v54  ;;  %v1028_v8 = vsel %vm1022_vm6, %v1003_v54, %v4591_v60 }
  0xe7   : > { %v5260_v5 = vsel %vm5125_vm7, %v5251_v3, 0.0  ;;  %v5272_v16 = vsel %vm5150_vm8, %v1028_v8, 0.0 }
  0xe9   : > { %575 = vrot.lane.b32.xlu0 %v5201_v41, %s4839_s12  ;;  %1125 = vrot.lane.b32.xlu1 %v5206_v42, %s4839_s12  ;;  %v993_v15 = vpop.permute.xlu1 %992 }
  0xea   : > { %v5292_v29 = vsel %vm1022_vm6, %v993_v15, %v995_v23 }
  0xeb   : > { %v5301_v36 = vsel %vm5125_vm7, %v5292_v29, 0.0 }
  0xed   : > { %1127 = vrot.lane.b32.xlu0 %v5218_v49, %s4839_s12  ;;  %571 = vrot.lane.b32.xlu1 %v5223_v50, %s4839_s12  ;;  %v4595_v25 = vpop.permute.xlu1 %4594 }
  0xee   : > { %v4596_v33 = vunpack.i.l.bf16 %v4595_v25  ;;  %v4597_v37 = vunpack.i.h.bf16 %v4595_v25 }
  0xf0   : > { %v1025_v38 = vsel %vm1022_vm6, %v995_v23, %v4596_v33  ;;  %v4844_v33 = vmov 0  }
  0xf1   : > { %1123 = vrot.lane.b32.xlu0 %v5238_v56, %s4839_s12  ;;  %567 = vrot.lane.b32.xlu1 %v5243_v58, %s4839_s12  ;;  %v5310_v44 = vsel %vm5150_vm8, %v1025_v38, 0.0 }
  0xf2   : > { %4609 = vset.pattern.permute.xlu1 %v4844_v33  ;;  %4608 = vset.pattern.permute.xlu0 %v4844_v33 }
  0xf5   : > { %569 = vrot.lane.b32.xlu0 %v5255_v4, %s4839_s12  ;;  %1119 = vrot.lane.b32.xlu1 %v5260_v5, %s4839_s12 }
  0xf7   : > { %v734_v39 = vpop.permute.xlu0 %733  ;;  %v728_v43 = vpop.permute.xlu1 %727 }
  0xf9   : > { %1121 = vrot.lane.b32.xlu0 %v5272_v16, %s4839_s12  ;;  %565 = vrot.lane.b32.xlu1 %v5277_v17, %s4839_s12 }
  0xfd   : > { %1117 = vrot.lane.b32.xlu0 %v5289_v26, %s4839_s12  ;;  %544 = vrot.lane.b32.xlu1 %v5095_v1, %s4840_s17  ;;  %v5317_v1 = vsel %vm1022_vm6, %v4597_v37, %v993_v15 }
  0xfe   : > { %v5322_v48 = vsel %vm5171_vm9, %v5317_v1, 0.0 }
 0x101   : > { %546 = vrot.lane.b32.xlu0 %v5090_v63, %s4840_s17  ;;  %1113 = vrot.lane.b32.xlu1 %v5301_v36, %s4839_s12  ;;  %v722_v63 = vpop.permute.xlu0 %721 }
 0x105   : > { %1115 = vrot.lane.b32.xlu0 %v5310_v44, %s4839_s12  ;;  %542 = vrot.lane.b32.xlu1 %v5118_v12, %s4840_s17 }
 0x107   : > { %v716_v47 = vpop.permute.xlu1 %715 }
 0x109   : > { %1111 = vrot.lane.b32.xlu0 %v5322_v48, %s4839_s12  ;;  %538 = vrot.lane.b32.xlu1 %v5123_v7, %s4840_s17 }
 0x10b   : > { %v714_v51 = vpop.permute.xlu1 %713  ;;  %v710_v54 = vpop.permute.xlu0 %709 }
 0x10d   : > { %540 = vrot.lane.b32.xlu0 %v5139_v19, %s4840_s17  ;;  %1091 = vrot.lane.b32.xlu1 %v5144_v20, %s4840_s17 }
 0x10f   : > { %v704_v12 = vpop.permute.xlu1 %703  ;;  %v708_v55 = vpop.permute.xlu0 %707 }
 0x111   : > { %1093 = vrot.lane.b32.xlu0 %v5160_v27, %s4840_s17  ;;  %536 = vrot.lane.b32.xlu1 %v5165_v28, %s4840_s17 }
 0x113   : > { %v702_v59 = vpop.permute.xlu1 %701  ;;  %v698_v60 = vpop.permute.xlu0 %697 }
 0x115   : > { %1089 = vrot.lane.b32.xlu0 %v5184_v34, %s4840_s17  ;;  %532 = vrot.lane.b32.xlu1 %v5189_v35, %s4840_s17 }
 0x117   : > { %v738_v7 = vpop.permute.xlu1 %737  ;;  %v736_v19 = vpop.permute.xlu0 %735 }
 0x118   : > { %v763_v20 = vsel %vm739_vm10, %v736_v19, %v738_v7  ;;  %v762_v2 = vsel %vm739_vm10, %v734_v39, %v736_v19 }
 0x119   : > { %808 = vmatprep.subr.mxu0 %v763_v20  ;;  %534 = vrot.lane.b32.xlu0 %v5201_v41, %s4840_s17 }
 0x11a   : > { %1085 = vrot.lane.b32.xlu1 %v5206_v42, %s4840_s17  ;;  %809 = vmatpush1.msra.mxu0 %v762_v2 }
 0x11b   : > { %v730_v27 = vpop.permute.xlu1 %729  ;;  %v732_v28 = vpop.permute.xlu0 %731 }
 0x11c   : > { %v761_v34 = vsel %vm739_vm10, %v730_v27, %v732_v28  ;;  %v760_v35 = vsel %vm739_vm10, %v728_v43, %v730_v27 }
 0x11d   : > { %810 = vmatprep.subr.mxu0 %v761_v34  ;;  %1087 = vrot.lane.b32.xlu0 %v5218_v49, %s4840_s17 }
 0x11e   : > { %530 = vrot.lane.b32.xlu1 %v5223_v50, %s4840_s17  ;;  %811 = vmatpush1.msra.mxu0 %v760_v35 }
 0x11f   : > { %v726_v6 = vpop.permute.xlu1 %725  ;;  %v724_v41 = vpop.permute.xlu0 %723 }
 0x120   : > { %v759_v8 = vsel %vm739_vm10, %v724_v41, %v726_v6  ;;  %v758_v42 = vsel %vm739_vm10, %v722_v63, %v724_v41 }
 0x121   : > { %812 = vmatprep.subr.mxu0 %v759_v8  ;;  %1083 = vrot.lane.b32.xlu0 %v5238_v56, %s4840_s17 }
 0x122   : > { %526 = vrot.lane.b32.xlu1 %v5243_v58, %s4840_s17  ;;  %813 = vmatpush1.msra.mxu0 %v758_v42 }
 0x123   : > { %v718_v15 = vpop.permute.xlu1 %717  ;;  %v720_v49 = vpop.permute.xlu0 %719 }
 0x124   : > { %v757_v23 = vsel %vm739_vm10, %v718_v15, %v720_v49  ;;  %v756_v50 = vsel %vm739_vm10, %v716_v47, %v718_v15 }
 0x125   : > { %814 = vmatprep.subr.mxu0 %v757_v23  ;;  %528 = vrot.lane.b32.xlu0 %v5255_v4, %s4840_s17 }
 0x126   : > { %1079 = vrot.lane.b32.xlu1 %v5260_v5, %s4840_s17  ;;  %815 = vmatpush1.msra.mxu0 %v756_v50 }
 0x127   : > { %v706_v25 = vpop.permute.xlu1 %705  ;;  %v712_v56 = vpop.permute.xlu0 %711 }
 0x128   : > { %v755_v58 = vsel %vm739_vm10, %v712_v56, %v714_v51  ;;  %v754_v37 = vsel %vm739_vm10, %v710_v54, %v712_v56  ;;  %v753_v4 = vsel %vm739_vm10, %v706_v25, %v708_v55  ;;  %v752_v39 = vsel %vm739_vm10, %v704_v12, %v706_v25  ;;  %v1267_v12 = vld [vmem:[%s8034_s2 + $0x10] sm:$0xff] }
 0x129   : > { %816 = vmatprep.subr.mxu0 %v755_v58  ;;  %1081 = vrot.lane.b32.xlu0 %v5272_v16, %s4840_s17 }
 0x12a   : > { %524 = vrot.lane.b32.xlu1 %v5277_v17, %s4840_s17  ;;  %817 = vmatpush1.msra.mxu0 %v754_v37  ;;  %v4353_v37 = vld [vmem:[%s8033_s1 + $0x20] sm:$0xff] }
 0x12b   : > { %v694_v5 = vpop.permute.xlu1 %693  ;;  %818 = vmatprep.subr.mxu0 %v753_v4  ;;  %v700_v38 = vpop.permute.xlu0 %699  ;;  %v5425_v4 = vld [vmem:[%s4915_s16 + $0x78] sm:$0xff] }
 0x12c   : > { %819 = vmatpush1.msra.mxu0 %v752_v39  ;;  %v751_v43 = vsel %vm739_vm10, %v700_v38, %v702_v59  ;;  %v750_v63 = vsel %vm739_vm10, %v698_v60, %v700_v38  ;;  %v1266_v60 = vld [vmem:[%s8034_s2 + $0x8] sm:$0xff]  ;;  %v5429_v39 = vld [vmem:[%s4915_s16 + $0x70] sm:$0xff] }
 0x12d   : > { %820 = vmatprep.subr.mxu0 %v751_v43  ;;  %1077 = vrot.lane.b32.xlu0 %v5289_v26, %s4840_s17  ;;  %v1268_v26 = vld [vmem:[%s8034_s2 + $0x18] sm:$0xff] }
 0x12e   : > { %1073 = vrot.lane.b32.xlu1 %v5301_v36, %s4840_s17  ;;  %821 = vmatpush1.msra.mxu0 %v750_v63  ;;  %v4354_v63 = vld [vmem:[%s8033_s1 + $0x28] sm:$0xff] }
 0x12f   : > { %v692_v16 = vpop.permute.xlu1 %691  ;;  %v696_v17 = vpop.permute.xlu0 %695 }
 0x130   : > { %v749_v47 = vsel %vm739_vm10, %v694_v5, %v696_v17  ;;  %v748_v51 = vsel %vm739_vm10, %v692_v16, %v694_v5 }
 0x131   : > { %822 = vmatprep.subr.mxu0 %v749_v47  ;;  %1075 = vrot.lane.b32.xlu0 %v5310_v44, %s4840_s17  ;;  %v1265_v44 = vld [vmem:[%s8034_s2] sm:$0xff] }
 0x132   : > { %1071 = vrot.lane.b32.xlu1 %v5322_v48, %s4840_s17  ;;  %823 = vmatpush1.msra.mxu0 %v748_v51  ;;  %v4355_v51 = vld [vmem:[%s8033_s1 + $0x30] sm:$0xff] }
 0x133   : > { %v690_v36 = vpop.permute.xlu1 %689  ;;  %v688_v54 = vpop.permute.xlu0 %687 }
 0x134   : > { %v747_v55 = vsel %vm739_vm10, %v688_v54, %v690_v36 }
 0x135   : > { %824 = vmatprep.subr.mxu0 %v747_v55  ;;  %1286 = vperm.xlu0 %4608, %v1268_v26  }
 0x136   : > { %1281 = vperm.xlu1 %4609, %v1267_v12   ;;  %v5455_v12 = vld [vmem:[%s4915_s16 + $0x60] sm:$0xff] }
 0x137   : > { %v682_v48 = vpop.permute.xlu1 %681  ;;  %v4600_v59 = vpop.permute.xlu0 %4599 }
 0x138   : > { %v4601_v7 = vunpack.i.l.bf16 %v4600_v59  ;;  %v4602_v19 = vunpack.i.h.bf16 %v4600_v59 }
 0x139   : > { %1271 = vperm.xlu0 %4608, %v1265_v44  }
 0x13a   : > { %v746_v20 = vsel %vm739_vm10, %v4601_v7, %v688_v54  ;;  %1276 = vperm.xlu1 %4609, %v1266_v60   ;;  %v744_v34 = vsel %vm739_vm10, %v4602_v19, %v682_v48  ;;  %v5452_v54 = vld [vmem:[%s4915_s16 + $0x68] sm:$0xff]  ;;  %v5469_v7 = vld [vmem:[%s4915_s16 + $0x50] sm:$0xff] }
 0x13b   : > { %v676_v2 = vpop.permute.xlu1 %675  ;;  %v684_v27 = vpop.permute.xlu0 %683  ;;  %825 = vmatpush1.msra.mxu0 %v746_v20 }
 0x13c   : > { %v745_v28 = vsel %vm739_vm10, %v682_v48, %v684_v27  ;;  %v4356_v48 = vld [vmem:[%s8033_s1 + $0x38] sm:$0xff] }
 0x13d   : > { %826 = vmatprep.subr.mxu0 %v745_v28  ;;  %4616 = vrot.lane.b32.xlu0 %v8043_v0, %s4841_s18  ;;  %v5478_v27 = vld [vmem:[%s4915_s16 + $0x58] sm:$0xff] }
 0x13e   : > { %827 = vmatpush1.msra.mxu0 %v744_v34  ;;  %4611 = vrot.lane.b32.xlu1 %v8043_v0, %s4839_s12 }
 0x13f   : > { %v4605_v35 = vpop.permute.xlu1 %4604  ;;  %v678_v6 = vpop.permute.xlu0 %677 }
 0x140   : > { %v4606_v41 = vunpack.i.l.bf16 %v4605_v35  ;;  %v743_v8 = vsel %vm739_vm10, %v676_v2, %v678_v6  ;;  %v4607_v50 = vunpack.i.h.bf16 %v4605_v35  ;;  %v5486_v6 = vld [vmem:[%s4915_s16 + $0x48] sm:$0xff] }
 0x141   : > { %828 = vmatprep.subr.mxu0 %v743_v8  ;;  %4626 = vrot.lane.b32.xlu0 %v8043_v0, %s4839_s12 }
 0x142   : > { %v742_v42 = vsel %vm739_vm10, %v4606_v41, %v676_v2  ;;  %4621 = vrot.lane.b32.xlu1 %v8043_v0, %s4841_s18  ;;  %v5489_v41 = vld [vmem:[%s4915_s16 + $0x40] sm:$0xff] }
 0x143   : > { %v586_v15 = vpop.permute.xlu0 %585  ;;  %829 = vmatpush1.msra.mxu0 %v742_v42  ;;  %v588_v49 = vpop.permute.xlu1 %587 }
 0x144   : > { %v597_v23 = vsel %vm589_vm0, %v586_v15, %v588_v49 }
 0x145   : > { %909 = vmatprep.subr.mxu1 %v597_v23  ;;  %4636 = vrot.lane.b32.xlu0 %v8043_v0, %s4841_s18 }
 0x146   : > { %4631 = vrot.lane.b32.xlu1 %v8043_v0, %s4841_s18 }
 0x147   : > { %v670_v25 = vpop.permute.xlu0 %669  ;;  %v672_v56 = vpop.permute.xlu1 %671 }
 0x148   : > { %v741_v33 = vsel %vm739_vm10, %v670_v25, %v672_v56  ;;  %v740_v58 = vsel %vm739_vm10, %v4607_v50, %v670_v25 }
 0x149   : > { %830 = vmatprep.subr.mxu0 %v741_v33  ;;  %4646 = vrot.lane.b32.xlu0 %v8043_v0, %s4842_s19 }
 0x14a   : > { %831 = vmatpush1.msra.mxu0 %v740_v58  ;;  %4641 = vrot.lane.b32.xlu1 %v8043_v0, %s4842_s19 }
 0x14b   : > { %v584_v5 = vpop.permute.xlu0 %583  ;;  %v580_v38 = vpop.permute.xlu1 %579  ;;  %4357 = vmatmul.mubr.msk.f32.vlgmr.msra.gmra.mxu0 %vm589_vm0, %v4353_v37 }
 0x14c   : > { %v596_v43 = vsel %vm589_vm0, %v584_v5, %v586_v15  ;;  %870 = vmatprep.mubr.f32.mxu0 %v8043_v0 }
 0x14d   : > { %910 = vmatpush1.msra.mxu1 %v596_v43  ;;  %2597 = vrot.lane.b32.xlu0 %v5425_v4, %s4839_s12 }
 0x14e   : > { %2595 = vrot.lane.b32.xlu1 %v5429_v39, %s4839_s12 }
 0x14f   : > { %v582_v16 = vpop.permute.xlu0 %581  ;;  %v1132_v17 = vpop.permute.xlu1 %1131  ;;  %4358 = vmatmul.mubr.msk.f32.gmra.mxu0 %vm589_vm0, %v4354_v63 }
 0x150   : > { %v595_v47 = vsel %vm589_vm0, %v580_v38, %v582_v16  ;;  %876 = vmatprep.mubr.f32.mxu0 %v8043_v0 }
 0x151   : > { %911 = vmatprep.subr.mxu1 %v595_v47  ;;  %4656 = vrot.lane.b32.xlu0 %v8043_v0, %s4842_s19 }
 0x152   : > { %4651 = vrot.lane.b32.xlu1 %v8043_v0, %s4839_s12 }
 0x153   : > { %v1134_v26 = vpop.permute.xlu0 %1133  ;;  %v578_v36 = vpop.permute.xlu1 %577  ;;  %4359 = vmatmul.mubr.msk.f32.gmra.mxu0 %vm589_vm0, %v4355_v51 }
 0x154   : > { %v594_v55 = vsel %vm589_vm0, %v578_v36, %v580_v38  ;;  %v1142_v44 = vsel %vm589_vm0, %v1132_v17, %v1134_v26  ;;  %882 = vmatprep.mubr.f32.mxu0 %v8043_v0 }
 0x155   : > { %912 = vmatpush1.msra.mxu1 %v594_v55  ;;  %1176 = vmatprep.subr.mxu0 %v1142_v44 }
 0x156   : > { %2591 = vrot.lane.b32.xlu0 %v5452_v54, %s4839_s12  ;;  %2589 = vrot.lane.b32.xlu1 %v5455_v12, %s4839_s12 }
 0x157   : > { %v1130_v59 = vpop.permute.xlu0 %1129  ;;  %v574_v60 = vpop.permute.xlu1 %573  ;;  %4360 = vmatmul.mubr.msk.f32.gmra.mxu0 %vm589_vm0, %v4356_v48 }
 0x158   : > { %v1141_v19 = vsel %vm589_vm0, %v1130_v59, %v1132_v17  ;;  %1232 = vmatprep.mubr.f32.mxu0 %v8043_v0 }
 0x159   : > { %1177 = vmatpush1.msra.mxu0 %v1141_v19 }
 0x15a   : > { %2583 = vrot.lane.b32.xlu0 %v5469_v7, %s4839_s12  ;;  %4661 = vrot.lane.b32.xlu1 %v8043_v0, %s4842_s19 }
 0x15b   : > { %v576_v20 = vpop.permute.xlu0 %575  ;;  %v1126_v2 = vpop.permute.xlu1 %1125 }
 0x15c   : > { %v593_v28 = vsel %vm589_vm0, %v574_v60, %v576_v20 }
 0x15d   : > { %913 = vmatprep.subr.mxu1 %v593_v28 }
 0x15e   : > { %4666 = vrot.lane.b32.xlu0 %v8043_v0, %s4839_s12  ;;  %2585 = vrot.lane.b32.xlu1 %v5478_v27, %s4839_s12 }
 0x15f   : > { %v1128_v34 = vpop.permute.xlu0 %1127  ;;  %v572_v35 = vpop.permute.xlu1 %571 }
 0x160   : > { %v592_v8 = vsel %vm589_vm0, %v572_v35, %v574_v60  ;;  %v1140_v42 = vsel %vm589_vm0, %v1126_v2, %v1128_v34 }
 0x161   : > { %914 = vmatpush1.msra.mxu1 %v592_v8  ;;  %1178 = vmatprep.subr.mxu0 %v1140_v42 }
 0x162   : > { %2579 = vrot.lane.b32.xlu0 %v5486_v6, %s4839_s12  ;;  %2577 = vrot.lane.b32.xlu1 %v5489_v41, %s4839_s12 }
 0x163   : > { %v1124_v15 = vpop.permute.xlu0 %1123  ;;  %v568_v49 = vpop.permute.xlu1 %567 }
 0x164   : > { %v1139_v23 = vsel %vm589_vm0, %v1124_v15, %v1126_v2 }
 0x165   : > { %1179 = vmatpush1.msra.mxu0 %v1139_v23 }
 0x166   : > { %2571 = vrot.lane.b32.xlu0 %v5425_v4, %s4840_s17  ;;  %2569 = vrot.lane.b32.xlu1 %v5429_v39, %s4840_s17 }
 0x167   : > { %v570_v50 = vpop.permute.xlu0 %569  ;;  %v1120_v25 = vpop.permute.xlu1 %1119 }
 0x168   : > { %v591_v56 = vsel %vm589_vm0, %v568_v49, %v570_v50 }
 0x169   : > { %915 = vmatprep.subr.mxu1 %v591_v56 }
 0x16a   : > { %2567 = vrot.lane.b32.xlu0 %v5452_v54, %s4840_s17  ;;  %2565 = vrot.lane.b32.xlu1 %v5455_v12, %s4840_s17 }
 0x16b   : > { %v1122_v33 = vpop.permute.xlu0 %1121  ;;  %v566_v58 = vpop.permute.xlu1 %565 }
 0x16c   : > { %v590_v37 = vsel %vm589_vm0, %v566_v58, %v568_v49  ;;  %v1138_v5 = vsel %vm589_vm0, %v1120_v25, %v1122_v33 }
 0x16d   : > { %916 = vmatpush1.msra.mxu1 %v590_v37  ;;  %1180 = vmatprep.subr.mxu0 %v1138_v5 }
 0x16e   : > { %2561 = vrot.lane.b32.xlu1 %v5469_v7, %s4840_s17  ;;  %2563 = vrot.lane.b32.xlu0 %v5478_v27, %s4840_s17 }
 0x16f   : > { %v1118_v38 = vpop.permute.xlu0 %1117  ;;  %v545_v43 = vpop.permute.xlu1 %544 }
 0x170   : > { %v1137_v63 = vsel %vm589_vm0, %v1118_v38, %v1120_v25 }
 0x171   : > { %1181 = vmatpush1.msra.mxu0 %v1137_v63 }
 0x172   : > { %2557 = vrot.lane.b32.xlu1 %v5489_v41, %s4840_s17  ;;  %2559 = vrot.lane.b32.xlu0 %v5486_v6, %s4840_s17 }
 0x173   : > { %v547_v16 = vpop.permute.xlu0 %546  ;;  %v1114_v17 = vpop.permute.xlu1 %1113 }
 0x174   : > { %v556_v47 = vsel %vm548_vm1, %v545_v43, %v547_v16 }
 0x175   : > { %917 = vmatprep.subr.mxu1 %v556_v47 }
 0x176   : > { %2419 = vrot.lane.b32.xlu1 %v5429_v39, %s4841_s18  ;;  %2421 = vrot.lane.b32.xlu0 %v5425_v4, %s4841_s18 }
 0x177   : > { %v1116_v51 = vpop.permute.xlu0 %1115  ;;  %v543_v26 = vpop.permute.xlu1 %542 }
 0x178   : > { %v555_v36 = vsel %vm548_vm1, %v543_v26, %v545_v43  ;;  %v1136_v55 = vsel %vm589_vm0, %v1114_v17, %v1116_v51 }
 0x179   : > { %918 = vmatpush1.msra.mxu1 %v555_v36  ;;  %1182 = vmatprep.subr.mxu0 %v1136_v55 }
 0x17a   : > { %4671 = vrot.lane.b32.xlu1 %v8043_v0, %s4841_s18  ;;  %2411 = vrot.lane.b32.xlu0 %v5455_v12, %s4841_s18 }
 0x17b   : > { %v1112_v44 = vpop.permute.xlu0 %1111  ;;  %v539_v48 = vpop.permute.xlu1 %538 }
 0x17c   : > { %v1135_v59 = vsel %vm589_vm0, %v1112_v44, %v1114_v17 }
 0x17d   : > { %1183 = vmatpush1.msra.mxu0 %v1135_v59 }
 0x17e   : > { %2413 = vrot.lane.b32.xlu1 %v5452_v54, %s4841_s18  ;;  %4676 = vrot.lane.b32.xlu0 %v8043_v0, %s4841_s18 }
 0x17f   : > { %v541_v60 = vpop.permute.xlu0 %540  ;;  %v1092_v19 = vpop.permute.xlu1 %1091 }
 0x180   : > { %v554_v20 = vsel %vm548_vm1, %v539_v48, %v541_v60 }
 0x181   : > { %919 = vmatprep.subr.mxu1 %v554_v20 }
 0x182   : > { %2961 = vrot.lane.b32.xlu1 %v5429_v39, %s4842_s19  ;;  %2963 = vrot.lane.b32.xlu0 %v5425_v4, %s4842_s19 }
 0x183   : > { %v1094_v2 = vpop.permute.xlu0 %1093  ;;  %v537_v28 = vpop.permute.xlu1 %536 }
 0x184   : > { %v553_v34 = vsel %vm548_vm1, %v537_v28, %v539_v48  ;;  %v1102_v35 = vsel %vm548_vm1, %v1092_v19, %v1094_v2 }
 0x185   : > { %920 = vmatpush1.msra.mxu1 %v553_v34  ;;  %1184 = vmatprep.subr.mxu0 %v1102_v35 }
 0x186   : > { %4681 = vrot.lane.b32.xlu1 %v8043_v0, %s4842_s19  ;;  %2403 = vrot.lane.b32.xlu0 %v5469_v7, %s4841_s18 }
 0x187   : > { %v1090_v8 = vpop.permute.xlu0 %1089  ;;  %v533_v42 = vpop.permute.xlu1 %532 }
 0x188   : > { %v1101_v39 = vsel %vm548_vm1, %v1090_v8, %v1092_v19 }
 0x189   : > { %1185 = vmatpush1.msra.mxu0 %v1101_v39 }
 0x18a   : > { %2405 = vrot.lane.b32.xlu1 %v5478_v27, %s4841_s18  ;;  %4686 = vrot.lane.b32.xlu0 %v8043_v0, %s4841_s18 }
 0x18b   : > { %v535_v4 = vpop.permute.xlu0 %534 }
 0x18c   : > { %v1086_v15 = vpop.permute.xlu1 %1085  ;;  %v552_v49 = vsel %vm548_vm1, %v533_v42, %v535_v4 }
 0x18d   : > { %921 = vmatprep.subr.mxu1 %v552_v49 }
 0x18e   : > { %2953 = vrot.lane.b32.xlu1 %v5455_v12, %s4842_s19  ;;  %2955 = vrot.lane.b32.xlu0 %v5452_v54, %s4842_s19 }
 0x18f   : > { %v1088_v23 = vpop.permute.xlu0 %1087 }
 0x190   : > { %v531_v50 = vpop.permute.xlu1 %530  ;;  %v1100_v25 = vsel %vm548_vm1, %v1086_v15, %v1088_v23 }
 0x191   : > { %v551_v56 = vsel %vm548_vm1, %v531_v50, %v533_v42  ;;  %1186 = vmatprep.subr.mxu0 %v1100_v25 }
 0x192   : > { %922 = vmatpush1.msra.mxu1 %v551_v56  ;;  %4691 = vrot.lane.b32.xlu1 %v8043_v0, %s4842_s19 }
 0x193   : > { %v1084_v33 = vpop.permute.xlu0 %1083  ;;  %2395 = vrot.lane.b32.xlu0 %v5489_v41, %s4841_s18 }
 0x194   : > { %v1099_v12 = vsel %vm548_vm1, %v1084_v33, %v1086_v15  ;;  %v527_v58 = vpop.permute.xlu1 %526 }
 0x195   : > { %1187 = vmatpush1.msra.mxu0 %v1099_v12 }
 0x196   : > { %2397 = vrot.lane.b32.xlu1 %v5486_v6, %s4841_s18 }
 0x197   : > { %v529_v54 = vpop.permute.xlu0 %528  ;;  %4696 = vrot.lane.b32.xlu0 %v8043_v0, %s4841_s18 }
 0x198   : > { %v1080_v37 = vpop.permute.xlu1 %1079  ;;  %v550_v5 = vsel %vm548_vm1, %v527_v58, %v529_v54 }
 0x199   : > { %923 = vmatprep.subr.mxu1 %v550_v5 }
 0x19a   : > { %2945 = vrot.lane.b32.xlu1 %v5469_v7, %s4842_s19 }
 0x19b   : > { %v1082_v38 = vpop.permute.xlu0 %1081  ;;  %2947 = vrot.lane.b32.xlu0 %v5478_v27, %s4842_s19 }
 0x19c   : > { %v525_v43 = vpop.permute.xlu1 %524  ;;  %v1098_v63 = vsel %vm548_vm1, %v1080_v37, %v1082_v38 }
 0x19d   : > { %v549_v16 = vsel %vm548_vm1, %v525_v43, %v527_v58  ;;  %1188 = vmatprep.subr.mxu0 %v1098_v63 }
 0x19e   : > { %924 = vmatpush1.msra.mxu1 %v549_v16  ;;  %4701 = vrot.lane.b32.xlu1 %v8043_v0, %s4842_s19 }
 0x19f   : > { %4361 = vmatprep.subr.msk.mxu1 %vm5081_vm4, %v5086_v62  ;;  %v1078_v17 = vpop.permute.xlu0 %1077  ;;  %2937 = vrot.lane.b32.xlu0 %v5489_v41, %s4842_s19 }
 0x1a0   : > { %v1097_v7 = vsel %vm548_vm1, %v1078_v17, %v1080_v37  ;;  %4362 = vmatpush1.msk.msra.mxu1 %vm5105_vm5, %v5110_v10  ;;  %v1074_v27 = vpop.permute.xlu1 %1073 }
 0x1a1   : > { %4363 = vmatprep.subr.msk.mxu1 %vm5081_vm4, %v5113_v11  ;;  %1189 = vmatpush1.msra.mxu0 %v1097_v7 }
 0x1a2   : > { %4364 = vmatpush1.msk.msra.mxu1 %vm5105_vm5, %v5156_v24  ;;  %2939 = vrot.lane.b32.xlu1 %v5486_v6, %s4842_s19  ;;  %v606_v24 = vld [vmem:[%s8033_s1] sm:$0xff] }
 0x1a3   : > { %4365 = vmatprep.subr.msk.mxu1 %vm5081_vm4, %v5179_v32  ;;  %v1076_v62 = vpop.permute.xlu0 %1075  ;;  %4706 = vrot.lane.b32.xlu0 %v8043_v0, %s4842_s19  ;;  %v607_v32 = vld [vmem:[%s8033_s1 + $0x8] sm:$0xff] }
 0x1a4   : > { %4366 = vmatpush1.msk.msra.mxu1 %vm5105_vm5, %v5214_v45  ;;  %v1072_v10 = vpop.permute.xlu1 %1071  ;;  %v1096_v11 = vsel %vm548_vm1, %v1074_v27, %v1076_v62  ;;  %v4374_v45 = vld [vmem:[%s8033_s1 + $0x48] sm:$0xff] }
 0x1a5   : > { %v1095_v6 = vsel %vm548_vm1, %v1072_v10, %v1074_v27  ;;  %4367 = vmatprep.subr.msk.mxu1 %vm5081_vm4, %v5233_v53  ;;  %1190 = vmatprep.subr.mxu0 %v1096_v11 }
 0x1a6   : > { %4368 = vmatpush1.msk.msra.mxu1 %vm5105_vm5, %v5268_v14  ;;  %1191 = vmatpush1.msra.mxu0 %v1095_v6 }
 0x1a7   : > { %4369 = vmatmul.mubr.msk.f32.vlgmr.msra.gmra.mxu1 %vm589_vm0, %v606_v24  ;;  %4377 = vmatprep.subr.msk.mxu0 %vm5125_vm7, %v5135_v18  ;;  %v608_v18 = vld [vmem:[%s8033_s1 + $0x10] sm:$0xff] }
 0x1a8   : > { %4378 = vmatpush1.msk.msra.mxu0 %vm5171_vm9, %v5176_v31  ;;  %971 = vmatprep.mubr.f32.mxu1 %v8043_v0  ;;  %v4373_v31 = vld [vmem:[%s8033_s1 + $0x40] sm:$0xff] }
 0x1a9   : > { %4379 = vmatprep.subr.msk.mxu0 %vm5125_vm7, %v5197_v40  ;;  %4711 = vrot.lane.b32.xlu1 %v8043_v0, %s4843_s20  ;;  %v609_v40 = vld [vmem:[%s8033_s1 + $0x18] sm:$0xff] }
 0x1aa   : > { %4380 = vmatpush1.msk.msra.mxu0 %vm5171_vm9, %v5230_v52  ;;  %4716 = vrot.lane.b32.xlu0 %v8043_v0, %s4843_s20 }
 0x1ab   : > { %4370 = vmatmul.mubr.msk.f32.gmra.mxu1 %vm589_vm0, %v607_v32  ;;  %4381 = vmatprep.subr.msk.mxu0 %vm5125_vm7, %v5251_v3  ;;  %v4375_v3 = vld [vmem:[%s8033_s1 + $0x50] sm:$0xff] }
 0x1ac   : > { %4382 = vmatpush1.msk.msra.mxu0 %vm5171_vm9, %v5284_v21  ;;  %977 = vmatprep.mubr.f32.mxu1 %v8043_v0 }
 0x1ad   : > { %4383 = vmatprep.subr.msk.mxu0 %vm5125_vm7, %v5292_v29  ;;  %v4376_v29 = vld [vmem:[%s8033_s1 + $0x58] sm:$0xff] }
 0x1ae   : > { %4384 = vmatpush1.msk.msra.mxu0 %vm5171_vm9, %v5317_v1 }
 0x1af   : > { %4371 = vmatmul.mubr.msk.f32.gmra.mxu1 %vm589_vm0, %v608_v18  ;;  %4385 = vmatmul.mubr.msk.f32.vlgmr.msra.gmra.mxu0 %vm589_vm0, %v4373_v31 }
 0x1b0   : > { %983 = vmatprep.mubr.f32.mxu1 %v8043_v0  ;;  %1238 = vmatprep.mubr.f32.mxu0 %v8043_v0  ;;  %v5662_v52 = vpop.permute.xlu0 %1286 }
 0x1b1   : > { %v5664_v53 = vpop.permute.xlu1 %1281 }
 0x1b3   : > { %4372 = vmatmul.mubr.msk.f32.gmra.mxu1 %vm589_vm0, %v609_v40  ;;  %4386 = vmatmul.mubr.msk.f32.gmra.mxu0 %vm589_vm0, %v4374_v45 }
 0x1b4   : > { %1244 = vmatprep.mubr.f32.mxu0 %v8043_v0  ;;  %v5672_v14 = vpop.permute.xlu0 %1271  ;;  %1762 = vmatprep.mubr.f32.mxu1 %v8043_v0 }
 0x1b5   : > { %v5675_v21 = vpop.permute.xlu1 %1276 }
 0x1b7   : > { %4387 = vmatmul.mubr.msk.f32.gmra.mxu0 %vm589_vm0, %v4375_v3 }
 0x1b8   : > { %1250 = vmatprep.mubr.f32.mxu0 %v8043_v0  ;;  %v5682_v1 = vpop.permute.xlu0 %4616 }
 0x1b9   : > { %v5684_v41 = vpop.permute.xlu1 %4611 }
 0x1bb   : > { %4388 = vmatmul.mubr.msk.f32.gmra.mxu0 %vm589_vm0, %v4376_v29 }
 0x1bc   : > { %v5687_v47 = vpop.permute.xlu0 %4626  ;;  %1863 = vmatprep.mubr.f32.mxu0 %v8043_v0 }
 0x1bd   : > { %v5690_v51 = vpop.permute.xlu1 %4621 }
 0x1c0   : > { %v5692_v26 = vpop.permute.xlu0 %4636 }
 0x1c1   : > { %v5694_v36 = vpop.permute.xlu1 %4631 }
 0x1c4   : > { %v5696_v55 = vpop.permute.xlu0 %4646 }
 0x1c5   : > { %v5698_v44 = vpop.permute.xlu1 %4641 }
 0x1c8   : > { %v2598_v48 = vpop.permute.xlu0 %2597 }
 0x1c9   : > { %v2596_v59 = vpop.permute.xlu1 %2595 }
 0x1ca   : > { %v2607_v60 = vsel %vm589_vm0, %v2596_v59, %v2598_v48 }
 0x1cb   : > { %2681 = vrot.lane.b32.xlu0 %v2607_v60, %s4843_s20 }
 0x1cc   : > { %v5702_v19 = vpop.permute.xlu0 %4656 }
 0x1cd   : > { %v4652_v20 = vpop.permute.xlu1 %4651 }
 0x1ce   : > { %v4653_v2 = vunpack.i.l.bf16 %v4652_v20  ;;  %v4654_v8 = vunpack.i.h.bf16 %v4652_v20 }
 0x1d0   : > { %v2608_v28 = vsel %vm589_vm0, %v2598_v48, %v4653_v2  ;;  %v2592_v34 = vpop.permute.xlu0 %2591 }
 0x1d1   : > { %2683 = vrot.lane.b32.xlu1 %v2608_v28, %s4843_s20  ;;  %v2590_v35 = vpop.permute.xlu1 %2589  ;;  %v2606_v15 = vsel %vm589_vm0, %v2592_v34, %v4654_v8 }
 0x1d2   : > { %v2605_v42 = vsel %vm589_vm0, %v2590_v35, %v2592_v34 }
 0x1d3   : > { %2675 = vrot.lane.b32.xlu0 %v2605_v42, %s4843_s20 }
 0x1d4   : > { %v2584_v39 = vpop.permute.xlu0 %2583 }
 0x1d5   : > { %2679 = vrot.lane.b32.xlu1 %v2596_v59, %s4843_s20  ;;  %v5709_v4 = vpop.permute.xlu1 %4661 }
 0x1d8   : > { %v4667_v49 = vpop.permute.xlu0 %4666 }
 0x1d9   : > { %2677 = vrot.lane.b32.xlu1 %v2606_v15, %s4843_s20  ;;  %v2586_v23 = vpop.permute.xlu1 %2585  ;;  %v4668_v50 = vunpack.i.l.bf16 %v4667_v49  ;;  %v4669_v54 = vunpack.i.h.bf16 %v4667_v49 }
 0x1da   : > { %v2603_v25 = vsel %vm589_vm0, %v2584_v39, %v2586_v23 }
 0x1db   : > { %2669 = vrot.lane.b32.xlu0 %v2603_v25, %s4843_s20  ;;  %v2604_v12 = vsel %vm589_vm0, %v2586_v23, %v4668_v50 }
 0x1dc   : > { %v2580_v56 = vpop.permute.xlu0 %2579 }
 0x1dd   : > { %2673 = vrot.lane.b32.xlu1 %v2590_v35, %s4843_s20  ;;  %v2578_v33 = vpop.permute.xlu1 %2577  ;;  %v2602_v37 = vsel %vm589_vm0, %v2580_v56, %v4669_v54 }
 0x1de   : > { %v2601_v58 = vsel %vm589_vm0, %v2578_v33, %v2580_v56 }
 0x1df   : > { %2663 = vrot.lane.b32.xlu0 %v2601_v58, %s4843_s20 }
 0x1e0   : > { %v2572_v38 = vpop.permute.xlu0 %2571 }
 0x1e1   : > { %2671 = vrot.lane.b32.xlu1 %v2604_v12, %s4843_s20  ;;  %v2570_v5 = vpop.permute.xlu1 %2569 }
 0x1e2   : > { %v2576_v43 = vsel %vm548_vm1, %v2570_v5, %v2572_v38 }
 0x1e3   : > { %2657 = vrot.lane.b32.xlu0 %v2576_v43, %s4843_s20 }
 0x1e4   : > { %v2568_v63 = vpop.permute.xlu0 %2567 }
 0x1e5   : > { %2667 = vrot.lane.b32.xlu1 %v2584_v39, %s4843_s20  ;;  %v2566_v16 = vpop.permute.xlu1 %2565 }
 0x1e6   : > { %v2575_v17 = vsel %vm548_vm1, %v2566_v16, %v2568_v63 }
 0x1e7   : > { %2651 = vrot.lane.b32.xlu0 %v2575_v17, %s4843_s20 }
 0x1e8   : > { %v5753_v15 = vpop.permute.xlu0 %2563 }
 0x1e9   : > { %2665 = vrot.lane.b32.xlu1 %v2602_v37, %s4843_s20  ;;  %v5732_v7 = vpop.permute.xlu1 %2561 }
 0x1ec   : > { %v5762_v50 = vpop.permute.xlu0 %2559 }
 0x1ed   : > { %2661 = vrot.lane.b32.xlu1 %v2578_v33, %s4843_s20  ;;  %v5734_v27 = vpop.permute.xlu1 %2557 }
 0x1f0   : > { %v5768_v37 = vpop.permute.xlu0 %2421 }
 0x1f1   : > { %2659 = vrot.lane.b32.xlu1 %v2572_v38, %s4843_s20  ;;  %v5736_v10 = vpop.permute.xlu1 %2419 }
 0x1f5   : > { %2655 = vrot.lane.b32.xlu1 %v2570_v5, %s4843_s20  ;;  %v5738_v6 = vpop.permute.xlu1 %4671 }
 0x1f9   : > { %2653 = vrot.lane.b32.xlu1 %v2568_v63, %s4843_s20  ;;  %v5740_v31 = vpop.permute.xlu1 %2413 }
 0x1fd   : > { %2649 = vrot.lane.b32.xlu1 %v2566_v16, %s4843_s20  ;;  %v5744_v45 = vpop.permute.xlu1 %2961  ;;  %v5775_v16 = vpop.permute.xlu0 %2411 }
 0x201   : > { %v5750_v60 = vpop.permute.xlu1 %4681 }
 0x205   : > { %v5755_v49 = vpop.permute.xlu1 %2405 }
 0x209   : > { %v5764_v25 = vpop.permute.xlu1 %2953 }
 0x20b   : > { %v866_v62 = vpop.f32.mrf.mxu0 }
 0x20d   : > { %v868_v11 = vpop.f32.mrf.mxu0 }
 0x20f   : > { %v872_v24 = vpop.f32.mrf.mxu0 }
 0x211   : > { %v874_v32 = vpop.f32.mrf.mxu0 }
 0x213   : > { %v878_v18 = vpop.f32.mrf.mxu0 }
 0x215   : > { %v5742_v40 = vpop.f32.mrf.mxu0 }
 0x217   : > { %v5746_v3 = vpop.f32.mrf.mxu0 }
 0x219   : > { %v5748_v48 = vpop.f32.mrf.mxu0 }
 0x267   : > { %v967_v29 = vpop.f32.mrf.mxu1 }
 0x268   : > { %v968_v59 = vadd.f32 %v967_v29, %v866_v62  ;;  %v5784_v29 = vpop.permute.xlu0 %4676 }
 0x269   : > { %v969_v20 = vpop.f32.mrf.mxu1 }
 0x26a   : > { %v970_v35 = vadd.f32 %v969_v20, %v868_v11 }
 0x26b   : > { %v973_v56 = vpop.f32.mrf.mxu1 }
 0x26c   : > { %v974_v58 = vadd.f32 %v973_v56, %v872_v24 }
 0x26d   : > { %v975_v5 = vpop.f32.mrf.mxu1 }
 0x26e   : > { %v976_v63 = vadd.f32 %v975_v5, %v874_v32 }
 0x26f   : > { %v1234_v2 = vpop.f32.mrf.mxu0  ;;  %v979_v32 = vpop.f32.mrf.mxu1 }
 0x270   : > { %v1257_v28 = vadd.f32 %v1234_v2, %v968_v59 }
 0x271   : > { %v1236_v34 = vpop.f32.mrf.mxu0 }
 0x272   : > { %v1289_v8 = vadd.f32 %v5672_v14, %v1257_v28  ;;  %v1258_v39 = vadd.f32 %v1236_v34, %v970_v35  ;;  %v980_v28 = vadd.f32 %v979_v32, %v878_v18  ;;  %v5790_v34 = vpop.permute.xlu0 %2963 }
 0x273   : > { %v1240_v12 = vpop.f32.mrf.mxu0 }
 0x274   : > { %v1297_v42 = vmax.f32 %v1289_v8, 0.0  ;;  %v1290_v23 = vadd.f32 %v5672_v14, %v1258_v39  ;;  %v1259_v54 = vadd.f32 %v1240_v12, %v974_v58  ;;  %v5770_v14 = vpop.permute.xlu1 %4691  ;;  %v981_v8 = vpop.f32.mrf.mxu1 }
 0x275   : > { %v1242_v43 = vpop.f32.mrf.mxu0  ;;  %v982_v56 = vadd.f32 %v981_v8, %v5742_v40 }
 0x276   : > { %1529 = vrot.lane.b32.xlu0 %v1297_v42, %s4839_s12  ;;  %1509 = vrot.lane.b32.xlu1 %v1297_v42, %s4840_s17  ;;  %v1298_v33 = vmax.f32 %v1290_v23, 0.0  ;;  %v1291_v38 = vadd.f32 %v5675_v21, %v1259_v54  ;;  %v1260_v11 = vadd.f32 %v1242_v43, %v976_v63  ;;  %v5799_v39 = vpop.permute.xlu0 %2403  ;;  %v985_v40 = vpop.f32.mrf.mxu1 }
 0x277   : > { %v1246_v2 = vpop.f32.mrf.mxu0 }
 0x278   : > { %v5779_v17 = vpop.permute.xlu1 %2397  ;;  %v1299_v62 = vmax.f32 %v1291_v38, 0.0  ;;  %v1292_v24 = vadd.f32 %v5675_v21, %v1260_v11  ;;  %v1261_v21 = vadd.f32 %v1246_v2, %v980_v28  ;;  %v986_v11 = vadd.f32 %v985_v40, %v5746_v3 }
 0x279   : > { %v1248_v18 = vpop.f32.mrf.mxu0 }
 0x27a   : > { %1347 = vrot.lane.b32.xlu0 %v1297_v42, %s4841_s18  ;;  %1890 = vrot.lane.b32.xlu1 %v1297_v42, %s4842_s19  ;;  %v1300_v20 = vmax.f32 %v1292_v24, 0.0  ;;  %v1262_v12 = vadd.f32 %v1248_v18, %v982_v56  ;;  %v5806_v58 = vpop.permute.xlu0 %4686 }
 0x27c   : > { %v5786_v59 = vpop.permute.xlu1 %2945  ;;  %v1294_v5 = vadd.f32 %v5664_v53, %v1262_v12 }
 0x27e   : > { %1511 = vrot.lane.b32.xlu0 %v1298_v33, %s4840_s17  ;;  %1568 = vrot.lane.b32.xlu1 %v1297_v42, %s4843_s20  ;;  %v1293_v42 = vadd.f32 %v5664_v53, %v1261_v21  ;;  %v1302_v38 = vmax.f32 %v1294_v5, 0.0  ;;  %v5815_v43 = vpop.permute.xlu0 %2955 }
 0x280   : > { %v5794_v35 = vpop.permute.xlu1 %4701 }
 0x282   : > { %1892 = vrot.lane.b32.xlu0 %v1298_v33, %s4842_s19  ;;  %1531 = vrot.lane.b32.xlu1 %v1298_v33, %s4839_s12  ;;  %v5822_v32 = vpop.permute.xlu0 %2395 }
 0x284   : > { %v5801_v23 = vpop.permute.xlu1 %2939 }
 0x286   : > { %1570 = vrot.lane.b32.xlu0 %v1298_v33, %s4843_s20  ;;  %1349 = vrot.lane.b32.xlu1 %v1298_v33, %s4841_s18  ;;  %v1301_v33 = vmax.f32 %v1293_v42, 0.0  ;;  %v5832_v42 = vpop.permute.xlu0 %4696 }
 0x288   : > { %v5810_v54 = vpop.permute.xlu1 %4711 }
 0x289   : > { %8146 = vst [vmem:[#allocation9_spill] sm:$0xff] %v5810_v54 }
 0x28a   : > { %1535 = vrot.lane.b32.xlu0 %v1299_v62, %s4839_s12  ;;  %1355 = vrot.lane.b32.xlu1 %v1299_v62, %s4841_s18 }
 0x28c   : > { %v5817_v63 = vpop.permute.xlu1 %2683 }
 0x28d   : > { %8147 = vst [vmem:[#allocation10_spill] sm:$0xff] %v5817_v63 }
 0x28e   : > { %1898 = vrot.lane.b32.xlu0 %v1299_v62, %s4842_s19  ;;  %1513 = vrot.lane.b32.xlu1 %v1299_v62, %s4840_s17 }
 0x290   : > { %v5826_v53 = vpop.permute.xlu1 %2679 }
 0x291   : > { %8148 = vst [vmem:[#allocation11_spill] sm:$0xff] %v5826_v53 }
 0x292   : > { %1574 = vrot.lane.b32.xlu0 %v1299_v62, %s4843_s20  ;;  %1537 = vrot.lane.b32.xlu1 %v1300_v20, %s4839_s12  ;;  %v1252_v62 = vpop.f32.mrf.mxu0 }
 0x293   : > { %v1263_v24 = vadd.f32 %v1252_v62, %v986_v11 }
 0x294   : > { %v1254_v28 = vpop.f32.mrf.mxu0  ;;  %v5834_v18 = vpop.permute.xlu1 %2677 }
 0x295   : > { %v1295_v2 = vadd.f32 %v5662_v52, %v1263_v24  ;;  %8149 = vst [vmem:[#allocation12_spill] sm:$0xff] %v5834_v18 }
 0x296   : > { %1357 = vrot.lane.b32.xlu0 %v1300_v20, %s4841_s18  ;;  %1900 = vrot.lane.b32.xlu1 %v1300_v20, %s4842_s19 }
 0x297   : > { %v1303_v3 = vmax.f32 %v1295_v2, 0.0 }
 0x29a   : > { %1515 = vrot.lane.b32.xlu0 %v1300_v20, %s4840_s17  ;;  %1576 = vrot.lane.b32.xlu1 %v1300_v20, %s4843_s20  ;;  %v987_v20 = vpop.f32.mrf.mxu1 }
 0x29b   : > { %v988_v21 = vadd.f32 %v987_v20, %v5748_v48  ;;  %v5843_v48 = vpop.permute.xlu1 %2673 }
 0x29c   : > { %8150 = vst [vmem:[#allocation13_spill] sm:$0xff] %v5843_v48 }
 0x29d   : > { %v1264_v8 = vadd.f32 %v1254_v28, %v988_v21 }
 0x29e   : > { %1906 = vrot.lane.b32.xlu0 %v1301_v33, %s4842_s19  ;;  %1541 = vrot.lane.b32.xlu1 %v1301_v33, %s4839_s12 }
 0x29f   : > { %v1296_v56 = vadd.f32 %v5662_v52, %v1264_v8  ;;  %v5849_v40 = vpop.permute.xlu1 %2671 }
 0x2a0   : > { %8151 = vst [vmem:[#allocation14_spill] sm:$0xff] %v5849_v40 }
 0x2a1   : > { %v1304_v12 = vmax.f32 %v1296_v56, 0.0 }
 0x2a2   : > { %1580 = vrot.lane.b32.xlu0 %v1301_v33, %s4843_s20  ;;  %1363 = vrot.lane.b32.xlu1 %v1301_v33, %s4841_s18 }
 0x2a6   : > { %1543 = vrot.lane.b32.xlu0 %v1302_v38, %s4839_s12  ;;  %1517 = vrot.lane.b32.xlu1 %v1301_v33, %s4840_s17  ;;  %v5839_v33 = vpop.permute.xlu0 %2947 }
 0x2aa   : > { %1365 = vrot.lane.b32.xlu0 %v1302_v38, %s4841_s18  ;;  %1908 = vrot.lane.b32.xlu1 %v1302_v38, %s4842_s19  ;;  %v5847_v5 = vpop.permute.xlu0 %2937 }
 0x2ae   : > { %1519 = vrot.lane.b32.xlu0 %v1302_v38, %s4840_s17  ;;  %1582 = vrot.lane.b32.xlu1 %v1302_v38, %s4843_s20  ;;  %v5853_v52 = vpop.permute.xlu0 %4706  ;;  %v5857_v38 = vpop.permute.xlu1 %2667 }
 0x2af   : > { %8152 = vst [vmem:[#allocation15_spill] sm:$0xff] %v5857_v38 }
 0x2b2   : > { %1371 = vrot.lane.b32.xlu0 %v1303_v3, %s4841_s18  ;;  %1547 = vrot.lane.b32.xlu1 %v1303_v3, %s4839_s12  ;;  %v5859_v62 = vpop.permute.xlu1 %2665  ;;  %v5861_v11 = vpop.permute.xlu0 %4716 }
 0x2b3   : > { %8153 = vst [vmem:[#allocation16_spill] sm:$0xff] %v5859_v62  ;;  %8154 = vst [vmem:[#allocation17_spill] sm:$0xff] %v5861_v11 }
 0x2b6   : > { %1586 = vrot.lane.b32.xlu0 %v1303_v3, %s4843_s20  ;;  %1521 = vrot.lane.b32.xlu1 %v1303_v3, %s4840_s17  ;;  %v5863_v24 = vpop.permute.xlu1 %2661  ;;  %v5865_v20 = vpop.permute.xlu0 %2681 }
 0x2b7   : > { %8155 = vst [vmem:[#allocation18_spill] sm:$0xff] %v5863_v24  ;;  %8156 = vst [vmem:[#allocation19_spill] sm:$0xff] %v5865_v20 }
 0x2ba   : > { %1549 = vrot.lane.b32.xlu0 %v1304_v12, %s4839_s12  ;;  %1914 = vrot.lane.b32.xlu1 %v1303_v3, %s4842_s19  ;;  %v5867_v2 = vpop.permute.xlu1 %2659  ;;  %v5869_v28 = vpop.permute.xlu0 %2675 }
 0x2bb   : > { %8157 = vst [vmem:[#allocation20_spill] sm:$0xff] %v5867_v2  ;;  %8158 = vst [vmem:[#allocation21_spill] sm:$0xff] %v5869_v28  ;;  %v4639_v2 = vunpack.i.h.bf16 %v5692_v26 }
 0x2be   : > { %1523 = vrot.lane.b32.xlu0 %v1304_v12, %s4840_s17  ;;  %1373 = vrot.lane.b32.xlu1 %v1304_v12, %s4841_s18  ;;  %v5871_v21 = vpop.permute.xlu0 %2669  ;;  %v5873_v3 = vpop.permute.xlu1 %2655 }
 0x2bf   : > { %8159 = vst [vmem:[#allocation22_spill] sm:$0xff] %v5871_v21  ;;  %8160 = vst [vmem:[#allocation23_spill] sm:$0xff] %v5873_v3 }
 0x2c2   : > { %1916 = vrot.lane.b32.xlu0 %v1304_v12, %s4842_s19  ;;  %1588 = vrot.lane.b32.xlu1 %v1304_v12, %s4843_s20  ;;  %v5875_v8 = vpop.permute.xlu0 %2663  ;;  %v5877_v56 = vpop.permute.xlu1 %2653 }
 0x2c3   : > { %8161 = vst [vmem:[#allocation24_spill] sm:$0xff] %v5875_v8  ;;  %8162 = vst [vmem:[#allocation25_spill] sm:$0xff] %v5877_v56  ;;  %v4629_v8 = vunpack.i.h.bf16 %v5687_v47 }
 0x2c6   : > { %v5879_v12 = vpop.permute.xlu0 %2657  ;;  %v5883_v0 = vpop.permute.xlu1 %2649 }
 0x2c7   : > { %8163 = vst [vmem:[#allocation26_spill] sm:$0xff] %v5879_v12  ;;  %8165 = vst [vmem:[#allocation28_spill] sm:$0xff] %v5883_v0  ;;  %v4664_v12 = vunpack.i.h.bf16 %v5709_v4 }
 0x2ca   : > { %v5881_v46 = vpop.permute.xlu0 %2651 }
 0x2cb   : > { %8164 = vst [vmem:[#allocation27_spill] sm:$0xff] %v5881_v46 }
 0x2e8   : > { %v1530_v24 = vpop.permute.xlu0 %1529  ;;  %v1510_v62 = vpop.permute.xlu1 %1509 }
 0x2e9   : > { %1614 = vrot.lane.b32.xlu1 %v1530_v24, %s4843_s20 }
 0x2ec   : > { %v1348_v38 = vpop.permute.xlu0 %1347  ;;  %v1891_v21 = vpop.permute.xlu1 %1890 }
 0x2ed   : > { %v5888_v3 = vsel %vm475_vm2, %v4639_v2, %v1348_v38  ;;  %1590 = vrot.lane.b32.xlu1 %v1510_v62, %s4843_s20  ;;  %v5901_v2 = vsel %vm1022_vm6, %v4664_v12, %v1891_v21 }
 0x2ee   : > { %8166 = vst [vmem:[#allocation29_spill] sm:$0xff] %v5888_v3  ;;  %v1401_v56 = vsel %vm5105_vm5, %v5888_v3, 0.0  ;;  %8168 = vst [vmem:[#allocation31_spill] sm:$0xff] %v5901_v2  ;;  %v5909_v18 = vsel %vm5171_vm9, %v5901_v2, 0.0 }
 0x2ef   : > { %1465 = vrot.lane.b32.xlu0 %v1401_v56, %s4839_s12 }
 0x2f0   : > { %v1512_v0 = vpop.permute.xlu0 %1511  ;;  %v5895_v46 = vpop.permute.xlu1 %1568 }
 0x2f1   : > { %8167 = vst [vmem:[#allocation30_spill] sm:$0xff] %v5895_v46  ;;  %1594 = vrot.lane.b32.xlu1 %v1512_v0, %s4843_s20  ;;  %v1525_v2 = vsel %vm548_vm1, %v1510_v62, %v1512_v0 }
 0x2f3   : > { %1425 = vrot.lane.b32.xlu0 %v1401_v56, %s4840_s17  ;;  %v4638_v56 = vunpack.i.l.bf16 %v5692_v26 }
 0x2f4   : > { %v1893_v40 = vpop.permute.xlu0 %1892  ;;  %v1532_v48 = vpop.permute.xlu1 %1531 }
 0x2f5   : > { %v1554_v28 = vsel %vm589_vm0, %v1532_v48, %v4629_v8  ;;  %v1553_v20 = vsel %vm589_vm0, %v1530_v24, %v1532_v48  ;;  %v5937_v62 = vsel %vm1022_vm6, %v1891_v21, %v1893_v40 }
 0x2f6   : > { %1618 = vrot.lane.b32.xlu1 %v1554_v28, %s4843_s20  ;;  %8172 = vst [vmem:[#allocation35_spill] sm:$0xff] %v5937_v62 }
 0x2f7   : > { %2008 = vrot.lane.b32.xlu0 %v5909_v18, %s4839_s12 }
 0x2f8   : > { %v5913_v53 = vpop.permute.xlu0 %1570  ;;  %v1350_v12 = vpop.permute.xlu1 %1349 }
 0x2f9   : > { %8169 = vst [vmem:[#allocation32_spill] sm:$0xff] %v5913_v53  ;;  %v1379_v28 = vsel %vm475_vm2, %v1350_v12, %v4638_v56  ;;  %v5922_v3 = vsel %vm475_vm2, %v1348_v38, %v1350_v12  ;;  %v4663_v38 = vunpack.i.l.bf16 %v5709_v4 }
 0x2fa   : > { %8170 = vst [vmem:[#allocation33_spill] sm:$0xff] %v5922_v3  ;;  %v1403_v26 = vsel %vm5072_vm3, %v1379_v28, 0.0  ;;  %v1402_v48 = vsel %vm5081_vm4, %v5922_v3, 0.0  ;;  %v5946_v28 = vsel %vm5125_vm7, %v5937_v62, 0.0 }
 0x2fb   : > { %1616 = vrot.lane.b32.xlu0 %v1553_v20, %s4843_s20  ;;  %v1922_v12 = vsel %vm1022_vm6, %v1893_v40, %v4663_v38  ;;  %v4659_v38 = vunpack.i.h.bf16 %v5702_v19 }
 0x2fc   : > { %v1536_v8 = vpop.permute.xlu0 %1535  ;;  %v1356_v63 = vpop.permute.xlu1 %1355  ;;  %v5955_v21 = vsel %vm5150_vm8, %v1922_v12, 0.0 }
 0x2fd   : > { %1620 = vrot.lane.b32.xlu1 %v1536_v8, %s4843_s20 }
 0x2ff   : > { %1592 = vrot.lane.b32.xlu0 %v1525_v2, %s4843_s20  ;;  %v4634_v2 = vunpack.i.h.bf16 %v5694_v36 }
 0x300   : > { %v1899_v46 = vpop.permute.xlu0 %1898  ;;  %v1514_v53 = vpop.permute.xlu1 %1513 }
 0x301   : > { %1469 = vrot.lane.b32.xlu1 %v1403_v26, %s4839_s12  ;;  %v5949_v4 = vsel %vm475_vm2, %v4634_v2, %v1356_v63  ;;  %v4628_v2 = vunpack.i.l.bf16 %v5687_v47  ;;  %v5969_v12 = vsel %vm1022_vm6, %v4659_v38, %v1899_v46 }
 0x302   : > { %8173 = vst [vmem:[#allocation36_spill] sm:$0xff] %v5949_v4  ;;  %8175 = vst [vmem:[#allocation38_spill] sm:$0xff] %v5969_v12 }
 0x303   : > { %1467 = vrot.lane.b32.xlu0 %v1402_v48, %s4839_s12 }
 0x304   : > { %v5932_v24 = vpop.permute.xlu0 %1574  ;;  %v1538_v0 = vpop.permute.xlu1 %1537 }
 0x305   : > { %8171 = vst [vmem:[#allocation34_spill] sm:$0xff] %v5932_v24  ;;  %1596 = vrot.lane.b32.xlu1 %v1514_v53, %s4843_s20  ;;  %v1556_v3 = vsel %vm589_vm0, %v1538_v0, %v4628_v2  ;;  %v4633_v24 = vunpack.i.l.bf16 %v5694_v36  ;;  %v1555_v36 = vsel %vm589_vm0, %v1536_v8, %v1538_v0 }
 0x307   : > { %1427 = vrot.lane.b32.xlu0 %v1402_v48, %s4840_s17 }
 0x308   : > { %v1901_v20 = vpop.permute.xlu1 %1900  ;;  %v1358_v56 = vpop.permute.xlu0 %1357 }
 0x309   : > { %1429 = vrot.lane.b32.xlu1 %v1403_v26, %s4840_s17  ;;  %v1404_v26 = vsel %vm5105_vm5, %v5949_v4, 0.0  ;;  %v1947_v4 = vsel %vm5171_vm9, %v5969_v12, 0.0  ;;  %v1382_v38 = vsel %vm475_vm2, %v1358_v56, %v4633_v24 }
 0x30b   : > { %2010 = vrot.lane.b32.xlu0 %v5946_v28, %s4839_s12 }
 0x30c   : > { %v5959_v40 = vpop.permute.xlu1 %1576  ;;  %v1516_v48 = vpop.permute.xlu0 %1515 }
 0x30d   : > { %2012 = vrot.lane.b32.xlu1 %v5955_v21, %s4839_s12  ;;  %8174 = vst [vmem:[#allocation37_spill] sm:$0xff] %v5959_v40  ;;  %v1526_v24 = vsel %vm548_vm1, %v1514_v53, %v1516_v48  ;;  %v4658_v40 = vunpack.i.l.bf16 %v5702_v19 }
 0x30f   : > { %1471 = vrot.lane.b32.xlu0 %v1404_v26, %s4839_s12  ;;  %v1925_v11 = vsel %vm1022_vm6, %v1901_v20, %v4658_v40 }
 0x310   : > { %v5972_v62 = vpop.permute.xlu1 %1541  ;;  %v5981_v47 = vpop.permute.xlu0 %1906  ;;  %v1949_v53 = vsel %vm5150_vm8, %v1925_v11, 0.0  ;;  %v4624_v11 = vunpack.i.h.bf16 %v5690_v51 }
 0x311   : > { %1600 = vrot.lane.b32.xlu1 %v1516_v48, %s4843_s20  ;;  %v4614_v48 = vunpack.i.h.bf16 %v5684_v41 }
 0x313   : > { %1431 = vrot.lane.b32.xlu0 %v1404_v26, %s4840_s17 }
 0x314   : > { %v5986_v26 = vpop.permute.xlu1 %1363  ;;  %v5992_v2 = vpop.permute.xlu0 %1580 }
 0x315   : > { %1624 = vrot.lane.b32.xlu1 %v1556_v3, %s4843_s20  ;;  %v1406_v3 = vsel %vm5072_vm3, %v1382_v38, 0.0  ;;  %8176 = vst [vmem:[#allocation39_spill] sm:$0xff] %v5992_v2 }
 0x317   : > { %2014 = vrot.lane.b32.xlu0 %v1947_v4, %s4839_s12 }
 0x318   : > { %v1518_v12 = vpop.permute.xlu1 %1517  ;;  %v1544_v38 = vpop.permute.xlu0 %1543 }
 0x319   : > { %1626 = vrot.lane.b32.xlu1 %v5972_v62, %s4843_s20 }
 0x31b   : > { %1974 = vrot.lane.b32.xlu0 %v1947_v4, %s4840_s17  ;;  %v6000_v4 = vsel %vm475_vm2, %v1356_v63, %v1358_v56  ;;  %v6013_v63 = vsel %vm1022_vm6, %v1899_v46, %v1901_v20  ;;  %v6028_v20 = vsel %vm475_vm2, %v4624_v11, %v5986_v26 }
 0x31c   : > { %8177 = vst [vmem:[#allocation40_spill] sm:$0xff] %v6000_v4  ;;  %v1405_v8 = vsel %vm5081_vm4, %v6000_v4, 0.0  ;;  %v1366_v19 = vpop.permute.xlu0 %1365  ;;  %8178 = vst [vmem:[#allocation41_spill] sm:$0xff] %v6013_v63  ;;  %v1909_v0 = vpop.permute.xlu1 %1908  ;;  %v1948_v56 = vsel %vm5125_vm7, %v6013_v63, 0.0  ;;  %v1557_v63 = vsel %vm589_vm0, %v5972_v62, %v1544_v38 }
 0x31d   : > { %1475 = vrot.lane.b32.xlu1 %v1406_v3, %s4839_s12  ;;  %8180 = vst [vmem:[#allocation43_spill] sm:$0xff] %v6028_v20 }
 0x31f   : > { %1622 = vrot.lane.b32.xlu0 %v1555_v36, %s4843_s20  ;;  %v1407_v36 = vsel %vm5105_vm5, %v6028_v20, 0.0 }
 0x320   : > { %v1520_v40 = vpop.permute.xlu0 %1519  ;;  %v6024_v46 = vpop.permute.xlu1 %1582 }
 0x321   : > { %1602 = vrot.lane.b32.xlu1 %v1518_v12, %s4843_s20  ;;  %8179 = vst [vmem:[#allocation42_spill] sm:$0xff] %v6024_v46 }
 0x323   : > { %1598 = vrot.lane.b32.xlu0 %v1526_v24, %s4843_s20  ;;  %v4623_v24 = vunpack.i.l.bf16 %v5690_v51 }
 0x324   : > { %v6049_v51 = vpop.permute.xlu0 %1371 }
 0x325   : > { %1435 = vrot.lane.b32.xlu1 %v1406_v3, %s4840_s17  ;;  %v1558_v3 = vsel %vm589_vm0, %v1544_v38, %v4614_v48  ;;  %v1385_v11 = vsel %vm475_vm2, %v1366_v19, %v4623_v24  ;;  %v4644_v38 = vunpack.i.h.bf16 %v5698_v44 }
 0x326   : > { %v1409_v48 = vsel %vm5072_vm3, %v1385_v11, 0.0 }
 0x327   : > { %1473 = vrot.lane.b32.xlu0 %v1405_v8, %s4839_s12 }
 0x329   : > { %2018 = vrot.lane.b32.xlu1 %v1949_v53, %s4839_s12 }
 0x32b   : > { %1433 = vrot.lane.b32.xlu0 %v1405_v8, %s4840_s17  ;;  %v1548_v8 = vpop.permute.xlu1 %1547 }
 0x32d   : > { %1978 = vrot.lane.b32.xlu1 %v1949_v53, %s4840_s17  ;;  %v4649_v53 = vunpack.i.h.bf16 %v5696_v55 }
 0x32f   : > { %2016 = vrot.lane.b32.xlu0 %v1948_v56, %s4839_s12  ;;  %v6055_v24 = vpop.permute.xlu1 %1521 }
 0x331   : > { %1606 = vrot.lane.b32.xlu1 %v1520_v40, %s4843_s20 }
 0x333   : > { %1976 = vrot.lane.b32.xlu0 %v1948_v56, %s4840_s17  ;;  %v6043_v56 = vsel %vm1022_vm6, %v4649_v53, %v5981_v47  ;;  %v6061_v53 = vpop.permute.xlu0 %1586 }
 0x334   : > { %8181 = vst [vmem:[#allocation44_spill] sm:$0xff] %v6043_v56  ;;  %8182 = vst [vmem:[#allocation45_spill] sm:$0xff] %v6061_v53 }
 0x335   : > { %1630 = vrot.lane.b32.xlu1 %v1558_v3, %s4843_s20  ;;  %v1950_v3 = vsel %vm5171_vm9, %v6043_v56, 0.0 }
 0x337   : > { %1477 = vrot.lane.b32.xlu0 %v1407_v36, %s4839_s12  ;;  %v1550_v4 = vpop.permute.xlu0 %1549 }
 0x339   : > { %1632 = vrot.lane.b32.xlu1 %v1548_v8, %s4843_s20 }
 0x33b   : > { %1437 = vrot.lane.b32.xlu0 %v1407_v36, %s4840_s17  ;;  %v4648_v36 = vunpack.i.l.bf16 %v5696_v55  ;;  %v1527_v55 = vsel %vm548_vm1, %v1518_v12, %v1520_v40 }
 0x33d   : > { %1481 = vrot.lane.b32.xlu1 %v1409_v48, %s4839_s12  ;;  %v1928_v11 = vsel %vm1022_vm6, %v1909_v0, %v4648_v36  ;;  %v1915_v36 = vpop.permute.xlu1 %1914 }
 0x33e   : > { %v1952_v56 = vsel %vm5150_vm8, %v1928_v11, 0.0  ;;  %v6084_v12 = vsel %vm1022_vm6, %v4644_v38, %v1915_v36 }
 0x33f   : > { %2020 = vrot.lane.b32.xlu0 %v1950_v3, %s4839_s12  ;;  %8184 = vst [vmem:[#allocation47_spill] sm:$0xff] %v6084_v12 }
 0x341   : > { %1608 = vrot.lane.b32.xlu1 %v6055_v24, %s4843_s20  ;;  %v1374_v40 = vpop.permute.xlu1 %1373 }
 0x343   : > { %1980 = vrot.lane.b32.xlu0 %v1950_v3, %s4840_s17  ;;  %v6074_v3 = vsel %vm475_vm2, %v5986_v26, %v1366_v19  ;;  %v6089_v26 = vsel %vm1022_vm6, %v5981_v47, %v1909_v0  ;;  %v1953_v19 = vsel %vm5171_vm9, %v6084_v12, 0.0  ;;  %v1559_v47 = vsel %vm589_vm0, %v1548_v8, %v1550_v4 }
 0x344   : > { %8183 = vst [vmem:[#allocation46_spill] sm:$0xff] %v6074_v3  ;;  %v1408_v62 = vsel %vm5081_vm4, %v6074_v3, 0.0  ;;  %8185 = vst [vmem:[#allocation48_spill] sm:$0xff] %v6089_v26  ;;  %v4619_v0 = vunpack.i.h.bf16 %v5682_v1 }
 0x345   : > { %1441 = vrot.lane.b32.xlu1 %v1409_v48, %s4840_s17  ;;  %v4618_v48 = vunpack.i.l.bf16 %v5682_v1  ;;  %v6100_v11 = vpop.permute.xlu1 %1588 }
 0x346   : > { %8186 = vst [vmem:[#allocation49_spill] sm:$0xff] %v6100_v11 }
 0x347   : > { %1628 = vrot.lane.b32.xlu0 %v1557_v63, %s4843_s20  ;;  %v1524_v63 = vpop.permute.xlu0 %1523 }
 0x349   : > { %2024 = vrot.lane.b32.xlu1 %v1952_v56, %s4839_s12 }
 0x34b   : > { %1604 = vrot.lane.b32.xlu0 %v1527_v55, %s4843_s20  ;;  %v1388_v55 = vsel %vm475_vm2, %v1374_v40, %v4618_v48  ;;  %v1917_v12 = vpop.permute.xlu0 %1916 }
 0x34c   : > { %v6124_v48 = vsel %vm1022_vm6, %v1915_v36, %v1917_v12  ;;  %v4613_v36 = vunpack.i.l.bf16 %v5684_v41  ;;  %v1528_v41 = vsel %vm548_vm1, %v6055_v24, %v1524_v63 }
 0x34d   : > { %1984 = vrot.lane.b32.xlu1 %v1952_v56, %s4840_s17  ;;  %v1951_v56 = vsel %vm5125_vm7, %v6089_v26, 0.0  ;;  %v1412_v26 = vsel %vm5072_vm3, %v1388_v55, 0.0  ;;  %8189 = vst [vmem:[#allocation52_spill] sm:$0xff] %v6124_v48 }
 0x34f   : > { %1479 = vrot.lane.b32.xlu0 %v1408_v62, %s4839_s12 }
 0x351   : > { %1612 = vrot.lane.b32.xlu1 %v1524_v63, %s4843_s20 }
 0x353   : > { %1439 = vrot.lane.b32.xlu0 %v1408_v62, %s4840_s17  ;;  %v6109_v62 = vsel %vm475_vm2, %v4619_v0, %v6049_v51  ;;  %v1954_v0 = vsel %vm5125_vm7, %v6124_v48, 0.0 }
 0x354   : > { %8187 = vst [vmem:[#allocation50_spill] sm:$0xff] %v6109_v62  ;;  %v1410_v1 = vsel %vm5105_vm5, %v6109_v62, 0.0 }
 0x355   : > { %2026 = vrot.lane.b32.xlu1 %v1953_v19, %s4839_s12 }
 0x357   : > { %2022 = vrot.lane.b32.xlu0 %v1951_v56, %s4839_s12 }
 0x359   : > { %1634 = vrot.lane.b32.xlu1 %v1559_v47, %s4843_s20 }
 0x35b   : > { %v6111_v38 = vpop.permute.xlu1 %1614  ;;  %1982 = vrot.lane.b32.xlu0 %v1951_v56, %s4840_s17  ;;  %v4643_v56 = vunpack.i.l.bf16 %v5698_v44 }
 0x35d   : > { %1487 = vrot.lane.b32.xlu1 %v1412_v26, %s4839_s12  ;;  %v1931_v55 = vsel %vm1022_vm6, %v1917_v12, %v4643_v56 }
 0x35e   : > { %v1955_v44 = vsel %vm5150_vm8, %v1931_v55, 0.0 }
 0x35f   : > { %v6120_v8 = vpop.permute.xlu1 %1590  ;;  %1483 = vrot.lane.b32.xlu0 %v1410_v1, %s4839_s12 }
 0x360   : > { %8188 = vst [vmem:[#allocation51_spill] sm:$0xff] %v6120_v8 }
 0x361   : > { %v6126_v47 = vpop.permute.xlu0 %1465  ;;  %1447 = vrot.lane.b32.xlu1 %v1412_v26, %s4840_s17 }
 0x362   : > { %8190 = vst [vmem:[#allocation53_spill] sm:$0xff] %v6126_v47  ;;  %v4703_v47 = vunpack.i.l.bf16 %v5794_v35 }
 0x363   : > { %1443 = vrot.lane.b32.xlu0 %v1410_v1, %s4840_s17  ;;  %v6135_v20 = vpop.permute.xlu1 %1594  ;;  %v1560_v1 = vsel %vm589_vm0, %v1550_v4, %v4613_v36 }
 0x365   : > { %v6137_v3 = vpop.permute.xlu0 %1425  ;;  %2028 = vrot.lane.b32.xlu1 %v1954_v0, %s4839_s12 }
 0x366   : > { %8191 = vst [vmem:[#allocation54_spill] sm:$0xff] %v6137_v3  ;;  %v4825_v3 = vld [vmem:[%s4915_s16 + $0x40] sm:$0xff] }
 0x367   : > { %1986 = vrot.lane.b32.xlu0 %v1953_v19, %s4840_s17  ;;  %v6159_v19 = vsel %vm475_vm2, %v6049_v51, %v1374_v40 }
 0x368   : > { %v6148_v12 = vpop.permute.xlu1 %1618  ;;  %8193 = vst [vmem:[#allocation56_spill] sm:$0xff] %v6159_v19 }
 0x369   : > { %v6144_v26 = vpop.permute.xlu0 %2008  ;;  %1990 = vrot.lane.b32.xlu1 %v1955_v44, %s4840_s17 }
 0x36a   : > { %8192 = vst [vmem:[#allocation55_spill] sm:$0xff] %v6144_v26  ;;  %v8199_v26 = vmov 0.0  }
 0x36b   : > { %1636 = vrot.lane.b32.xlu0 %v1560_v1, %s4843_s20 }
 0x36d   : > { %v6151_v56 = vpop.permute.xlu0 %1616  ;;  %1972 = vrot.lane.b32.xlu1 %v5955_v21, %s4840_s17  ;;  %v1411_v21 = vsel %vm5081_vm4, %v6159_v19, 0.0  ;;  %v4824_v19 = vld [vmem:[%s4915_s16 + $0x58] sm:$0xff] }
 0x36f   : > { %v6161_v55 = vpop.permute.xlu1 %1620  ;;  %1610 = vrot.lane.b32.xlu0 %v1528_v41, %s4843_s20  ;;  %v4822_v41 = vld [vmem:[%s4915_s16 + $0x70] sm:$0xff] }
 0x371   : > { %v6164_v4 = vpop.permute.xlu0 %1592  ;;  %2647 = vrot.lane.b32.xlu1 %v5753_v15, %s4843_s20 }
 0x373   : > { %v6171_v36 = vpop.permute.xlu1 %1469  ;;  %1485 = vrot.lane.b32.xlu0 %v1411_v21, %s4839_s12 }
 0x375   : > { %v6174_v51 = vpop.permute.xlu0 %1467  ;;  %2643 = vrot.lane.b32.xlu1 %v5732_v7, %s4843_s20 }
 0x376   : > { %8194 = vst [vmem:[#allocation57_spill] sm:$0xff] %v6174_v51 }
 0x377   : > { %v6178_v24 = vpop.permute.xlu1 %1596  ;;  %1445 = vrot.lane.b32.xlu0 %v1411_v21, %s4840_s17 }
 0x379   : > { %v6181_v63 = vpop.permute.xlu0 %1427  ;;  %2641 = vrot.lane.b32.xlu1 %v5762_v50, %s4843_s20 }
 0x37a   : > { %8195 = vst [vmem:[#allocation58_spill] sm:$0xff] %v6181_v63 }
 0x37b   : > { %v6185_v40 = vpop.permute.xlu1 %1429  ;;  %2030 = vrot.lane.b32.xlu0 %v1955_v44, %s4839_s12 }
 0x37c   : > { %8196 = vst [vmem:[#allocation59_spill] sm:$0xff] %v6185_v40 }
 0x37d   : > { %v6188_v1 = vpop.permute.xlu0 %2010  ;;  %2633 = vrot.lane.b32.xlu1 %v4822_v41, %s4843_s20  ;;  %v2574_v41 = vsel %vm548_vm1, %v5732_v7, %v5753_v15  ;;  %v4674_v15 = vunpack.i.h.bf16 %v5738_v6 }
 0x37e   : > { %8197 = vst [vmem:[#allocation60_spill] sm:$0xff] %v6188_v1  ;;  %v4823_v1 = vld [vmem:[%s4915_s16 + $0x68] sm:$0xff] }
 0x37f   : > { %v6192_v48 = vpop.permute.xlu1 %2012  ;;  %1988 = vrot.lane.b32.xlu0 %v1954_v0, %s4840_s17 }
 0x380   : > { %8198 = vst [vmem:[#allocation61_spill] sm:$0xff] %v6192_v48  ;;  %v6216_v48 = vsel %vm475_vm2, %v5736_v10, %v5768_v37 }
 0x381   : > { %v6195_v21 = vpop.permute.xlu0 %1471  ;;  %4721 = vrot.lane.b32.xlu1 %v8199_v26, %s4843_s20  ;;  %8201 = vst [vmem:[#allocation63_spill] sm:$0xff] %v6216_v48  ;;  %v6229_v7 = vsel %vm5081_vm4, %v6216_v48, 0.0 }
 0x383   : > { %v6199_v62 = vpop.permute.xlu1 %1600  ;;  %1970 = vrot.lane.b32.xlu0 %v5946_v28, %s4840_s17 }
 0x385   : > { %v6203_v44 = vpop.permute.xlu0 %1431  ;;  %2629 = vrot.lane.b32.xlu1 %v4823_v1, %s4843_s20 }
 0x386   : > { %8200 = vst [vmem:[#allocation62_spill] sm:$0xff] %v6203_v44 }
 0x387   : > { %v6210_v0 = vpop.permute.xlu1 %1624  ;;  %2645 = vrot.lane.b32.xlu0 %v2574_v41, %s4843_s20 }
 0x389   : > { %v6218_v28 = vpop.permute.xlu0 %2014  ;;  %2623 = vrot.lane.b32.xlu1 %v4824_v19, %s4843_s20  ;;  %v2573_v19 = vsel %vm548_vm1, %v5734_v27, %v5762_v50 }
 0x38a   : > { %8202 = vst [vmem:[#allocation64_spill] sm:$0xff] %v6218_v28 }
 0x38b   : > { %v6222_v1 = vpop.permute.xlu1 %1626  ;;  %1968 = vrot.lane.b32.xlu0 %v5909_v18, %s4840_s17  ;;  %v4678_v18 = vunpack.i.l.bf16 %v5784_v29 }
 0x38d   : > { %v6232_v41 = vpop.permute.xlu0 %1974  ;;  %2533 = vrot.lane.b32.xlu1 %v6229_v7, %s4839_s12 }
 0x38e   : > { %8203 = vst [vmem:[#allocation65_spill] sm:$0xff] %v6232_v41  ;;  %v6249_v41 = vsel %vm475_vm2, %v4674_v15, %v5736_v10  ;;  %v2433_v10 = vsel %vm475_vm2, %v5740_v31, %v4678_v18  ;;  %v4826_v15 = vld [vmem:[%s4915_s16 + $0x78] sm:$0xff] }
 0x38f   : > { %v6239_v28 = vpop.permute.xlu1 %1475  ;;  %2639 = vrot.lane.b32.xlu0 %v2573_v19, %s4843_s20  ;;  %8204 = vst [vmem:[#allocation66_spill] sm:$0xff] %v6249_v41  ;;  %v6258_v50 = vsel %vm5105_vm5, %v6249_v41, 0.0  ;;  %v4683_v19 = vunpack.i.l.bf16 %v5750_v60  ;;  %v4684_v41 = vunpack.i.h.bf16 %v5750_v60 }
 0x391   : > { %v6243_v48 = vpop.permute.xlu0 %1622  ;;  %2615 = vrot.lane.b32.xlu1 %v4825_v3, %s4843_s20  ;;  %v2978_v18 = vsel %vm1022_vm6, %v5790_v34, %v4683_v19  ;;  %v6297_v46 = vsel %vm1022_vm6, %v4684_v41, %v5744_v45  ;;  %v4673_v19 = vunpack.i.l.bf16 %v5738_v6 }
 0x392   : > { %8208 = vst [vmem:[#allocation70_spill] sm:$0xff] %v6297_v46 }
 0x393   : > { %v6251_v63 = vpop.permute.xlu1 %1602  ;;  %2637 = vrot.lane.b32.xlu0 %v5734_v27, %s4843_s20  ;;  %v6273_v27 = vsel %vm5072_vm3, %v2433_v10, 0.0  ;;  %v4688_v10 = vunpack.i.l.bf16 %v5806_v58 }
 0x395   : > { %v6261_v40 = vpop.permute.xlu0 %1598  ;;  %2531 = vrot.lane.b32.xlu1 %v6258_v50, %s4839_s12  ;;  %v2430_v6 = vsel %vm475_vm2, %v5755_v49, %v4688_v10 }
 0x397   : > { %v6267_v3 = vpop.permute.xlu1 %1435  ;;  %2635 = vrot.lane.b32.xlu0 %v4826_v15, %s4843_s20  ;;  %v6288_v15 = vsel %vm5150_vm8, %v2978_v18, 0.0  ;;  %v6307_v18 = vsel %vm5171_vm9, %v6297_v46, 0.0  ;;  %v6324_v46 = vsel %vm5072_vm3, %v2430_v6, 0.0  ;;  %v6354_v6 = vsel %vm475_vm2, %v5775_v16, %v5740_v31 }
 0x398   : > { %8205 = vst [vmem:[#allocation67_spill] sm:$0xff] %v6267_v3  ;;  %v4827_v3 = vld [vmem:[%s4915_s16 + $0x60] sm:$0xff]  ;;  %8213 = vst [vmem:[#allocation75_spill] sm:$0xff] %v6354_v6 }
 0x399   : > { %v6276_v44 = vpop.permute.xlu0 %1473  ;;  %2529 = vrot.lane.b32.xlu1 %v6273_v27, %s4839_s12 }
 0x39b   : > { %v6282_v2 = vpop.permute.xlu1 %2018  ;;  %2627 = vrot.lane.b32.xlu0 %v4827_v3, %s4843_s20  ;;  %v4828_v3 = vld [vmem:[%s4915_s16 + $0x50] sm:$0xff] }
 0x39c   : > { %8206 = vst [vmem:[#allocation68_spill] sm:$0xff] %v6282_v2 }
 0x39d   : > { %v6291_v60 = vpop.permute.xlu0 %1433  ;;  %3077 = vrot.lane.b32.xlu1 %v6288_v15, %s4839_s12 }
 0x39e   : > { %8207 = vst [vmem:[#allocation69_spill] sm:$0xff] %v6291_v60  ;;  %v4693_v60 = vunpack.i.l.bf16 %v5770_v14 }
 0x39f   : > { %v6300_v2 = vpop.permute.xlu1 %1978  ;;  %2621 = vrot.lane.b32.xlu0 %v4828_v3, %s4843_s20  ;;  %v2436_v3 = vsel %vm475_vm2, %v5768_v37, %v4673_v19 }
 0x3a0   : > { %8209 = vst [vmem:[#allocation71_spill] sm:$0xff] %v6300_v2  ;;  %v4694_v2 = vunpack.i.h.bf16 %v5770_v14  ;;  %v2975_v10 = vsel %vm1022_vm6, %v5815_v43, %v4693_v60  ;;  %v4698_v14 = vunpack.i.l.bf16 %v5832_v42 }
 0x3a1   : > { %v6310_v53 = vpop.permute.xlu0 %2016  ;;  %3073 = vrot.lane.b32.xlu1 %v6307_v18, %s4839_s12  ;;  %v6340_v37 = vsel %vm5150_vm8, %v2975_v10, 0.0  ;;  %v4829_v10 = vld [vmem:[%s4915_s16 + $0x48] sm:$0xff] }
 0x3a2   : > { %8210 = vst [vmem:[#allocation72_spill] sm:$0xff] %v6310_v53  ;;  %v6349_v60 = vsel %vm1022_vm6, %v4694_v2, %v5764_v25  ;;  %v2427_v31 = vsel %vm475_vm2, %v5779_v17, %v4698_v14  ;;  %v6375_v2 = vsel %vm5081_vm4, %v6354_v6, 0.0 }
 0x3a3   : > { %v6316_v41 = vpop.permute.xlu1 %1606  ;;  %4726 = vrot.lane.b32.xlu0 %v8199_v26, %s4843_s20  ;;  %v2460_v26 = vsel %vm5072_vm3, %v2436_v3, 0.0  ;;  %8212 = vst [vmem:[#allocation74_spill] sm:$0xff] %v6349_v60  ;;  %v6389_v14 = vsel %vm5072_vm3, %v2427_v31, 0.0 }
 0x3a5   : > { %v6327_v53 = vpop.permute.xlu0 %1976  ;;  %2523 = vrot.lane.b32.xlu1 %v6324_v46, %s4839_s12 }
 0x3a6   : > { %8211 = vst [vmem:[#allocation73_spill] sm:$0xff] %v6327_v53  ;;  %v6363_v53 = vsel %vm5171_vm9, %v6349_v60, 0.0  ;;  %v6381_v60 = vsel %vm1022_vm6, %v5744_v45, %v5790_v34  ;;  %v2972_v45 = vsel %vm1022_vm6, %v5839_v33, %v4703_v47 }
 0x3a7   : > { %v6335_v11 = vpop.permute.xlu1 %1630  ;;  %2535 = vrot.lane.b32.xlu0 %v2460_v26, %s4839_s12  ;;  %8215 = vst [vmem:[#allocation77_spill] sm:$0xff] %v6381_v60  ;;  %v6413_v31 = vsel %vm5150_vm8, %v2972_v45, 0.0  ;;  %v4708_v45 = vunpack.i.l.bf16 %v5853_v52 }
 0x3a9   : > { %v6343_v19 = vpop.permute.xlu0 %1477  ;;  %3071 = vrot.lane.b32.xlu1 %v6340_v37, %s4839_s12 }
 0x3ab   : > { %v6356_v3 = vpop.permute.xlu1 %1632  ;;  %2617 = vrot.lane.b32.xlu0 %v4829_v10, %s4843_s20  ;;  %v4679_v10 = vunpack.i.h.bf16 %v5784_v29  ;;  %v6401_v29 = vsel %vm5125_vm7, %v6381_v60, 0.0 }
 0x3ad   : > { %v6366_v8 = vpop.permute.xlu0 %1437  ;;  %3067 = vrot.lane.b32.xlu1 %v6363_v53, %s4839_s12 }
 0x3ae   : > { %8214 = vst [vmem:[#allocation76_spill] sm:$0xff] %v6366_v8  ;;  %v4704_v8 = vunpack.i.h.bf16 %v5794_v35  ;;  %v6409_v35 = vsel %vm475_vm2, %v4679_v10, %v5775_v16  ;;  %v6431_v16 = vsel %vm475_vm2, %v5799_v39, %v5755_v49 }
 0x3af   : > { %v6383_v54 = vpop.permute.xlu1 %1481  ;;  %2527 = vrot.lane.b32.xlu0 %v6375_v2, %s4839_s12  ;;  %8217 = vst [vmem:[#allocation79_spill] sm:$0xff] %v6409_v35  ;;  %v6426_v60 = vsel %vm5105_vm5, %v6409_v35, 0.0  ;;  %8220 = vst [vmem:[#allocation82_spill] sm:$0xff] %v6431_v16  ;;  %v6450_v49 = vsel %vm5081_vm4, %v6431_v16, 0.0  ;;  %v4689_v35 = vunpack.i.h.bf16 %v5806_v58  ;;  %v2969_v16 = vsel %vm1022_vm6, %v5801_v23, %v4708_v45 }
 0x3b0   : > { %v6421_v47 = vsel %vm1022_vm6, %v4704_v8, %v5786_v59 }
 0x3b1   : > { %v6392_v6 = vpop.permute.xlu0 %2020  ;;  %2517 = vrot.lane.b32.xlu1 %v6389_v14, %s4839_s12  ;;  %8219 = vst [vmem:[#allocation81_spill] sm:$0xff] %v6421_v47  ;;  %v6440_v8 = vsel %vm5171_vm9, %v6421_v47, 0.0 }
 0x3b2   : > { %8216 = vst [vmem:[#allocation78_spill] sm:$0xff] %v6392_v6  ;;  %v6456_v6 = vsel %vm1022_vm6, %v5764_v25, %v5815_v43  ;;  %v6479_v43 = vsel %vm475_vm2, %v4689_v35, %v5799_v39  ;;  %v6501_v39 = vsel %vm475_vm2, %v5822_v32, %v5779_v17  ;;  %v4699_v17 = vunpack.i.h.bf16 %v5832_v42 }
 0x3b3   : > { %v6403_v34 = vpop.permute.xlu1 %1608  ;;  %3075 = vrot.lane.b32.xlu0 %v6401_v29, %s4839_s12  ;;  %8222 = vst [vmem:[#allocation84_spill] sm:$0xff] %v6456_v6  ;;  %v6471_v58 = vsel %vm5125_vm7, %v6456_v6, 0.0  ;;  %8223 = vst [vmem:[#allocation85_spill] sm:$0xff] %v6479_v43  ;;  %v6496_v6 = vsel %vm5105_vm5, %v6479_v43, 0.0  ;;  %v6517_v22 = vsel %vm5081_vm4, %v6501_v39, 0.0  ;;  %v6523_v43 = vsel %vm1022_vm6, %v5786_v59, %v5839_v33 }
 0x3b4   : > { %8225 = vst [vmem:[#allocation87_spill] sm:$0xff] %v6501_v39  ;;  %8227 = vst [vmem:[#allocation89_spill] sm:$0xff] %v6523_v43  ;;  %v6536_v39 = vsel %vm5125_vm7, %v6523_v43, 0.0  ;;  %v6542_v59 = vsel %vm475_vm2, %v4699_v17, %v5822_v32  ;;  %v6560_v32 = vsel %vm1022_vm6, %v5847_v5, %v5801_v23 }
 0x3b5   : > { %v6415_v57 = vpop.permute.xlu0 %1980  ;;  %3065 = vrot.lane.b32.xlu1 %v6413_v31, %s4839_s12  ;;  %8228 = vst [vmem:[#allocation90_spill] sm:$0xff] %v6542_v59  ;;  %8229 = vst [vmem:[#allocation91_spill] sm:$0xff] %v6560_v32 }
 0x3b6   : > { %8218 = vst [vmem:[#allocation80_spill] sm:$0xff] %v6415_v57 }
 0x3b7   : > { %v6433_v10 = vpop.permute.xlu1 %1441  ;;  %2525 = vrot.lane.b32.xlu0 %v6426_v60, %s4839_s12 }
 0x3b8   : > { %8221 = vst [vmem:[#allocation83_spill] sm:$0xff] %v6433_v10  ;;  %v4709_v10 = vunpack.i.h.bf16 %v5853_v52  ;;  %v6483_v52 = vsel %vm5150_vm8, %v2969_v16, 0.0 }
 0x3b9   : > { %v6443_v57 = vpop.permute.xlu0 %1628  ;;  %3061 = vrot.lane.b32.xlu1 %v6440_v8, %s4839_s12 }
 0x3ba   : > { %v6491_v45 = vsel %vm1022_vm6, %v4709_v10, %v5847_v5 }
 0x3bb   : > { %v6458_v47 = vpop.permute.xlu1 %2024  ;;  %2521 = vrot.lane.b32.xlu0 %v6450_v49, %s4839_s12  ;;  %8224 = vst [vmem:[#allocation86_spill] sm:$0xff] %v6491_v45  ;;  %v6508_v16 = vsel %vm5171_vm9, %v6491_v45, 0.0 }
 0x3bc   : > { %8226 = vst [vmem:[#allocation88_spill] sm:$0xff] %v6508_v16 }
 0x3bd   : > { %v6463_v51 = vpop.permute.xlu0 %1604  ;;  %2495 = vrot.lane.b32.xlu1 %v2460_v26, %s4840_s17 }
 0x3bf   : > { %v6473_v25 = vpop.permute.xlu1 %1984  ;;  %3069 = vrot.lane.b32.xlu0 %v6471_v58, %s4839_s12 }
 0x3c1   : > { %v6485_v26 = vpop.permute.xlu0 %1479  ;;  %3059 = vrot.lane.b32.xlu1 %v6483_v52, %s4839_s12 }
 0x3c3   : > { %v1613_v35 = vpop.permute.xlu1 %1612  ;;  %2519 = vrot.lane.b32.xlu0 %v6496_v6, %s4839_s12 }
 0x3c5   : > { %v6510_v10 = vpop.permute.xlu0 %1439  ;;  %3055 = vrot.lane.b32.xlu1 %v6508_v16, %s4839_s12 }
 0x3c7   : > { %v6525_v30 = vpop.permute.xlu1 %2026  ;;  %2515 = vrot.lane.b32.xlu0 %v6517_v22, %s4839_s12 }
 0x3c9   : > { %v6529_v45 = vpop.permute.xlu0 %2022  ;;  %2489 = vrot.lane.b32.xlu1 %v6273_v27, %s4840_s17  ;;  %v6551_v27 = vsel %vm5105_vm5, %v6542_v59, 0.0  ;;  %v6573_v59 = vsel %vm5125_vm7, %v6560_v32, 0.0 }
 0x3cb   : > { %v1635_v42 = vpop.permute.xlu1 %1634  ;;  %3063 = vrot.lane.b32.xlu0 %v6536_v39, %s4839_s12 }
 0x3cd   : > { %v6544_v33 = vpop.permute.xlu0 %1982  ;;  %3037 = vrot.lane.b32.xlu1 %v6288_v15, %s4840_s17 }
 0x3cf   : > { %v1488_v43 = vpop.permute.xlu1 %1487  ;;  %2513 = vrot.lane.b32.xlu0 %v6551_v27, %s4839_s12 }
 0x3d1   : > { %v1484_v16 = vpop.permute.xlu0 %1483  ;;  %3033 = vrot.lane.b32.xlu1 %v6307_v18, %s4840_s17 }
 0x3d3   : > { %v6562_v17 = vpop.permute.xlu1 %1447  ;;  %2493 = vrot.lane.b32.xlu0 %v6229_v7, %s4840_s17 }
 0x3d5   : > { %v6566_v15 = vpop.permute.xlu0 %1443  ;;  %2483 = vrot.lane.b32.xlu1 %v6324_v46, %s4840_s17 }
 0x3d7   : > { %v6575_v18 = vpop.permute.xlu1 %2028  ;;  %3057 = vrot.lane.b32.xlu0 %v6573_v59, %s4839_s12 }
 0x3d9   : > { %v6579_v23 = vpop.permute.xlu0 %1986  ;;  %3031 = vrot.lane.b32.xlu1 %v6340_v37, %s4840_s17  ;;  %v1660_v37 = vsel %vm739_vm10, %v6356_v3, %v1635_v42 }
 0x3db   : > { %v6583_v5 = vpop.permute.xlu1 %1990  ;;  %2491 = vrot.lane.b32.xlu0 %v6258_v50, %s4840_s17  ;;  %v1659_v50 = vsel %vm739_vm10, %v6443_v57, %v6335_v11  ;;  %v1656_v11 = vsel %vm739_vm10, %v6161_v55, %v6243_v48 }
 0x3dd   : > { %3027 = vrot.lane.b32.xlu1 %v6363_v53, %s4840_s17  ;;  %v1637_v46 = vpop.permute.xlu0 %1636 }
 0x3de   : > { %v1661_v7 = vsel %vm739_vm10, %v1635_v42, %v1637_v46  ;;  %v1658_v46 = vsel %vm739_vm10, %v6222_v1, %v6443_v57  ;;  %v1655_v57 = vsel %vm739_vm10, %v6151_v56, %v6148_v12  ;;  %v1654_v1 = vsel %vm739_vm10, %v6111_v38, %v6151_v56 }
 0x3df   : > { %v6590_v32 = vpop.permute.xlu1 %1972  ;;  %2487 = vrot.lane.b32.xlu0 %v6375_v2, %s4840_s17  ;;  %1706 = vmatprep.subr.mxu1 %v1661_v7  ;;  %v1657_v2 = vsel %vm739_vm10, %v6243_v48, %v6210_v0  ;;  %v1651_v38 = vsel %vm739_vm10, %v6463_v51, %v6316_v41  ;;  %v1494_v56 = vsel %vm589_vm0, %v6485_v26, %v6383_v54 }
 0x3e0   : > { %1707 = vmatpush1.msra.mxu1 %v1660_v37  ;;  %v1649_v41 = vsel %vm739_vm10, %v6261_v40, %v6199_v62  ;;  %v1492_v54 = vsel %vm589_vm0, %v6276_v44, %v6239_v28  ;;  %v1647_v62 = vsel %vm739_vm10, %v6164_v4, %v6135_v20  ;;  %v8230_v28 = vld [vmem:[#allocation57_spill] sm:$0xff] }
 0x3e1   : > { %2477 = vrot.lane.b32.xlu1 %v6389_v14, %s4840_s17  ;;  %1708 = vmatprep.subr.mxu1 %v1659_v50  ;;  %v1611_v53 = vpop.permute.xlu0 %1610  ;;  %v8234_v20 = vld [vmem:[#allocation49_spill] sm:$0xff] }
 0x3e2   : > { %1709 = vmatpush1.msra.mxu1 %v1658_v46  ;;  %v1653_v14 = vsel %vm739_vm10, %v1611_v53, %v1613_v35  ;;  %v1652_v12 = vsel %vm739_vm10, %v6403_v34, %v1611_v53  ;;  %v1493_v34 = vsel %vm589_vm0, %v6343_v19, %v6485_v26  ;;  %v8235_v35 = vld [vmem:[#allocation45_spill] sm:$0xff]  ;;  %v8236_v53 = vld [vmem:[#allocation42_spill] sm:$0xff] }
 0x3e3   : > { %v6607_v3 = vpop.permute.xlu1 %2647  ;;  %3035 = vrot.lane.b32.xlu0 %v6401_v29, %s4840_s17  ;;  %1710 = vmatprep.subr.mxu1 %v1657_v2  ;;  %v8238_v2 = vld [vmem:[#allocation83_spill] sm:$0xff] }
 0x3e4   : > { %1711 = vmatpush1.msra.mxu1 %v1656_v11 }
 0x3e5   : > { %3025 = vrot.lane.b32.xlu1 %v6413_v31, %s4840_s17  ;;  %1712 = vmatprep.subr.mxu1 %v1655_v57  ;;  %v1486_v0 = vpop.permute.xlu0 %1485  ;;  %v8239_v57 = vld [vmem:[#allocation17_spill] sm:$0xff] }
 0x3e6   : > { %1713 = vmatpush1.msra.mxu1 %v1654_v1  ;;  %v1496_v29 = vsel %vm589_vm0, %v1486_v0, %v1488_v43  ;;  %v1495_v48 = vsel %vm589_vm0, %v1484_v16, %v1486_v0  ;;  %v8233_v43 = vld [vmem:[#allocation53_spill] sm:$0xff]  ;;  %v3211_v16 = vld [vmem:[%s8034_s2 + $0x18] sm:$0xff]  ;;  %v4718_v0 = vunpack.i.l.bf16 %v8239_v57 }
 0x3e7   : > { %v6625_v55 = vpop.permute.xlu1 %2643  ;;  %2485 = vrot.lane.b32.xlu0 %v6426_v60, %s4840_s17  ;;  %1714 = vmatprep.subr.mxu1 %v1653_v14  ;;  %v1650_v60 = vsel %vm739_vm10, %v6251_v63, %v6463_v51  ;;  %v1648_v51 = vsel %vm739_vm10, %v6178_v24, %v6261_v40  ;;  %v1491_v63 = vsel %vm589_vm0, %v6195_v21, %v6276_v44  ;;  %v8231_v40 = vld [vmem:[#allocation9_spill] sm:$0xff]  ;;  %v8232_v21 = vld [vmem:[#allocation51_spill] sm:$0xff] }
 0x3e8   : > { %1807 = vmatprep.subr.mxu0 %v1496_v29  ;;  %1715 = vmatpush1.msra.mxu1 %v1652_v12  ;;  %v1490_v24 = vsel %vm589_vm0, %v8230_v28, %v6171_v36  ;;  %v1646_v44 = vsel %vm739_vm10, %v8232_v21, %v6164_v4  ;;  %v1645_v36 = vsel %vm739_vm10, %v8235_v35, %v8234_v20  ;;  %v4714_v37 = vunpack.i.h.bf16 %v8231_v40  ;;  %v8241_v29 = vld [vmem:[#allocation37_spill] sm:$0xff] }
 0x3e9   : > { %1808 = vmatpush1.msra.mxu0 %v1495_v48  ;;  %3021 = vrot.lane.b32.xlu1 %v6440_v8, %s4840_s17  ;;  %v1446_v31 = vpop.permute.xlu0 %1445  ;;  %v8242_v48 = vld [vmem:[#allocation34_spill] sm:$0xff] }
 0x3ea   : > { %1716 = vmatprep.subr.mxu1 %v1651_v38  ;;  %1809 = vmatprep.subr.mxu0 %v1494_v56  ;;  %v1456_v4 = vsel %vm548_vm1, %v1446_v31, %v6562_v17  ;;  %v1455_v50 = vsel %vm548_vm1, %v6566_v15, %v1446_v31  ;;  %v1454_v17 = vsel %vm548_vm1, %v6510_v10, %v8238_v2  ;;  %v8240_v15 = vld [vmem:[#allocation76_spill] sm:$0xff]  ;;  %v8243_v31 = vld [vmem:[#allocation67_spill] sm:$0xff] }
 0x3eb   : > { %1717 = vmatpush1.msra.mxu1 %v1650_v60  ;;  %1810 = vmatpush1.msra.mxu0 %v1493_v34  ;;  %v6645_v8 = vpop.permute.xlu1 %2641  ;;  %v1453_v14 = vsel %vm548_vm1, %v8240_v15, %v6510_v10  ;;  %v1641_v12 = vsel %vm739_vm10, %v8242_v48, %v8241_v29  ;;  %v3209_v38 = vld [vmem:[%s8034_s2 + $0x8] sm:$0xff]  ;;  %v8244_v60 = vld [vmem:[#allocation69_spill] sm:$0xff]  ;;  %v1640_v34 = vsel %vm739_vm10, %v4718_v0, %v8242_v48  ;;  %v8265_v48 = vld [vmem:[#allocation55_spill] sm:$0xff] }
 0x3ec   : > { %2481 = vrot.lane.b32.xlu0 %v6450_v49, %s4840_s17  ;;  %1718 = vmatprep.subr.mxu1 %v1649_v41  ;;  %v4713_v49 = vunpack.i.l.bf16 %v8231_v40  ;;  %v1452_v10 = vsel %vm548_vm1, %v8244_v60, %v8243_v31  ;;  %v4719_v41 = vunpack.i.h.bf16 %v8239_v57  ;;  %v8249_v40 = vld [vmem:[#allocation58_spill] sm:$0xff]  ;;  %v8263_v15 = vld [vmem:[#allocation60_spill] sm:$0xff]  ;;  %v8264_v29 = vld [vmem:[#allocation29_spill] sm:$0xff] }
 0x3ed   : > { %1811 = vmatprep.subr.mxu0 %v1492_v54  ;;  %1719 = vmatpush1.msra.mxu1 %v1648_v51  ;;  %v6661_v19 = vpop.permute.xlu0 %2030  ;;  %v8245_v54 = vld [vmem:[#allocation62_spill] sm:$0xff] }
 0x3ee   : > { %1812 = vmatpush1.msra.mxu0 %v1491_v63  ;;  %3019 = vrot.lane.b32.xlu1 %v6483_v52, %s4840_s17  ;;  %v1489_v52 = vsel %vm589_vm0, %v8233_v43, %v8230_v28  ;;  %v1644_v42 = vsel %vm739_vm10, %v4713_v49, %v8235_v35  ;;  %v1451_v51 = vsel %vm548_vm1, %v8245_v54, %v8244_v60  ;;  %v8251_v35 = vld [vmem:[#allocation56_spill] sm:$0xff] }
 0x3ef   : > { %1720 = vmatprep.subr.mxu1 %v1647_v62  ;;  %1813 = vmatprep.subr.mxu0 %v1490_v24  ;;  %v6678_v26 = vpop.permute.xlu1 %2633  ;;  %v8247_v62 = vld [vmem:[#allocation30_spill] sm:$0xff]  ;;  %v8248_v24 = vld [vmem:[#allocation59_spill] sm:$0xff] }
 0x3f0   : > { %1721 = vmatpush1.msra.mxu1 %v1646_v44  ;;  %1814 = vmatpush1.msra.mxu0 %v1489_v52  ;;  %v1450_v49 = vsel %vm548_vm1, %v8249_v40, %v8248_v24  ;;  %v1638_v21 = vsel %vm739_vm10, %v4719_v41, %v8247_v62  ;;  %v8250_v44 = vld [vmem:[#allocation54_spill] sm:$0xff]  ;;  %v4389_v52 = vld [vmem:[%s8035_s3 + $0x20] sm:$0xff] }
 0x3f1   : > { %3029 = vrot.lane.b32.xlu0 %v6471_v58, %s4840_s17  ;;  %1722 = vmatprep.subr.mxu1 %v1645_v36  ;;  %v6692_v7 = vpop.permute.xlu0 %1988  ;;  %v8237_v58 = vld [vmem:[#allocation39_spill] sm:$0xff]  ;;  %v1449_v43 = vsel %vm548_vm1, %v8250_v44, %v8249_v40  ;;  %v2039_v36 = vsel %vm589_vm0, %v6575_v18, %v6661_v19  ;;  %v8253_v19 = vld [vmem:[#allocation46_spill] sm:$0xff]  ;;  %v8274_v44 = vld [vmem:[#allocation73_spill] sm:$0xff] }
 0x3f2   : > { %1815 = vmatprep.subr.mxu0 %v1456_v4  ;;  %1723 = vmatpush1.msra.mxu1 %v1644_v42  ;;  %v1643_v46 = vsel %vm739_vm10, %v8237_v58, %v8236_v53  ;;  %v1642_v1 = vsel %vm739_vm10, %v4714_v37, %v8237_v58  ;;  %v2038_v4 = vsel %vm589_vm0, %v6525_v30, %v6575_v18  ;;  %v8252_v42 = vld [vmem:[#allocation50_spill] sm:$0xff]  ;;  %v8255_v30 = vld [vmem:[#allocation43_spill] sm:$0xff]  ;;  %v8257_v58 = vld [vmem:[#allocation68_spill] sm:$0xff] }
 0x3f3   : > { %1816 = vmatpush1.msra.mxu0 %v1455_v50  ;;  %3229 = vperm.xlu1 %4609, %v3211_v16   ;;  %v6703_v11 = vpop.permute.xlu1 %4721  ;;  %v8254_v50 = vld [vmem:[#allocation78_spill] sm:$0xff]  ;;  %v1999_v60 = vsel %vm548_vm1, %v6692_v7, %v6583_v5  ;;  %v1998_v54 = vsel %vm548_vm1, %v6579_v23, %v6692_v7  ;;  %v8269_v5 = vld [vmem:[#allocation12_spill] sm:$0xff] }
 0x3f4   : > { %1724 = vmatprep.subr.mxu1 %v1643_v46  ;;  %1817 = vmatprep.subr.mxu0 %v1454_v17  ;;  %v2036_v53 = vsel %vm589_vm0, %v8254_v50, %v6529_v45  ;;  %v8258_v46 = vld [vmem:[#allocation72_spill] sm:$0xff] }
 0x3f5   : > { %1725 = vmatpush1.msra.mxu1 %v1642_v1  ;;  %1818 = vmatpush1.msra.mxu0 %v1453_v14  ;;  %v6717_v56 = vpop.permute.xlu0 %1970  ;;  %v2035_v2 = vsel %vm589_vm0, %v8258_v46, %v8257_v58  ;;  %v8260_v17 = vld [vmem:[#allocation64_spill] sm:$0xff]  ;;  %v8262_v1 = vld [vmem:[#allocation61_spill] sm:$0xff]  ;;  %v8281_v58 = vld [vmem:[#allocation18_spill] sm:$0xff] }
 0x3f6   : > { %2479 = vrot.lane.b32.xlu0 %v6496_v6, %s4840_s17  ;;  %1726 = vmatprep.subr.mxu1 %v1641_v12  ;;  %v8246_v6 = vld [vmem:[#allocation32_spill] sm:$0xff]  ;;  %v2034_v57 = vsel %vm589_vm0, %v8260_v17, %v8258_v46  ;;  %v2033_v14 = vsel %vm589_vm0, %v8263_v15, %v8262_v1  ;;  %v2032_v12 = vsel %vm589_vm0, %v8265_v48, %v8263_v15  ;;  %v8286_v15 = vld [vmem:[#allocation47_spill] sm:$0xff] }
 0x3f7   : > { %1819 = vmatprep.subr.mxu0 %v1452_v10  ;;  %1727 = vmatpush1.msra.mxu1 %v1640_v34  ;;  %v6730_v63 = vpop.permute.xlu1 %2629  ;;  %v1639_v28 = vsel %vm739_vm10, %v8247_v62, %v8246_v6  ;;  %v8266_v10 = vld [vmem:[#allocation10_spill] sm:$0xff]  ;;  %v8267_v34 = vld [vmem:[#allocation19_spill] sm:$0xff]  ;;  %v8271_v23 = vld [vmem:[#allocation80_spill] sm:$0xff] }
 0x3f8   : > { %1820 = vmatpush1.msra.mxu0 %v1451_v51  ;;  %3219 = vperm.xlu1 %4609, %v3209_v38   ;;  %v1505_v38 = vld [vmem:[%s8035_s3] sm:$0xff]  ;;  %v2708_v41 = vsel %vm739_vm10, %v8267_v34, %v8266_v10  ;;  %v1996_v7 = vsel %vm548_vm1, %v8271_v23, %v6544_v33  ;;  %v8279_v50 = vld [vmem:[#allocation16_spill] sm:$0xff]  ;;  %v8295_v23 = vld [vmem:[#allocation38_spill] sm:$0xff] }
 0x3f9   : > { %1728 = vmatprep.subr.mxu1 %v1639_v28  ;;  %1821 = vmatprep.subr.mxu0 %v1450_v49  ;;  %v6746_v20 = vpop.permute.xlu0 %2645  ;;  %v8268_v6 = vld [vmem:[#allocation11_spill] sm:$0xff]  ;;  %v8270_v28 = vld [vmem:[#allocation21_spill] sm:$0xff]  ;;  %v8283_v17 = vld [vmem:[#allocation52_spill] sm:$0xff] }
 0x3fa   : > { %1729 = vmatpush1.msra.mxu1 %v1638_v21  ;;  %1822 = vmatpush1.msra.mxu0 %v1449_v43  ;;  %v2707_v62 = vsel %vm739_vm10, %v8268_v6, %v8267_v34  ;;  %v2706_v24 = vsel %vm739_vm10, %v8270_v28, %v8269_v5  ;;  %v8272_v49 = vld [vmem:[#allocation13_spill] sm:$0xff]  ;;  %v8292_v34 = vld [vmem:[#allocation28_spill] sm:$0xff]  ;;  %v2695_v5 = vsel %vm739_vm10, %v6625_v55, %v6746_v20 }
 0x3fb   : > { %2475 = vrot.lane.b32.xlu0 %v6517_v22, %s4840_s17  ;;  %4397 = vmatprep.subr.msk.mxu0 %vm5081_vm4, %v8251_v35  ;;  %v6756_v16 = vpop.permute.xlu1 %2623  ;;  %v2037_v22 = vsel %vm589_vm0, %v6529_v45, %v6458_v47  ;;  %v8256_v47 = vld [vmem:[#allocation40_spill] sm:$0xff]  ;;  %v2705_v21 = vsel %vm739_vm10, %v8272_v49, %v8270_v28  ;;  %v8276_v35 = vld [vmem:[#allocation22_spill] sm:$0xff] }
 0x3fc   : > { %2073 = vmatprep.subr.mxu1 %v2039_v36  ;;  %4393 = vmatmul.mubr.msk.f32.vlgmr.msra.gmra.mxu1 %vm589_vm0, %v4389_v52  ;;  %v8259_v45 = vld [vmem:[#allocation36_spill] sm:$0xff]  ;;  %v8275_v52 = vld [vmem:[#allocation14_spill] sm:$0xff] }
 0x3fd   : > { %4398 = vmatpush1.msk.msra.mxu0 %vm5105_vm5, %v8252_v42  ;;  %2074 = vmatpush1.msra.mxu1 %v2038_v4  ;;  %v1969_v37 = vpop.permute.xlu0 %1968  ;;  %v8277_v4 = vld [vmem:[#allocation15_spill] sm:$0xff]  ;;  %v4390_v49 = vld [vmem:[%s8035_s3 + $0x28] sm:$0xff] }
 0x3fe   : > { %4399 = vmatprep.subr.msk.mxu0 %vm5081_vm4, %v8253_v19  ;;  %2075 = vmatprep.subr.mxu1 %v2037_v22  ;;  %v2703_v42 = vsel %vm739_vm10, %v8277_v4, %v8276_v35  ;;  %v8278_v22 = vld [vmem:[#allocation65_spill] sm:$0xff] }
 0x3ff   : > { %4400 = vmatpush1.msk.msra.mxu0 %vm5105_vm5, %v8255_v30  ;;  %2076 = vmatpush1.msra.mxu1 %v2036_v53  ;;  %v6777_v18 = vpop.permute.xlu1 %2533  ;;  %v1994_v19 = vsel %vm548_vm1, %v8278_v22, %v8274_v44  ;;  %v8280_v53 = vld [vmem:[#allocation24_spill] sm:$0xff] }
 0x400   : > { %3023 = vrot.lane.b32.xlu0 %v6536_v39, %s4840_s17  ;;  %4401 = vmatprep.subr.msk.mxu0 %vm5081_vm4, %v8256_v47  ;;  %v8261_v39 = vld [vmem:[#allocation33_spill] sm:$0xff]  ;;  %v2702_v30 = vsel %vm739_vm10, %v8280_v53, %v8279_v50  ;;  %v2701_v46 = vsel %vm739_vm10, %v8281_v58, %v8280_v53 }
 0x401   : > { %2077 = vmatprep.subr.mxu1 %v2035_v2  ;;  %4402 = vmatpush1.msk.msra.mxu0 %vm5105_vm5, %v8259_v45  ;;  %v6793_v0 = vpop.permute.xlu0 %2639  ;;  %v1992_v2 = vsel %vm548_vm1, %v1969_v37, %v6717_v56 }
 0x402   : > { %2078 = vmatpush1.msra.mxu1 %v2034_v57  ;;  %4403 = vmatprep.subr.msk.mxu0 %vm5081_vm4, %v8261_v39  ;;  %v8284_v57 = vld [vmem:[#allocation20_spill] sm:$0xff]  ;;  %v8285_v39 = vld [vmem:[#allocation26_spill] sm:$0xff] }
 0x403   : > { %2079 = vmatprep.subr.mxu1 %v2033_v14  ;;  %4404 = vmatpush1.msk.msra.mxu0 %vm5105_vm5, %v8264_v29  ;;  %v6810_v31 = vpop.permute.xlu1 %2615  ;;  %v2700_v1 = vsel %vm739_vm10, %v8285_v39, %v8284_v57  ;;  %v3210_v29 = vld [vmem:[%s8034_s2 + $0x10] sm:$0xff] }
 0x404   : > { %2080 = vmatpush1.msra.mxu1 %v2032_v12  ;;  %2473 = vrot.lane.b32.xlu0 %v6551_v27, %s4840_s17  ;;  %v1997_v27 = vsel %vm548_vm1, %v6544_v33, %v6473_v25  ;;  %v8273_v25 = vld [vmem:[#allocation71_spill] sm:$0xff]  ;;  %v2704_v33 = vsel %vm739_vm10, %v8276_v35, %v8275_v52  ;;  %v8289_v12 = vld [vmem:[#allocation48_spill] sm:$0xff] }
 0x405   : > { %2081 = vmatprep.subr.mxu1 %v1999_v60  ;;  %2753 = vmatprep.subr.mxu0 %v2708_v41  ;;  %v2638_v51 = vpop.permute.xlu0 %2637  ;;  %v1995_v43 = vsel %vm548_vm1, %v8274_v44, %v8273_v25  ;;  %v8291_v60 = vld [vmem:[#allocation27_spill] sm:$0xff]  ;;  %v4724_v25 = vunpack.i.h.bf16 %v6703_v11 }
 0x406   : > { %4405 = vmatmul.mubr.msk.f32.vlgmr.msra.gmra.mxu0 %vm589_vm0, %v1505_v38  ;;  %2082 = vmatpush1.msra.mxu1 %v1998_v54  ;;  %v8290_v38 = vld [vmem:[#allocation25_spill] sm:$0xff]  ;;  %v2697_v41 = vsel %vm739_vm10, %v8292_v34, %v8291_v60  ;;  %v8293_v54 = vld [vmem:[#allocation44_spill] sm:$0xff]  ;;  %v2693_v55 = vsel %vm739_vm10, %v2638_v51, %v6793_v0 }
 0x407   : > { %2754 = vmatpush1.msra.mxu0 %v2707_v62  ;;  %2083 = vmatprep.subr.mxu1 %v1997_v27  ;;  %v6836_v40 = vpop.permute.xlu1 %2531  ;;  %v2698_v10 = vsel %vm739_vm10, %v8291_v60, %v8290_v38  ;;  %v2696_v62 = vsel %vm739_vm10, %v6746_v20, %v6607_v3  ;;  %v8294_v27 = vld [vmem:[#allocation41_spill] sm:$0xff]  ;;  %v2694_v3 = vsel %vm739_vm10, %v6793_v0, %v6645_v8  ;;  %v8296_v20 = vld [vmem:[#allocation35_spill] sm:$0xff]  ;;  %v8298_v0 = vmov 0.0   ;;  %v4412_v38 = vld [vmem:[%s8035_s3 + $0x58] sm:$0xff] }
 0x408   : > { %2755 = vmatprep.subr.mxu0 %v2706_v24  ;;  %2084 = vmatpush1.msra.mxu1 %v1996_v7  ;;  %v4723_v24 = vunpack.i.l.bf16 %v6703_v11  ;;  %v3208_v7 = vld [vmem:[%s8034_s2] sm:$0xff] }
 0x409   : > { %2756 = vmatpush1.msra.mxu0 %v2705_v21  ;;  %3017 = vrot.lane.b32.xlu0 %v6573_v59, %s4840_s17  ;;  %v2636_v36 = vpop.permute.xlu0 %2635  ;;  %v1993_v59 = vsel %vm548_vm1, %v6717_v56, %v6590_v32  ;;  %v8282_v32 = vld [vmem:[#allocation88_spill] sm:$0xff]  ;;  %v8288_v56 = vld [vmem:[#allocation23_spill] sm:$0xff] }
 0x40a   : > { %2085 = vmatprep.subr.mxu1 %v1995_v43  ;;  %2757 = vmatprep.subr.mxu0 %v2704_v33  ;;  %v2699_v37 = vsel %vm739_vm10, %v8288_v56, %v8285_v39  ;;  %v8297_v8 = vld [vmem:[#allocation31_spill] sm:$0xff]  ;;  %v2692_v51 = vsel %vm739_vm10, %v6678_v26, %v2636_v36  ;;  %v2691_v11 = vsel %vm739_vm10, %v4723_v24, %v6678_v26  ;;  %v4391_v33 = vld [vmem:[%s8035_s3 + $0x30] sm:$0xff]  ;;  %v4410_v39 = vld [vmem:[%s8035_s3 + $0x48] sm:$0xff] }
 0x40b   : > { %2086 = vmatpush1.msra.mxu1 %v1994_v19  ;;  %2758 = vmatpush1.msra.mxu0 %v2703_v42  ;;  %v6861_v47 = vpop.permute.xlu1 %2529  ;;  %v4392_v19 = vld [vmem:[%s8035_s3 + $0x38] sm:$0xff]  ;;  %v4411_v56 = vld [vmem:[%s8035_s3 + $0x50] sm:$0xff] }
 0x40c   : > { %2087 = vmatprep.subr.mxu1 %v1993_v59  ;;  %2759 = vmatprep.subr.mxu0 %v2702_v30  ;;  %v1507_v30 = vld [vmem:[%s8035_s3 + $0x10] sm:$0xff] }
 0x40d   : > { %2088 = vmatpush1.msra.mxu1 %v1992_v2  ;;  %2760 = vmatpush1.msra.mxu0 %v2701_v46  ;;  %v2628_v45 = vpop.permute.xlu0 %2627  ;;  %v4409_v46 = vld [vmem:[%s8035_s3 + $0x40] sm:$0xff] }
 0x40e   : > { %3015 = vrot.lane.b32.xlu0 %v8282_v32, %s4840_s17  ;;  %4413 = vmatprep.subr.msk.mxu1 %vm5125_vm7, %v8283_v17  ;;  %v2690_v52 = vsel %vm739_vm10, %v2628_v45, %v6730_v63  ;;  %v2689_v4 = vsel %vm739_vm10, %v4724_v25, %v2628_v45  ;;  %v2543_v17 = vsel %vm589_vm0, %v6836_v40, %v6777_v18 }
 0x40f   : > { %2761 = vmatprep.subr.mxu0 %v2700_v1  ;;  %4414 = vmatpush1.msk.msra.mxu1 %vm5171_vm9, %v8286_v15  ;;  %v6885_v48 = vpop.permute.xlu1 %3077 }
 0x410   : > { %2762 = vmatpush1.msra.mxu0 %v2699_v37  ;;  %4415 = vmatprep.subr.msk.mxu1 %vm5125_vm7, %v8289_v12 }
 0x411   : > { %2763 = vmatprep.subr.mxu0 %v2698_v10  ;;  %4416 = vmatpush1.msk.msra.mxu1 %vm5171_vm9, %v8293_v54  ;;  %v2622_v6 = vpop.permute.xlu0 %2621  ;;  %v4439_v10 = vld [vmem:[%s8033_s1 + $0x30] sm:$0xff] }
 0x412   : > { %2764 = vmatpush1.msra.mxu0 %v2697_v41  ;;  %3224 = vperm.xlu0 %4608, %v3210_v29   ;;  %v2688_v35 = vsel %vm739_vm10, %v2622_v6, %v6756_v16  ;;  %v1506_v16 = vld [vmem:[%s8035_s3 + $0x8] sm:$0xff] }
 0x413   : > { %4417 = vmatprep.subr.msk.mxu1 %vm5125_vm7, %v8294_v27  ;;  %2765 = vmatprep.subr.mxu0 %v2696_v62  ;;  %v6908_v28 = vpop.permute.xlu1 %3073  ;;  %v4440_v62 = vld [vmem:[%s8033_s1 + $0x38] sm:$0xff] }
 0x414   : > { %4418 = vmatpush1.msk.msra.mxu1 %vm5171_vm9, %v8295_v23  ;;  %2766 = vmatpush1.msra.mxu0 %v2695_v5 }
 0x415   : > { %4419 = vmatprep.subr.msk.mxu1 %vm5125_vm7, %v8296_v20  ;;  %2767 = vmatprep.subr.mxu0 %v2694_v3  ;;  %v4727_v21 = vpop.permute.xlu0 %4726 }
 0x416   : > { %4420 = vmatpush1.msk.msra.mxu1 %vm5171_vm9, %v8297_v8  ;;  %2768 = vmatpush1.msra.mxu0 %v2693_v55  ;;  %v4728_v44 = vunpack.i.l.bf16 %v4727_v21  ;;  %v4729_v63 = vunpack.i.h.bf16 %v4727_v21 }
 0x417   : > { %3214 = vperm.xlu0 %4608, %v3208_v7   ;;  %1768 = vmatprep.mubr.f32.mxu1 %v8298_v0  ;;  %v6935_v43 = vpop.permute.xlu1 %2523 }
 0x418   : > { %2769 = vmatprep.subr.mxu0 %v2692_v51  ;;  %4394 = vmatmul.mubr.msk.f32.gmra.mxu1 %vm589_vm0, %v4390_v49  ;;  %v2687_v42 = vsel %vm739_vm10, %v4728_v44, %v2622_v6  ;;  %v2685_v58 = vsel %vm739_vm10, %v4729_v63, %v6810_v31 }
 0x419   : > { %2770 = vmatpush1.msra.mxu0 %v2691_v11  ;;  %1774 = vmatprep.mubr.f32.mxu1 %v8298_v0  ;;  %v2536_v36 = vpop.permute.xlu0 %2535 }
 0x41a   : > { %2771 = vmatprep.subr.mxu0 %v2690_v52  ;;  %1869 = vmatprep.mubr.f32.mxu0 %v8298_v0  ;;  %v2544_v26 = vsel %vm589_vm0, %v6777_v18, %v2536_v36  ;;  %v4437_v18 = vld [vmem:[%s8033_s1 + $0x20] sm:$0xff] }
 0x41b   : > { %2772 = vmatpush1.msra.mxu0 %v2689_v4  ;;  %v6953_v22 = vpop.permute.xlu1 %3071  ;;  %2854 = vmatprep.subr.mxu1 %v2544_v26 }
 0x41c   : > { %2773 = vmatprep.subr.mxu0 %v2688_v35  ;;  %4395 = vmatmul.mubr.msk.f32.gmra.mxu1 %vm589_vm0, %v4391_v33 }
 0x41d   : > { %1780 = vmatprep.mubr.f32.mxu1 %v8298_v0  ;;  %2774 = vmatpush1.msra.mxu0 %v2687_v42  ;;  %v2618_v59 = vpop.permute.xlu0 %2617 }
 0x41e   : > { %4406 = vmatmul.mubr.msk.f32.gmra.mxu0 %vm589_vm0, %v1506_v16  ;;  %v2686_v50 = vsel %vm739_vm10, %v6810_v31, %v2618_v59  ;;  %v1508_v31 = vld [vmem:[%s8035_s3 + $0x18] sm:$0xff]  ;;  %4731 = vrot.lane.b32.xlu1 %v8298_v0, %s4839_s12 }
 0x41f   : > { %v3068_v53 = vpop.permute.xlu1 %3067  ;;  %1875 = vmatprep.mubr.f32.mxu0 %v8298_v0  ;;  %2775 = vmatprep.subr.mxu0 %v2686_v50 }
 0x420   : > { %4396 = vmatmul.mubr.msk.f32.gmra.mxu1 %vm589_vm0, %v4392_v19  ;;  %2776 = vmatpush1.msra.mxu0 %v2685_v58 }
 0x421   : > { %2129 = vmatprep.mubr.f32.mxu1 %v8298_v0  ;;  %v2528_v2 = vpop.permute.xlu0 %2527  ;;  %4736 = vrot.lane.b32.xlu0 %v8298_v0, %s4839_s12 }
 0x422   : > { %4407 = vmatmul.mubr.msk.f32.gmra.mxu0 %vm589_vm0, %v1507_v30  ;;  %v2542_v32 = vsel %vm589_vm0, %v2528_v2, %v6861_v47  ;;  %4741 = vrot.lane.b32.xlu1 %v8298_v0, %s4841_s18 }
 0x423   : > { %v2518_v45 = vpop.permute.xlu1 %2517  ;;  %1881 = vmatprep.mubr.f32.mxu0 %v8298_v0 }
 0x424   : > { %4421 = vmatmul.mubr.msk.f32.vlgmr.msra.gmra.mxu1 %vm589_vm0, %v4409_v46 }
 0x425   : > { %2855 = vmatpush1.msra.mxu1 %v2543_v17  ;;  %v3076_v57 = vpop.permute.xlu0 %3075  ;;  %2135 = vmatprep.mubr.f32.mxu1 %v8298_v0 }
 0x426   : > { %2856 = vmatprep.subr.mxu1 %v2542_v32  ;;  %4408 = vmatmul.mubr.msk.f32.gmra.mxu0 %vm589_vm0, %v1508_v31  ;;  %v3086_v47 = vsel %vm589_vm0, %v3076_v57, %v6885_v48  ;;  %v3085_v40 = vsel %vm589_vm0, %v6908_v28, %v3076_v57  ;;  %v4438_v48 = vld [vmem:[%s8033_s1 + $0x28] sm:$0xff] }
 0x427   : > { %v3066_v1 = vpop.permute.xlu1 %3065  ;;  %2809 = vmatprep.mubr.f32.mxu0 %v8298_v0  ;;  %3119 = vmatprep.subr.mxu0 %v3086_v47 }
 0x428   : > { %4422 = vmatmul.mubr.msk.f32.gmra.mxu1 %vm589_vm0, %v4410_v39  ;;  %4746 = vrot.lane.b32.xlu0 %v8298_v0, %s4841_s18 }
 0x429   : > { %v2526_v15 = vpop.permute.xlu0 %2525  ;;  %2141 = vmatprep.mubr.f32.mxu1 %v8298_v0  ;;  %4751 = vrot.lane.b32.xlu1 %v8298_v0, %s4842_s19 }
 0x42a   : > { %4441 = vmatmul.mubr.msk.f32.vlgmr.msra.gmra.mxu0 %vm589_vm0, %v4437_v18  ;;  %v2541_v37 = vsel %vm589_vm0, %v2526_v15, %v2528_v2 }
 0x42b   : > { %3120 = vmatpush1.msra.mxu0 %v3085_v40  ;;  %v3062_v29 = vpop.permute.xlu1 %3061  ;;  %2857 = vmatpush1.msra.mxu1 %v2541_v37 }
 0x42c   : > { %4423 = vmatmul.mubr.msk.f32.gmra.mxu1 %vm589_vm0, %v4411_v56  ;;  %2815 = vmatprep.mubr.f32.mxu0 %v8298_v0 }
 0x42d   : > { %v2522_v12 = vpop.permute.xlu0 %2521  ;;  %2147 = vmatprep.mubr.f32.mxu1 %v8298_v0  ;;  %4756 = vrot.lane.b32.xlu0 %v8298_v0, %s4841_s18 }
 0x42e   : > { %v2540_v60 = vsel %vm589_vm0, %v2522_v12, %v6935_v43  ;;  %4442 = vmatmul.mubr.msk.f32.gmra.mxu0 %vm589_vm0, %v4438_v48  ;;  %v8300_v48 = vld [vmem:[#allocation66_spill] sm:$0xff]  ;;  %4761 = vrot.lane.b32.xlu1 %v8298_v0, %s4842_s19 }
 0x42f   : > { %2858 = vmatprep.subr.mxu1 %v2540_v60  ;;  %2821 = vmatprep.mubr.f32.mxu0 %v8298_v0  ;;  %v2496_v34 = vpop.permute.xlu1 %2495  ;;  %v8301_v60 = vld [vmem:[#allocation75_spill] sm:$0xff] }
 0x430   : > { %4424 = vmatmul.mubr.msk.f32.gmra.mxu1 %vm589_vm0, %v4412_v38 }
 0x431   : > { %v3070_v41 = vpop.permute.xlu0 %3069  ;;  %2910 = vmatprep.mubr.f32.mxu1 %v8298_v0  ;;  %4766 = vrot.lane.b32.xlu0 %v8298_v0, %s4841_s18 }
 0x432   : > { %v3084_v54 = vsel %vm589_vm0, %v3070_v41, %v6953_v22  ;;  %v3083_v6 = vsel %vm589_vm0, %v3068_v53, %v3070_v41  ;;  %4443 = vmatmul.mubr.msk.f32.gmra.mxu0 %vm589_vm0, %v4439_v10  ;;  %v8302_v10 = vld [vmem:[#allocation79_spill] sm:$0xff]  ;;  %v8303_v41 = vld [vmem:[#allocation82_spill] sm:$0xff]  ;;  %4771 = vrot.lane.b32.xlu1 %v8298_v0, %s4842_s19 }
 0x433   : > { %3121 = vmatprep.subr.mxu0 %v3084_v54  ;;  %2827 = vmatprep.mubr.f32.mxu0 %v8298_v0  ;;  %v3060_v5 = vpop.permute.xlu1 %3059  ;;  %v8304_v54 = vld [vmem:[#allocation85_spill] sm:$0xff] }
 0x434   : > { %3122 = vmatpush1.msra.mxu0 %v3083_v6  ;;  %v2553_v6 = vld [vmem:[%s8033_s1] sm:$0xff] }
 0x435   : > { %v2520_v27 = vpop.permute.xlu0 %2519  ;;  %4776 = vrot.lane.b32.xlu0 %v8298_v0, %s4842_s19 }
 0x436   : > { %v2539_v28 = vsel %vm589_vm0, %v2520_v27, %v2522_v12  ;;  %4444 = vmatmul.mubr.msk.f32.gmra.mxu0 %vm589_vm0, %v4440_v62  ;;  %v8305_v62 = vld [vmem:[#allocation87_spill] sm:$0xff]  ;;  %4781 = vrot.lane.b32.xlu1 %v8298_v0, %s4843_s20 }
 0x437   : > { %2859 = vmatpush1.msra.mxu1 %v2539_v28  ;;  %3175 = vmatprep.mubr.f32.mxu0 %v8298_v0  ;;  %v3056_v3 = vpop.permute.xlu1 %3055 }
 0x439   : > { %v2516_v24 = vpop.permute.xlu0 %2515  ;;  %4786 = vrot.lane.b32.xlu0 %v8298_v0, %s4843_s20 }
 0x43a   : > { %v2538_v23 = vsel %vm589_vm0, %v2516_v24, %v2518_v45 }
 0x43b   : > { %2860 = vmatprep.subr.mxu1 %v2538_v23  ;;  %v2490_v21 = vpop.permute.xlu1 %2489  ;;  %v8307_v23 = vld [vmem:[#allocation77_spill] sm:$0xff] }
 0x43d   : > { %v3064_v7 = vpop.permute.xlu0 %3063 }
 0x43e   : > { %v3082_v55 = vsel %vm589_vm0, %v3064_v7, %v3066_v1  ;;  %v3081_v20 = vsel %vm589_vm0, %v3062_v29, %v3064_v7  ;;  %v8299_v29 = vld [vmem:[#allocation63_spill] sm:$0xff]  ;;  %v8309_v7 = vld [vmem:[#allocation84_spill] sm:$0xff] }
 0x43f   : > { %3123 = vmatprep.subr.mxu0 %v3082_v55  ;;  %v3038_v51 = vpop.permute.xlu1 %3037  ;;  %v8310_v55 = vld [vmem:[#allocation74_spill] sm:$0xff] }
 0x440   : > { %3124 = vmatpush1.msra.mxu0 %v3081_v20  ;;  %v2555_v20 = vld [vmem:[%s8033_s1 + $0x10] sm:$0xff] }
 0x441   : > { %v2514_v49 = vpop.permute.xlu0 %2513 }
 0x442   : > { %v2537_v25 = vsel %vm589_vm0, %v2514_v49, %v2516_v24  ;;  %v2554_v24 = vld [vmem:[%s8033_s1 + $0x8] sm:$0xff]  ;;  %v8311_v49 = vld [vmem:[#allocation89_spill] sm:$0xff] }
 0x443   : > { %2861 = vmatpush1.msra.mxu1 %v2537_v25  ;;  %v3034_v33 = vpop.permute.xlu1 %3033  ;;  %v4457_v25 = vld [vmem:[%s8033_s1 + $0x40] sm:$0xff] }
 0x445   : > { %v2494_v8 = vpop.permute.xlu0 %2493 }
 0x446   : > { %v2504_v44 = vsel %vm548_vm1, %v2494_v8, %v2496_v34 }
 0x447   : > { %2862 = vmatprep.subr.mxu1 %v2504_v44  ;;  %v2484_v26 = vpop.permute.xlu1 %2483  ;;  %v8314_v44 = vld [vmem:[#allocation86_spill] sm:$0xff] }
 0x449   : > { %v3058_v43 = vpop.permute.xlu0 %3057 }
 0x44a   : > { %v3080_v11 = vsel %vm589_vm0, %v3058_v43, %v3060_v5  ;;  %v3079_v52 = vsel %vm589_vm0, %v3056_v3, %v3058_v43  ;;  %v8306_v5 = vld [vmem:[#allocation90_spill] sm:$0xff]  ;;  %v4458_v43 = vld [vmem:[%s8033_s1 + $0x48] sm:$0xff] }
 0x44b   : > { %3125 = vmatprep.subr.mxu0 %v3080_v11  ;;  %v3032_v59 = vpop.permute.xlu1 %3031  ;;  %v8308_v3 = vld [vmem:[#allocation70_spill] sm:$0xff]  ;;  %v4459_v11 = vld [vmem:[%s8033_s1 + $0x50] sm:$0xff] }
 0x44c   : > { %3126 = vmatpush1.msra.mxu0 %v3079_v52  ;;  %v4460_v52 = vld [vmem:[%s8033_s1 + $0x58] sm:$0xff] }
 0x44d   : > { %v2492_v35 = vpop.permute.xlu0 %2491 }
 0x44e   : > { %v2503_v36 = vsel %vm548_vm1, %v2492_v35, %v2494_v8  ;;  %v8313_v8 = vld [vmem:[#allocation91_spill] sm:$0xff] }
 0x44f   : > { %2863 = vmatpush1.msra.mxu1 %v2503_v36  ;;  %v3028_v58 = vpop.permute.xlu1 %3027 }
 0x451   : > { %v2488_v4 = vpop.permute.xlu0 %2487 }
 0x452   : > { %v2502_v42 = vsel %vm548_vm1, %v2488_v4, %v2490_v21  ;;  %v8312_v21 = vld [vmem:[#allocation81_spill] sm:$0xff] }
 0x453   : > { %2864 = vmatprep.subr.mxu1 %v2502_v42  ;;  %v2478_v32 = vpop.permute.xlu1 %2477 }
 0x455   : > { %v3036_v63 = vpop.permute.xlu0 %3035 }
 0x456   : > { %v3046_v22 = vsel %vm548_vm1, %v3036_v63, %v3038_v51  ;;  %v3045_v16 = vsel %vm548_vm1, %v3034_v33, %v3036_v63  ;;  %v2556_v51 = vld [vmem:[%s8033_s1 + $0x18] sm:$0xff] }
 0x457   : > { %3127 = vmatprep.subr.mxu0 %v3046_v22  ;;  %v3026_v57 = vpop.permute.xlu1 %3025 }
 0x458   : > { %3128 = vmatpush1.msra.mxu0 %v3045_v16 }
 0x459   : > { %v2486_v19 = vpop.permute.xlu0 %2485 }
 0x45a   : > { %v2501_v50 = vsel %vm548_vm1, %v2486_v19, %v2488_v4 }
 0x45b   : > { %2865 = vmatpush1.msra.mxu1 %v2501_v50  ;;  %v3022_v1 = vpop.permute.xlu1 %3021 }
 0x45e   : > { %v2482_v53 = vpop.permute.xlu0 %2481 }
 0x45f   : > { %v2500_v30 = vsel %vm548_vm1, %v2482_v53, %v2484_v26 }
 0x460   : > { %2866 = vmatprep.subr.mxu1 %v2500_v30  ;;  %v3020_v12 = vpop.permute.xlu1 %3019 }
 0x463   : > { %v3030_v46 = vpop.permute.xlu0 %3029 }
 0x464   : > { %v3044_v2 = vsel %vm548_vm1, %v3030_v46, %v3032_v59  ;;  %v3043_v45 = vsel %vm548_vm1, %v3028_v58, %v3030_v46 }
 0x465   : > { %3129 = vmatprep.subr.mxu0 %v3044_v2 }
 0x466   : > { %3130 = vmatpush1.msra.mxu0 %v3043_v45 }
 0x468   : > { %v2480_v31 = vpop.permute.xlu0 %2479 }
 0x469   : > { %v2499_v17 = vsel %vm548_vm1, %v2480_v31, %v2482_v53 }
 0x46a   : > { %2867 = vmatpush1.msra.mxu1 %v2499_v17 }
 0x46d   : > { %v2476_v39 = vpop.permute.xlu0 %2475 }
 0x46e   : > { %v2498_v47 = vsel %vm548_vm1, %v2476_v39, %v2478_v32 }
 0x46f   : > { %2868 = vmatprep.subr.mxu1 %v2498_v47 }
 0x472   : > { %v3024_v18 = vpop.permute.xlu0 %3023 }
 0x473   : > { %v3042_v40 = vsel %vm548_vm1, %v3024_v18, %v3026_v57  ;;  %v3041_v15 = vsel %vm548_vm1, %v3022_v1, %v3024_v18 }
 0x474   : > { %3131 = vmatprep.subr.mxu0 %v3042_v40 }
 0x475   : > { %3132 = vmatpush1.msra.mxu0 %v3041_v15 }
 0x476   : > { %v2474_v56 = vpop.permute.xlu0 %2473 }
 0x477   : > { %v2497_v37 = vsel %vm548_vm1, %v2474_v56, %v2476_v39 }
 0x478   : > { %2869 = vmatpush1.msra.mxu1 %v2497_v37 }
 0x479   : > { %4445 = vmatprep.subr.msk.mxu1 %vm5081_vm4, %v8299_v29 }
 0x47a   : > { %4446 = vmatpush1.msk.msra.mxu1 %vm5105_vm5, %v8300_v48 }
 0x47b   : > { %v3018_v38 = vpop.permute.xlu0 %3017  ;;  %4447 = vmatprep.subr.msk.mxu1 %vm5081_vm4, %v8301_v60 }
 0x47c   : > { %4448 = vmatpush1.msk.msra.mxu1 %vm5105_vm5, %v8302_v10  ;;  %v3040_v34 = vsel %vm548_vm1, %v3018_v38, %v3020_v12 }
 0x47d   : > { %3133 = vmatprep.subr.mxu0 %v3040_v34  ;;  %4449 = vmatprep.subr.msk.mxu1 %vm5081_vm4, %v8303_v41 }
 0x47e   : > { %4450 = vmatpush1.msk.msra.mxu1 %vm5105_vm5, %v8304_v54 }
 0x47f   : > { %4451 = vmatprep.subr.msk.mxu1 %vm5081_vm4, %v8305_v62 }
 0x480   : > { %v3016_v27 = vpop.permute.xlu0 %3015  ;;  %4452 = vmatpush1.msk.msra.mxu1 %vm5105_vm5, %v8306_v5 }
 0x481   : > { %v3039_v28 = vsel %vm548_vm1, %v3016_v27, %v3018_v38  ;;  %4453 = vmatmul.mubr.msk.f32.vlgmr.msra.gmra.mxu1 %vm589_vm0, %v2553_v6 }
 0x482   : > { %3134 = vmatpush1.msra.mxu0 %v3039_v28  ;;  %2916 = vmatprep.mubr.f32.mxu1 %v8298_v0 }
 0x483   : > { %4461 = vmatprep.subr.msk.mxu0 %vm5125_vm7, %v8307_v23 }
 0x484   : > { %4462 = vmatpush1.msk.msra.mxu0 %vm5171_vm9, %v8308_v3 }
 0x485   : > { %4463 = vmatprep.subr.msk.mxu0 %vm5125_vm7, %v8309_v7  ;;  %4454 = vmatmul.mubr.msk.f32.gmra.mxu1 %vm589_vm0, %v2554_v24 }
 0x486   : > { %4464 = vmatpush1.msk.msra.mxu0 %vm5171_vm9, %v8310_v55  ;;  %2922 = vmatprep.mubr.f32.mxu1 %v8298_v0 }
 0x487   : > { %4465 = vmatprep.subr.msk.mxu0 %vm5125_vm7, %v8311_v49 }
 0x488   : > { %4466 = vmatpush1.msk.msra.mxu0 %vm5171_vm9, %v8312_v21 }
 0x489   : > { %4467 = vmatprep.subr.msk.mxu0 %vm5125_vm7, %v8313_v8  ;;  %4455 = vmatmul.mubr.msk.f32.gmra.mxu1 %vm589_vm0, %v2555_v20 }
 0x48a   : > { %4468 = vmatpush1.msk.msra.mxu0 %vm5171_vm9, %v8314_v44  ;;  %2928 = vmatprep.mubr.f32.mxu1 %v8298_v0 }
 0x48b   : > { %4469 = vmatmul.mubr.msk.f32.vlgmr.msra.gmra.mxu0 %vm589_vm0, %v4457_v25 }
 0x48c   : > { %3181 = vmatprep.mubr.f32.mxu0 %v8298_v0 }
 0x48d   : > { %4456 = vmatmul.mubr.msk.f32.gmra.mxu1 %vm589_vm0, %v2556_v51  ;;  %v3225_v3 = vpop.permute.xlu0 %3224 }
 0x48e   : > { %3704 = vmatprep.mubr.f32.mxu1 %v8298_v0 }
 0x48f   : > { %4470 = vmatmul.mubr.msk.f32.gmra.mxu0 %vm589_vm0, %v4458_v43 }
 0x490   : > { %3187 = vmatprep.mubr.f32.mxu0 %v8298_v0 }
 0x492   : > { %v3215_v8 = vpop.permute.xlu0 %3214 }
 0x493   : > { %4471 = vmatmul.mubr.msk.f32.gmra.mxu0 %vm589_vm0, %v4459_v11 }
 0x494   : > { %3193 = vmatprep.mubr.f32.mxu0 %v8298_v0 }
 0x497   : > { %4472 = vmatmul.mubr.msk.f32.gmra.mxu0 %vm589_vm0, %v4460_v52 }
 0x498   : > { %3805 = vmatprep.mubr.f32.mxu0 %v8298_v0 }
 0x4bc   : > { %v1764_v35 = vpop.f32.mrf.mxu1 }
 0x4be   : > { %v1766_v4 = vpop.f32.mrf.mxu1 }
 0x4c6   : > { %v1865_v33 = vpop.f32.mrf.mxu0 }
 0x4c7   : > { %v1866_v36 = vadd.f32 %v1865_v33, %v1764_v35 }
 0x4c8   : > { %v1867_v42 = vpop.f32.mrf.mxu0 }
 0x4c9   : > { %v1868_v26 = vadd.f32 %v1867_v42, %v1766_v4  ;;  %v3230_v4 = vpop.permute.xlu1 %3229 }
 0x4d8   : > { %v1770_v63 = vpop.f32.mrf.mxu1 }
 0x4da   : > { %v1772_v22 = vpop.f32.mrf.mxu1 }
 0x4dc   : > { %v1776_v16 = vpop.f32.mrf.mxu1 }
 0x4de   : > { %v1778_v19 = vpop.f32.mrf.mxu1  ;;  %v1871_v59 = vpop.f32.mrf.mxu0 }
 0x4df   : > { %v1872_v50 = vadd.f32 %v1871_v59, %v1770_v63 }
 0x4e0   : > { %v1782_v53 = vpop.f32.mrf.mxu1  ;;  %v1873_v30 = vpop.f32.mrf.mxu0 }
 0x4e1   : > { %v1874_v58 = vadd.f32 %v1873_v30, %v1772_v22  ;;  %v3220_v22 = vpop.permute.xlu1 %3219 }
 0x4e2   : > { %v1784_v46 = vpop.f32.mrf.mxu1  ;;  %v1877_v2 = vpop.f32.mrf.mxu0 }
 0x4e3   : > { %v1878_v45 = vadd.f32 %v1877_v2, %v1776_v16 }
 0x4e4   : > { %v2131_v32 = vpop.f32.mrf.mxu1  ;;  %v1879_v31 = vpop.f32.mrf.mxu0 }
 0x4e5   : > { %v7171_v17 = vadd.f32 %v2131_v32, %v1866_v36  ;;  %v1880_v57 = vadd.f32 %v1879_v31, %v1778_v19 }
 0x4e6   : > { %v2133_v39 = vpop.f32.mrf.mxu1  ;;  %v1883_v47 = vpop.f32.mrf.mxu0 }
 0x4e7   : > { %8315 = vst [vmem:[#allocation57_spill] sm:$0xff] %v7171_v17  ;;  %v7173_v1 = vadd.f32 %v2133_v39, %v1868_v26  ;;  %v1884_v18 = vadd.f32 %v1883_v47, %v1782_v53 }
 0x4e8   : > { %v2137_v40 = vpop.f32.mrf.mxu1  ;;  %v1885_v15 = vpop.f32.mrf.mxu0 }
 0x4e9   : > { %8316 = vst [vmem:[#allocation9_spill] sm:$0xff] %v7173_v1  ;;  %v7175_v56 = vadd.f32 %v2137_v40, %v1872_v50  ;;  %v7177_v37 = vadd.f32 %v1885_v15, %v1784_v46 }
 0x4ea   : > { %v2139_v29 = vpop.f32.mrf.mxu1  ;;  %v2811_v54 = vpop.f32.mrf.mxu0 }
 0x4eb   : > { %8317 = vst [vmem:[#allocation51_spill] sm:$0xff] %v7175_v56  ;;  %8318 = vst [vmem:[#allocation53_spill] sm:$0xff] %v7177_v37  ;;  %v7179_v48 = vadd.f32 %v2139_v29, %v1874_v58 }
 0x4ec   : > { %v2143_v12 = vpop.f32.mrf.mxu1  ;;  %v2813_v6 = vpop.f32.mrf.mxu0 }
 0x4ed   : > { %8319 = vst [vmem:[#allocation49_spill] sm:$0xff] %v7179_v48  ;;  %v7181_v38 = vadd.f32 %v2143_v12, %v1878_v45 }
 0x4ee   : > { %v2145_v60 = vpop.f32.mrf.mxu1  ;;  %v2817_v62 = vpop.f32.mrf.mxu0 }
 0x4ef   : > { %8320 = vst [vmem:[#allocation45_spill] sm:$0xff] %v7181_v38  ;;  %v7183_v10 = vadd.f32 %v2145_v60, %v1880_v57 }
 0x4f0   : > { %v2149_v34 = vpop.f32.mrf.mxu1  ;;  %v2819_v27 = vpop.f32.mrf.mxu0 }
 0x4f1   : > { %8321 = vst [vmem:[#allocation42_spill] sm:$0xff] %v7183_v10  ;;  %v7185_v41 = vadd.f32 %v2149_v34, %v1884_v18 }
 0x4f2   : > { %v2823_v5 = vpop.f32.mrf.mxu0  ;;  %v7187_v24 = vpop.f32.mrf.mxu1 }
 0x4f3   : > { %8322 = vst [vmem:[#allocation39_spill] sm:$0xff] %v7185_v41  ;;  %8323 = vst [vmem:[#allocation83_spill] sm:$0xff] %v7187_v24 }
 0x4f4   : > { %v2825_v28 = vpop.f32.mrf.mxu0 }
 0x4f6   : > { %v7189_v23 = vpop.f32.mrf.mxu0 }
 0x4f8   : > { %v7191_v55 = vpop.f32.mrf.mxu0 }
 0x541   : > { %v2912_v7 = vpop.f32.mrf.mxu1 }
 0x542   : > { %v2913_v20 = vadd.f32 %v2912_v7, %v2811_v54 }
 0x543   : > { %v2914_v49 = vpop.f32.mrf.mxu1 }
 0x544   : > { %v2915_v51 = vadd.f32 %v2914_v49, %v2813_v6  ;;  %v7237_v49 = vpop.permute.xlu0 %4736 }
 0x545   : > { %v2918_v33 = vpop.f32.mrf.mxu1 }
 0x546   : > { %v2919_v26 = vadd.f32 %v2918_v33, %v2817_v62 }
 0x547   : > { %v2920_v16 = vpop.f32.mrf.mxu1 }
 0x548   : > { %v2921_v50 = vadd.f32 %v2920_v16, %v2819_v27 }
 0x549   : > { %v2924_v46 = vpop.f32.mrf.mxu1 }
 0x54a   : > { %v2925_v32 = vadd.f32 %v2924_v46, %v2823_v5 }
 0x54b   : > { %v3177_v21 = vpop.f32.mrf.mxu0  ;;  %v2926_v57 = vpop.f32.mrf.mxu1 }
 0x54c   : > { %v3200_v25 = vadd.f32 %v3177_v21, %v2913_v20  ;;  %v2927_v18 = vadd.f32 %v2926_v57, %v2825_v28 }
 0x54d   : > { %v3179_v44 = vpop.f32.mrf.mxu0  ;;  %v2930_v29 = vpop.f32.mrf.mxu1 }
 0x54e   : > { %v3232_v43 = vadd.f32 %v3215_v8, %v3200_v25  ;;  %v3201_v52 = vadd.f32 %v3179_v44, %v2915_v51  ;;  %v2931_v62 = vadd.f32 %v2930_v29, %v7189_v23  ;;  %v7241_v25 = vpop.permute.xlu0 %4746 }
 0x54f   : > { %v3183_v42 = vpop.f32.mrf.mxu0  ;;  %v2932_v34 = vpop.f32.mrf.mxu1  ;;  %v4748_v41 = vunpack.i.l.bf16 %v7241_v25 }
 0x550   : > { %v3240_v11 = vmax.f32 %v3232_v43, 0.0  ;;  %v3233_v35 = vadd.f32 %v3215_v8, %v3201_v52  ;;  %v3202_v63 = vadd.f32 %v3183_v42, %v2919_v26  ;;  %v2933_v27 = vadd.f32 %v2932_v34, %v7191_v55  ;;  %v7235_v55 = vpop.permute.xlu1 %4731 }
 0x551   : > { %v3185_v59 = vpop.f32.mrf.mxu0 }
 0x552   : > { %3290 = vrot.lane.b32.xlu0 %v3240_v11, %s4841_s18  ;;  %3472 = vrot.lane.b32.xlu1 %v3240_v11, %s4839_s12  ;;  %v3241_v36 = vmax.f32 %v3233_v35, 0.0  ;;  %v3234_v19 = vadd.f32 %v3220_v22, %v3202_v63  ;;  %v3203_v30 = vadd.f32 %v3185_v59, %v2921_v50  ;;  %v7245_v44 = vpop.permute.xlu0 %4756 }
 0x553   : > { %v3189_v45 = vpop.f32.mrf.mxu0 }
 0x554   : > { %v3242_v53 = vmax.f32 %v3234_v19, 0.0  ;;  %v3235_v58 = vadd.f32 %v3220_v22, %v3203_v30  ;;  %v3204_v31 = vadd.f32 %v3189_v45, %v2925_v32  ;;  %v7239_v21 = vpop.permute.xlu1 %4741 }
 0x555   : > { %v3191_v47 = vpop.f32.mrf.mxu0 }
 0x556   : > { %3832 = vrot.lane.b32.xlu0 %v3240_v11, %s4842_s19  ;;  %3452 = vrot.lane.b32.xlu1 %v3240_v11, %s4840_s17  ;;  %v3243_v2 = vmax.f32 %v3235_v58, 0.0  ;;  %v3236_v39 = vadd.f32 %v3225_v3, %v3204_v31  ;;  %v3205_v15 = vadd.f32 %v3191_v47, %v2927_v18  ;;  %v4767_v43 = vpop.permute.xlu0 %4766 }
 0x557   : > { %v3195_v60 = vpop.f32.mrf.mxu0  ;;  %v4769_v42 = vunpack.i.h.bf16 %v4767_v43 }
 0x558   : > { %v3244_v40 = vmax.f32 %v3236_v39, 0.0  ;;  %v3237_v12 = vadd.f32 %v3225_v3, %v3205_v15  ;;  %v3206_v5 = vadd.f32 %v3195_v60, %v2931_v62  ;;  %v7243_v8 = vpop.permute.xlu1 %4751  ;;  %v4739_v39 = vunpack.i.h.bf16 %v7237_v49 }
 0x559   : > { %v3197_v6 = vpop.f32.mrf.mxu0 }
 0x55a   : > { %3510 = vrot.lane.b32.xlu1 %v3240_v11, %s4843_s20  ;;  %3474 = vrot.lane.b32.xlu0 %v3241_v36, %s4839_s12  ;;  %v3245_v54 = vmax.f32 %v3237_v12, 0.0  ;;  %v3207_v28 = vadd.f32 %v3197_v6, %v2933_v27  ;;  %v3238_v3 = vadd.f32 %v3230_v4, %v3206_v5  ;;  %v4777_v52 = vpop.permute.xlu0 %4776  ;;  %v4759_v5 = vunpack.i.h.bf16 %v7245_v44 }
 0x55b   : > { %v4779_v50 = vunpack.i.h.bf16 %v4777_v52 }
 0x55c   : > { %v3239_v7 = vadd.f32 %v3230_v4, %v3207_v28  ;;  %v3246_v20 = vmax.f32 %v3238_v3, 0.0  ;;  %v7247_v51 = vpop.permute.xlu1 %4761  ;;  %v4778_v28 = vunpack.i.l.bf16 %v4777_v52 }
 0x55e   : > { %3292 = vrot.lane.b32.xlu1 %v3241_v36, %s4841_s18  ;;  %3454 = vrot.lane.b32.xlu0 %v3241_v36, %s4840_s17  ;;  %v3247_v23 = vmax.f32 %v3239_v7, 0.0  ;;  %v7253_v33 = vpop.permute.xlu0 %4786 }
 0x560   : > { %v7249_v11 = vpop.permute.xlu1 %4771 }
 0x562   : > { %3834 = vrot.lane.b32.xlu1 %v3241_v36, %s4842_s19  ;;  %3512 = vrot.lane.b32.xlu0 %v3241_v36, %s4843_s20 }
 0x564   : > { %v7251_v35 = vpop.permute.xlu1 %4781 }
 0x566   : > { %3456 = vrot.lane.b32.xlu1 %v3242_v53, %s4840_s17  ;;  %3478 = vrot.lane.b32.xlu0 %v3242_v53, %s4839_s12 }
 0x56a   : > { %3840 = vrot.lane.b32.xlu1 %v3242_v53, %s4842_s19  ;;  %3298 = vrot.lane.b32.xlu0 %v3242_v53, %s4841_s18 }
 0x56e   : > { %3516 = vrot.lane.b32.xlu0 %v3242_v53, %s4843_s20  ;;  %3480 = vrot.lane.b32.xlu1 %v3243_v2, %s4839_s12 }
 0x572   : > { %3458 = vrot.lane.b32.xlu0 %v3243_v2, %s4840_s17  ;;  %3300 = vrot.lane.b32.xlu1 %v3243_v2, %s4841_s18 }
 0x576   : > { %3842 = vrot.lane.b32.xlu0 %v3243_v2, %s4842_s19  ;;  %3518 = vrot.lane.b32.xlu1 %v3243_v2, %s4843_s20 }
 0x57a   : > { %3460 = vrot.lane.b32.xlu1 %v3244_v40, %s4840_s17  ;;  %3484 = vrot.lane.b32.xlu0 %v3244_v40, %s4839_s12 }
 0x57e   : > { %3848 = vrot.lane.b32.xlu1 %v3244_v40, %s4842_s19  ;;  %3306 = vrot.lane.b32.xlu0 %v3244_v40, %s4841_s18 }
 0x582   : > { %3522 = vrot.lane.b32.xlu0 %v3244_v40, %s4843_s20  ;;  %3486 = vrot.lane.b32.xlu1 %v3245_v54, %s4839_s12 }
 0x586   : > { %3462 = vrot.lane.b32.xlu0 %v3245_v54, %s4840_s17  ;;  %3308 = vrot.lane.b32.xlu1 %v3245_v54, %s4841_s18 }
 0x58a   : > { %3850 = vrot.lane.b32.xlu0 %v3245_v54, %s4842_s19  ;;  %3524 = vrot.lane.b32.xlu1 %v3245_v54, %s4843_s20  ;;  %v4768_v54 = vunpack.i.l.bf16 %v4767_v43 }
 0x58e   : > { %3490 = vrot.lane.b32.xlu1 %v3246_v20, %s4839_s12  ;;  %3492 = vrot.lane.b32.xlu0 %v3247_v23, %s4839_s12 }
 0x592   : > { %3464 = vrot.lane.b32.xlu1 %v3246_v20, %s4840_s17  ;;  %3466 = vrot.lane.b32.xlu0 %v3247_v23, %s4840_s17 }
 0x596   : > { %3314 = vrot.lane.b32.xlu1 %v3246_v20, %s4841_s18  ;;  %3316 = vrot.lane.b32.xlu0 %v3247_v23, %s4841_s18 }
 0x59a   : > { %3856 = vrot.lane.b32.xlu1 %v3246_v20, %s4842_s19  ;;  %3858 = vrot.lane.b32.xlu0 %v3247_v23, %s4842_s19 }
 0x59e   : > { %3528 = vrot.lane.b32.xlu1 %v3246_v20, %s4843_s20  ;;  %3530 = vrot.lane.b32.xlu0 %v3247_v23, %s4843_s20  ;;  %v4753_v20 = vunpack.i.l.bf16 %v7243_v8 }
 0x5c4   : > { %v3291_v36 = vpop.permute.xlu0 %3290  ;;  %v3473_v4 = vpop.permute.xlu1 %3472 }
 0x5c5   : > { %3556 = vrot.lane.b32.xlu0 %v3473_v4, %s4843_s20  ;;  %v7257_v22 = vsel %vm475_vm2, %v4769_v42, %v3291_v36  ;;  %v2163_v42 = vld [vmem:[%s8036_s4 + $0x8] sm:$0xff] }
 0x5c6   : > { %8324 = vst [vmem:[#allocation17_spill] sm:$0xff] %v7257_v22  ;;  %v7265_v59 = vsel %vm5105_vm5, %v7257_v22, 0.0 }
 0x5c8   : > { %v3833_v26 = vpop.permute.xlu0 %3832  ;;  %v3453_v63 = vpop.permute.xlu1 %3452 }
 0x5c9   : > { %3532 = vrot.lane.b32.xlu0 %v3453_v63, %s4843_s20  ;;  %v7271_v46 = vsel %vm1022_vm6, %v4779_v50, %v3833_v26 }
 0x5ca   : > { %8325 = vst [vmem:[#allocation76_spill] sm:$0xff] %v7271_v46  ;;  %v7280_v32 = vsel %vm5171_vm9, %v7271_v46, 0.0 }
 0x5cc   : > { %v7260_v16 = vpop.permute.xlu1 %3510  ;;  %v3475_v19 = vpop.permute.xlu0 %3474 }
 0x5cd   : > { %3408 = vrot.lane.b32.xlu0 %v7265_v59, %s4839_s12  ;;  %v3496_v58 = vsel %vm589_vm0, %v3473_v4, %v3475_v19  ;;  %v3497_v40 = vsel %vm589_vm0, %v3475_v19, %v4739_v39  ;;  %v4774_v4 = vunpack.i.h.bf16 %v7249_v11  ;;  %v4738_v19 = vunpack.i.l.bf16 %v7237_v49 }
 0x5ce   : > { %v4758_v49 = vunpack.i.l.bf16 %v7245_v44 }
 0x5d0   : > { %v3293_v53 = vpop.permute.xlu1 %3292  ;;  %v3455_v30 = vpop.permute.xlu0 %3454 }
 0x5d1   : > { %3536 = vrot.lane.b32.xlu1 %v3455_v30, %s4843_s20  ;;  %3558 = vrot.lane.b32.xlu0 %v3496_v58, %s4843_s20  ;;  %v3468_v31 = vsel %vm548_vm1, %v3453_v63, %v3455_v30  ;;  %v7284_v57 = vsel %vm475_vm2, %v3291_v36, %v3293_v53  ;;  %v3322_v27 = vsel %vm475_vm2, %v3293_v53, %v4768_v54 }
 0x5d2   : > { %8326 = vst [vmem:[#allocation37_spill] sm:$0xff] %v7284_v57  ;;  %v7294_v15 = vsel %vm5081_vm4, %v7284_v57, 0.0  ;;  %v7317_v23 = vsel %vm5072_vm3, %v3322_v27, 0.0 }
 0x5d4   : > { %v3835_v2 = vpop.permute.xlu1 %3834  ;;  %v7275_v45 = vpop.permute.xlu0 %3512 }
 0x5d5   : > { %3950 = vrot.lane.b32.xlu1 %v7280_v32, %s4839_s12  ;;  %3534 = vrot.lane.b32.xlu0 %v3468_v31, %s4843_s20  ;;  %v7297_v29 = vsel %vm1022_vm6, %v3833_v26, %v3835_v2  ;;  %v3864_v36 = vsel %vm1022_vm6, %v3835_v2, %v4778_v28 }
 0x5d6   : > { %8327 = vst [vmem:[#allocation34_spill] sm:$0xff] %v7297_v29  ;;  %v7305_v34 = vsel %vm5125_vm7, %v7297_v29, 0.0  ;;  %v7329_v52 = vsel %vm5150_vm8, %v3864_v36, 0.0  ;;  %v4749_v36 = vunpack.i.h.bf16 %v7241_v25 }
 0x5d8   : > { %v3457_v47 = vpop.permute.xlu1 %3456  ;;  %v3479_v18 = vpop.permute.xlu0 %3478 }
 0x5d9   : > { %3560 = vrot.lane.b32.xlu1 %v3497_v40, %s4843_s20  ;;  %3410 = vrot.lane.b32.xlu0 %v7294_v15, %s4839_s12 }
 0x5dc   : > { %v3841_v12 = vpop.permute.xlu1 %3840  ;;  %v3299_v60 = vpop.permute.xlu0 %3298 }
 0x5dd   : > { %3562 = vrot.lane.b32.xlu1 %v3479_v18, %s4843_s20  ;;  %3952 = vrot.lane.b32.xlu0 %v7305_v34, %s4839_s12  ;;  %v7321_v43 = vsel %vm475_vm2, %v4759_v5, %v3299_v60  ;;  %v7337_v63 = vsel %vm1022_vm6, %v4774_v4, %v3841_v12 }
 0x5de   : > { %8329 = vst [vmem:[#allocation67_spill] sm:$0xff] %v7321_v43  ;;  %v7334_v26 = vsel %vm5105_vm5, %v7321_v43, 0.0  ;;  %8331 = vst [vmem:[#allocation69_spill] sm:$0xff] %v7337_v63  ;;  %v7349_v30 = vsel %vm5171_vm9, %v7337_v63, 0.0 }
 0x5e0   : > { %v7310_v6 = vpop.permute.xlu0 %3516  ;;  %v3481_v62 = vpop.permute.xlu1 %3480 }
 0x5e1   : > { %3538 = vrot.lane.b32.xlu1 %v3457_v47, %s4843_s20  ;;  %v3499_v58 = vsel %vm589_vm0, %v3481_v62, %v4738_v19  ;;  %v3498_v39 = vsel %vm589_vm0, %v3479_v18, %v3481_v62  ;;  %v4773_v18 = vunpack.i.l.bf16 %v7249_v11 }
 0x5e4   : > { %v3459_v3 = vpop.permute.xlu0 %3458  ;;  %v3301_v7 = vpop.permute.xlu1 %3300 }
 0x5e5   : > { %3412 = vrot.lane.b32.xlu1 %v7317_v23, %s4839_s12  ;;  %3542 = vrot.lane.b32.xlu0 %v3459_v3, %s4843_s20  ;;  %v3469_v40 = vsel %vm548_vm1, %v3457_v47, %v3459_v3  ;;  %v7361_v54 = vsel %vm475_vm2, %v3299_v60, %v3301_v7  ;;  %v3325_v27 = vsel %vm475_vm2, %v3301_v7, %v4758_v49 }
 0x5e6   : > { %8332 = vst [vmem:[#allocation62_spill] sm:$0xff] %v7361_v54  ;;  %v3349_v28 = vsel %vm5072_vm3, %v3325_v27, 0.0  ;;  %v3348_v44 = vsel %vm5081_vm4, %v7361_v54, 0.0 }
 0x5e8   : > { %v3843_v50 = vpop.permute.xlu0 %3842  ;;  %v7344_v53 = vpop.permute.xlu1 %3518 }
 0x5e9   : > { %3954 = vrot.lane.b32.xlu1 %v7329_v52, %s4839_s12  ;;  %3414 = vrot.lane.b32.xlu0 %v7334_v26, %s4839_s12  ;;  %v7373_v47 = vsel %vm1022_vm6, %v3841_v12, %v3843_v50  ;;  %v3867_v60 = vsel %vm1022_vm6, %v3843_v50, %v4773_v18  ;;  %v4764_v50 = vunpack.i.h.bf16 %v7247_v51  ;;  %v4734_v18 = vunpack.i.h.bf16 %v7235_v55 }
 0x5ea   : > { %8333 = vst [vmem:[#allocation32_spill] sm:$0xff] %v7373_v47  ;;  %v7380_v11 = vsel %vm5150_vm8, %v3867_v60, 0.0  ;;  %v7385_v7 = vsel %vm5125_vm7, %v7373_v47, 0.0 }
 0x5ec   : > { %v3461_v2 = vpop.permute.xlu1 %3460  ;;  %v3485_v31 = vpop.permute.xlu0 %3484 }
 0x5ed   : > { %3956 = vrot.lane.b32.xlu1 %v7349_v30, %s4839_s12  ;;  %3566 = vrot.lane.b32.xlu0 %v3499_v58, %s4843_s20 }
 0x5f0   : > { %v3849_v5 = vpop.permute.xlu1 %3848  ;;  %v3307_v62 = vpop.permute.xlu0 %3306 }
 0x5f1   : > { %3564 = vrot.lane.b32.xlu1 %v3498_v39, %s4843_s20  ;;  %3568 = vrot.lane.b32.xlu0 %v3485_v31, %s4843_s20  ;;  %v7395_v4 = vsel %vm475_vm2, %v4749_v36, %v3307_v62  ;;  %v7404_v49 = vsel %vm1022_vm6, %v4764_v50, %v3849_v5 }
 0x5f2   : > { %8334 = vst [vmem:[#allocation30_spill] sm:$0xff] %v7395_v4  ;;  %v3350_v39 = vsel %vm5105_vm5, %v7395_v4, 0.0  ;;  %8335 = vst [vmem:[#allocation59_spill] sm:$0xff] %v7404_v49  ;;  %v3892_v27 = vsel %vm5171_vm9, %v7404_v49, 0.0 }
 0x5f4   : > { %v3487_v3 = vpop.permute.xlu1 %3486  ;;  %v7391_v12 = vpop.permute.xlu0 %3522 }
 0x5f5   : > { %3540 = vrot.lane.b32.xlu1 %v3469_v40, %s4843_s20  ;;  %3544 = vrot.lane.b32.xlu0 %v3461_v2, %s4843_s20 }
 0x5f8   : > { %v3309_v19 = vpop.permute.xlu1 %3308  ;;  %v3463_v58 = vpop.permute.xlu0 %3462 }
 0x5f9   : > { %3418 = vrot.lane.b32.xlu1 %v3349_v28, %s4839_s12  ;;  %3416 = vrot.lane.b32.xlu0 %v3348_v44, %s4839_s12  ;;  %v3470_v36 = vsel %vm548_vm1, %v3461_v2, %v3463_v58  ;;  %v7422_v50 = vsel %vm475_vm2, %v3307_v62, %v3309_v19  ;;  %v4763_v2 = vunpack.i.l.bf16 %v7247_v51 }
 0x5fa   : > { %8336 = vst [vmem:[#allocation58_spill] sm:$0xff] %v7422_v50 }
 0x5fc   : > { %v7408_v40 = vpop.permute.xlu1 %3524 }
 0x5fd   : > { %3960 = vrot.lane.b32.xlu1 %v7380_v11, %s4839_s12  ;;  %3958 = vrot.lane.b32.xlu0 %v7385_v7, %s4839_s12 }
 0x600   : > { %v3491_v60 = vpop.permute.xlu1 %3490 }
 0x601   : > { %3378 = vrot.lane.b32.xlu1 %v3349_v28, %s4840_s17  ;;  %3376 = vrot.lane.b32.xlu0 %v3348_v44, %s4840_s17  ;;  %v3501_v28 = vsel %vm589_vm0, %v3487_v3, %v4734_v18  ;;  %v3500_v44 = vsel %vm589_vm0, %v3485_v31, %v3487_v3  ;;  %v3351_v31 = vsel %vm5081_vm4, %v7422_v50, 0.0  ;;  %v3328_v3 = vsel %vm475_vm2, %v3309_v19, %v4748_v41 }
 0x602   : > { %v3352_v62 = vsel %vm5072_vm3, %v3328_v3, 0.0  ;;  %v4754_v3 = vunpack.i.h.bf16 %v7243_v8 }
 0x604   : > { %v3465_v18 = vpop.permute.xlu1 %3464 }
 0x605   : > { %3548 = vrot.lane.b32.xlu1 %v3463_v58, %s4843_s20  ;;  %3420 = vrot.lane.b32.xlu0 %v3350_v39, %s4839_s12 }
 0x608   : > { %v3315_v51 = vpop.permute.xlu1 %3314 }
 0x609   : > { %3962 = vrot.lane.b32.xlu1 %v3892_v27, %s4839_s12  ;;  %3380 = vrot.lane.b32.xlu0 %v3350_v39, %s4840_s17  ;;  %v3851_v39 = vpop.permute.xlu0 %3850 }
 0x60a   : > { %v3870_v58 = vsel %vm1022_vm6, %v3851_v39, %v4763_v2 }
 0x60d   : > { %3572 = vrot.lane.b32.xlu1 %v3501_v28, %s4843_s20  ;;  %3570 = vrot.lane.b32.xlu0 %v3500_v44, %s4843_s20  ;;  %v7432_v28 = vsel %vm1022_vm6, %v3849_v5, %v3851_v39  ;;  %v3493_v41 = vpop.permute.xlu0 %3492  ;;  %v3894_v5 = vsel %vm5150_vm8, %v3870_v58, 0.0  ;;  %v4744_v44 = vunpack.i.h.bf16 %v7239_v21  ;;  %v3857_v39 = vpop.permute.xlu1 %3856 }
 0x60e   : > { %8337 = vst [vmem:[#allocation54_spill] sm:$0xff] %v7432_v28  ;;  %v3893_v25 = vsel %vm5125_vm7, %v7432_v28, 0.0 }
 0x611   : > { %3574 = vrot.lane.b32.xlu1 %v3491_v60, %s4843_s20  ;;  %3546 = vrot.lane.b32.xlu0 %v3470_v36, %s4843_s20  ;;  %v3467_v19 = vpop.permute.xlu0 %3466  ;;  %v7453_v36 = vsel %vm475_vm2, %v4744_v44, %v3315_v51 }
 0x612   : > { %8338 = vst [vmem:[#allocation56_spill] sm:$0xff] %v7453_v36 }
 0x615   : > { %3550 = vrot.lane.b32.xlu1 %v3465_v18, %s4843_s20  ;;  %3422 = vrot.lane.b32.xlu0 %v3351_v31, %s4839_s12  ;;  %v3317_v2 = vpop.permute.xlu0 %3316 }
 0x619   : > { %3424 = vrot.lane.b32.xlu1 %v3352_v62, %s4839_s12  ;;  %3964 = vrot.lane.b32.xlu0 %v3893_v25, %s4839_s12  ;;  %v3859_v44 = vpop.permute.xlu0 %3858 }
 0x61d   : > { %3966 = vrot.lane.b32.xlu1 %v3894_v5, %s4839_s12  ;;  %3382 = vrot.lane.b32.xlu0 %v3351_v31, %s4840_s17  ;;  %v3353_v31 = vsel %vm5105_vm5, %v7453_v36, 0.0 }
 0x621   : > { %3384 = vrot.lane.b32.xlu1 %v3352_v62, %s4840_s17  ;;  %3924 = vrot.lane.b32.xlu0 %v3893_v25, %s4840_s17  ;;  %v7462_v62 = vsel %vm1022_vm6, %v4754_v3, %v3857_v39  ;;  %v4733_v25 = vunpack.i.l.bf16 %v7235_v55  ;;  %v7476_v3 = vpop.permute.xlu0 %3530  ;;  %v3502_v55 = vsel %vm589_vm0, %v3491_v60, %v3493_v41 }
 0x622   : > { %8339 = vst [vmem:[#allocation50_spill] sm:$0xff] %v7462_v62  ;;  %v3895_v58 = vsel %vm5171_vm9, %v7462_v62, 0.0 }
 0x625   : > { %3926 = vrot.lane.b32.xlu1 %v3894_v5, %s4840_s17  ;;  %3554 = vrot.lane.b32.xlu0 %v3467_v19, %s4843_s20  ;;  %v3503_v5 = vsel %vm589_vm0, %v3493_v41, %v4733_v25  ;;  %v4743_v25 = vunpack.i.l.bf16 %v7239_v21  ;;  %v7502_v21 = vsel %vm1022_vm6, %v3857_v39, %v3859_v44 }
 0x626   : > { %8340 = vst [vmem:[#allocation46_spill] sm:$0xff] %v7502_v21 }
 0x627   : > { %v3331_v60 = vsel %vm475_vm2, %v3317_v2, %v4743_v25 }
 0x629   : > { %3426 = vrot.lane.b32.xlu1 %v3353_v31, %s4839_s12  ;;  %3386 = vrot.lane.b32.xlu0 %v3353_v31, %s4840_s17 }
 0x62d   : > { %3968 = vrot.lane.b32.xlu1 %v3895_v58, %s4839_s12  ;;  %3578 = vrot.lane.b32.xlu0 %v3503_v5, %s4843_s20 }
 0x631   : > { %3928 = vrot.lane.b32.xlu1 %v3895_v58, %s4840_s17  ;;  %3374 = vrot.lane.b32.xlu0 %v7334_v26, %s4840_s17  ;;  %v3471_v26 = vsel %vm548_vm1, %v3465_v18, %v3467_v19  ;;  %v7515_v19 = vsel %vm475_vm2, %v3315_v51, %v3317_v2 }
 0x632   : > { %8341 = vst [vmem:[#allocation78_spill] sm:$0xff] %v7515_v19  ;;  %v3354_v5 = vsel %vm5081_vm4, %v7515_v19, 0.0 }
 0x635   : > { %3576 = vrot.lane.b32.xlu1 %v3502_v55, %s4843_s20  ;;  %3370 = vrot.lane.b32.xlu0 %v7294_v15, %s4840_s17  ;;  %v7495_v15 = vpop.permute.xlu1 %3528  ;;  %v3873_v55 = vsel %vm1022_vm6, %v3859_v44, %v4753_v20 }
 0x637   : > { %v7482_v31 = vpop.permute.xlu0 %3556 }
 0x639   : > { %3922 = vrot.lane.b32.xlu1 %v3892_v27, %s4840_s17  ;;  %3918 = vrot.lane.b32.xlu0 %v7385_v7, %s4840_s17  ;;  %v3355_v7 = vsel %vm5072_vm3, %v3331_v60, 0.0 }
 0x63b   : > { %v7488_v58 = vpop.permute.xlu0 %3532 }
 0x63d   : > { %3552 = vrot.lane.b32.xlu1 %v3471_v26, %s4843_s20  ;;  %3368 = vrot.lane.b32.xlu0 %v7265_v59, %s4840_s17  ;;  %v3896_v59 = vsel %vm5125_vm7, %v7502_v21, 0.0 }
 0x63f   : > { %v7497_v41 = vpop.permute.xlu0 %3408 }
 0x641   : > { %3372 = vrot.lane.b32.xlu1 %v7317_v23, %s4840_s17  ;;  %3430 = vrot.lane.b32.xlu0 %v3355_v7, %s4839_s12 }
 0x643   : > { %v7507_v27 = vpop.permute.xlu1 %3536  ;;  %v7509_v18 = vpop.permute.xlu0 %3558 }
 0x645   : > { %3920 = vrot.lane.b32.xlu1 %v7380_v11, %s4840_s17  ;;  %3970 = vrot.lane.b32.xlu0 %v3896_v59, %s4839_s12  ;;  %v3897_v11 = vsel %vm5150_vm8, %v3873_v55, 0.0 }
 0x647   : > { %v7521_v23 = vpop.permute.xlu1 %3950  ;;  %v7523_v39 = vpop.permute.xlu0 %3534 }
 0x649   : > { %3428 = vrot.lane.b32.xlu1 %v3354_v5, %s4839_s12  ;;  %3388 = vrot.lane.b32.xlu0 %v3354_v5, %s4840_s17  ;;  %v4105_v5 = vld [vmem:[%s8036_s4 + $0x10] sm:$0xff] }
 0x64b   : > { %v7531_v51 = vpop.permute.xlu1 %3560  ;;  %v7535_v8 = vpop.permute.xlu0 %3410 }
 0x64d   : > { %3972 = vrot.lane.b32.xlu1 %v3897_v11, %s4839_s12  ;;  %3930 = vrot.lane.b32.xlu0 %v3896_v59, %s4840_s17 }
 0x64f   : > { %v3563_v2 = vpop.permute.xlu1 %3562  ;;  %v7542_v44 = vpop.permute.xlu0 %3952 }
 0x651   : > { %3390 = vrot.lane.b32.xlu1 %v3355_v7, %s4840_s17  ;;  %3912 = vrot.lane.b32.xlu0 %v7305_v34, %s4840_s17 }
 0x653   : > { %v3539_v25 = vpop.permute.xlu1 %3538 }
 0x655   : > { %3932 = vrot.lane.b32.xlu1 %v3897_v11, %s4840_s17  ;;  %3910 = vrot.lane.b32.xlu0 %v7280_v32, %s4840_s17  ;;  %v2162_v32 = vld [vmem:[%s8036_s4] sm:$0xff]  ;;  %v4106_v11 = vld [vmem:[%s8036_s4 + $0x18] sm:$0xff] }
 0x657   : > { %v3413_v26 = vpop.permute.xlu1 %3412  ;;  %v3543_v60 = vpop.permute.xlu0 %3542 }
 0x658   : > { %v7552_v7 = vsel %vm589_vm0, %v7535_v8, %v3413_v26 }
 0x659   : > { %3916 = vrot.lane.b32.xlu1 %v7349_v30, %s4840_s17  ;;  %2173 = vperm.xlu0 %4608, %v2163_v42  }
 0x65b   : > { %v3955_v34 = vpop.permute.xlu1 %3954  ;;  %v3415_v59 = vpop.permute.xlu0 %3414 }
 0x65c   : > { %v7558_v20 = vsel %vm589_vm0, %v7542_v44, %v3955_v34 }
 0x65d   : > { %3914 = vrot.lane.b32.xlu1 %v7329_v52, %s4840_s17  ;;  %4114 = vperm.xlu0 %4608, %v2163_v42  }
 0x65f   : > { %v3957_v30 = vpop.permute.xlu1 %3956  ;;  %v3567_v55 = vpop.permute.xlu0 %3566 }
 0x661   : > { %2168 = vperm.xlu1 %4609, %v2162_v32   ;;  %4119 = vperm.xlu0 %4608, %v4105_v5  }
 0x663   : > { %v3565_v26 = vpop.permute.xlu1 %3564  ;;  %v3569_v34 = vpop.permute.xlu0 %3568 }
 0x664   : > { %v3598_v52 = vsel %vm739_vm10, %v3563_v2, %v3565_v26  ;;  %v3599_v42 = vsel %vm739_vm10, %v3565_v26, %v3567_v55 }
 0x665   : > { %4109 = vperm.xlu1 %4609, %v2162_v32   ;;  %4124 = vperm.xlu0 %4608, %v4106_v11  }
 0x667   : > { %v3541_v24 = vpop.permute.xlu1 %3540  ;;  %v7573_v37 = vpop.permute.xlu0 %3544 }
 0x668   : > { %v7576_v10 = vsel %vm739_vm10, %v3539_v25, %v3541_v24  ;;  %v7579_v38 = vsel %vm739_vm10, %v3541_v24, %v3543_v60 }
 0x669   : > { %2178 = vperm.xlu1 %4609, %v4105_v5  }
 0x66b   : > { %v3419_v1 = vpop.permute.xlu1 %3418  ;;  %v3417_v17 = vpop.permute.xlu0 %3416 }
 0x66c   : > { %v7582_v46 = vsel %vm589_vm0, %v3415_v59, %v3417_v17  ;;  %v7585_v2 = vsel %vm589_vm0, %v3417_v17, %v3419_v1 }
 0x66d   : > { %2183 = vperm.xlu1 %4609, %v4106_v11  }
 0x66f   : > { %v3961_v32 = vpop.permute.xlu1 %3960  ;;  %v3959_v55 = vpop.permute.xlu0 %3958 }
 0x670   : > { %v7588_v26 = vsel %vm589_vm0, %v3957_v30, %v3959_v55  ;;  %v7591_v25 = vsel %vm589_vm0, %v3959_v55, %v3961_v32 }
 0x673   : > { %v3379_v24 = vpop.permute.xlu1 %3378  ;;  %v7593_v60 = vpop.permute.xlu0 %3376 }
 0x674   : > { %v7597_v5 = vsel %vm548_vm1, %v7593_v60, %v3379_v24 }
 0x677   : > { %v3549_v59 = vpop.permute.xlu1 %3548  ;;  %v7599_v29 = vpop.permute.xlu0 %3420 }
 0x67b   : > { %v7601_v17 = vpop.permute.xlu1 %3962  ;;  %v7603_v1 = vpop.permute.xlu0 %3380 }
 0x67f   : > { %v3573_v11 = vpop.permute.xlu1 %3572  ;;  %v3571_v30 = vpop.permute.xlu0 %3570 }
 0x680   : > { %v3601_v19 = vsel %vm739_vm10, %v3571_v30, %v3573_v11  ;;  %v3600_v0 = vsel %vm739_vm10, %v3569_v34, %v3571_v30  ;;  %v4789_v11 = vunpack.i.h.bf16 %v7253_v33 }
 0x683   : > { %v3575_v63 = vpop.permute.xlu1 %3574  ;;  %v3547_v47 = vpop.permute.xlu0 %3546 }
 0x687   : > { %v3551_v32 = vpop.permute.xlu1 %3550  ;;  %v7605_v55 = vpop.permute.xlu0 %3422 }
 0x68b   : > { %v7607_v49 = vpop.permute.xlu1 %3424  ;;  %v7609_v28 = vpop.permute.xlu0 %3964 }
 0x68f   : > { %v7611_v24 = vpop.permute.xlu1 %3966  ;;  %v7613_v14 = vpop.permute.xlu0 %3382 }
 0x693   : > { %v7615_v62 = vpop.permute.xlu1 %3384  ;;  %v7617_v22 = vpop.permute.xlu0 %3924 }
 0x694   : > { %8342 = vst [vmem:[#allocation43_spill] sm:$0xff] %v7617_v22 }
 0x697   : > { %v7619_v48 = vpop.permute.xlu1 %3926  ;;  %v3555_v56 = vpop.permute.xlu0 %3554 }
 0x698   : > { %8343 = vst [vmem:[#allocation40_spill] sm:$0xff] %v7619_v48 }
 0x69b   : > { %v3427_v13 = vpop.permute.xlu1 %3426  ;;  %v7621_v21 = vpop.permute.xlu0 %3386 }
 0x69f   : > { %v7623_v57 = vpop.permute.xlu1 %3968  ;;  %v3579_v43 = vpop.permute.xlu0 %3578 }
 0x6a3   : > { %v7625_v54 = vpop.permute.xlu1 %3928  ;;  %v7627_v4 = vpop.permute.xlu0 %3374 }
 0x6a7   : > { %v3577_v50 = vpop.permute.xlu1 %3576  ;;  %v7629_v9 = vpop.permute.xlu0 %3370 }
 0x6a8   : > { %v3602_v36 = vsel %vm739_vm10, %v3575_v63, %v3577_v50  ;;  %v3603_v61 = vsel %vm739_vm10, %v3577_v50, %v3579_v43  ;;  %v3597_v63 = vsel %vm739_vm10, %v7509_v18, %v7531_v51  ;;  %v3592_v51 = vsel %vm739_vm10, %v7573_v37, %v3547_v47 }
 0x6a9   : > { %3648 = vmatprep.subr.mxu1 %v3603_v61  ;;  %v3596_v61 = vsel %vm739_vm10, %v7482_v31, %v7509_v18  ;;  %v4783_v18 = vunpack.i.l.bf16 %v7251_v35 }
 0x6aa   : > { %3649 = vmatpush1.msra.mxu1 %v3602_v36 }
 0x6ab   : > { %v7635_v22 = vpop.permute.xlu1 %3922  ;;  %3650 = vmatprep.subr.mxu1 %v3601_v19  ;;  %v7637_v48 = vpop.permute.xlu0 %3918 }
 0x6ac   : > { %3651 = vmatpush1.msra.mxu1 %v3600_v0  ;;  %v3593_v0 = vsel %vm739_vm10, %v3547_v47, %v3549_v59 }
 0x6ad   : > { %3652 = vmatprep.subr.mxu1 %v3599_v42 }
 0x6ae   : > { %3653 = vmatpush1.msra.mxu1 %v3598_v52  ;;  %v3588_v52 = vsel %vm739_vm10, %v7488_v58, %v7523_v39  ;;  %v3585_v58 = vsel %vm739_vm10, %v7391_v12, %v7408_v40 }
 0x6af   : > { %v3553_v43 = vpop.permute.xlu1 %3552  ;;  %3654 = vmatprep.subr.mxu1 %v3597_v63  ;;  %v7645_v50 = vpop.permute.xlu0 %3368  ;;  %v8347_v63 = vld [vmem:[#allocation78_spill] sm:$0xff] }
 0x6b0   : > { %v3594_v36 = vsel %vm739_vm10, %v3551_v32, %v3553_v43  ;;  %3655 = vmatpush1.msra.mxu1 %v3596_v61  ;;  %v3595_v19 = vsel %vm739_vm10, %v3553_v43, %v3555_v56  ;;  %v3589_v56 = vsel %vm739_vm10, %v7523_v39, %v7507_v27  ;;  %v3586_v27 = vsel %vm739_vm10, %v4783_v18, %v7495_v15  ;;  %v4473_v32 = vld [vmem:[%s8035_s3 + $0x20] sm:$0xff]  ;;  %v8355_v18 = vld [vmem:[#allocation37_spill] sm:$0xff] }
 0x6b1   : > { %3656 = vmatprep.subr.mxu1 %v3595_v19  ;;  %v4788_v39 = vunpack.i.l.bf16 %v7253_v33  ;;  %v3436_v33 = vsel %vm589_vm0, %v7599_v29, %v7605_v55 }
 0x6b2   : > { %3657 = vmatpush1.msra.mxu1 %v3594_v36  ;;  %v4475_v36 = vld [vmem:[%s8035_s3 + $0x30] sm:$0xff] }
 0x6b3   : > { %v7652_v34 = vpop.permute.xlu1 %3372  ;;  %3658 = vmatprep.subr.mxu1 %v3593_v0  ;;  %v3431_v31 = vpop.permute.xlu0 %3430  ;;  %v3582_v40 = vsel %vm739_vm10, %v4788_v39, %v7310_v6  ;;  %v8351_v0 = vld [vmem:[#allocation58_spill] sm:$0xff]  ;;  %v8359_v39 = vld [vmem:[#allocation49_spill] sm:$0xff] }
 0x6b4   : > { %3659 = vmatpush1.msra.mxu1 %v3592_v51 }
 0x6b5   : > { %3660 = vmatprep.subr.mxu1 %v7579_v38  ;;  %v3587_v38 = vsel %vm739_vm10, %v7495_v15, %v7476_v3 }
 0x6b6   : > { %3661 = vmatpush1.msra.mxu1 %v7576_v10  ;;  %v4784_v10 = vunpack.i.h.bf16 %v7251_v35  ;;  %v3583_v35 = vsel %vm739_vm10, %v7310_v6, %v7344_v53  ;;  %v3437_v53 = vsel %vm589_vm0, %v7605_v55, %v7607_v49  ;;  %v3580_v6 = vsel %vm739_vm10, %v4789_v11, %v7260_v16  ;;  %v8363_v11 = vld [vmem:[#allocation54_spill] sm:$0xff] }
 0x6b7   : > { %v7663_v37 = vpop.permute.xlu1 %3920  ;;  %3662 = vmatprep.subr.mxu1 %v3589_v56  ;;  %v3971_v47 = vpop.permute.xlu0 %3970  ;;  %v8354_v56 = vld [vmem:[#allocation67_spill] sm:$0xff] }
 0x6b8   : > { %3663 = vmatpush1.msra.mxu1 %v3588_v52  ;;  %v3584_v59 = vsel %vm739_vm10, %v4784_v10, %v7391_v12  ;;  %v3980_v29 = vsel %vm589_vm0, %v7623_v57, %v3971_v47  ;;  %v3978_v57 = vsel %vm589_vm0, %v7601_v17, %v7609_v28  ;;  %v8345_v17 = vld [vmem:[#allocation43_spill] sm:$0xff] }
 0x6b9   : > { %3664 = vmatprep.subr.mxu1 %v3587_v38  ;;  %v8356_v38 = vld [vmem:[#allocation46_spill] sm:$0xff] }
 0x6ba   : > { %3665 = vmatpush1.msra.mxu1 %v3586_v27  ;;  %v8358_v27 = vld [vmem:[#allocation51_spill] sm:$0xff] }
 0x6bb   : > { %v3429_v42 = vpop.permute.xlu1 %3428  ;;  %3666 = vmatprep.subr.mxu1 %v3585_v58  ;;  %v3389_v30 = vpop.permute.xlu0 %3388 }
 0x6bc   : > { %v3438_v3 = vsel %vm589_vm0, %v3427_v13, %v3429_v42  ;;  %3667 = vmatpush1.msra.mxu1 %v3584_v59  ;;  %v3439_v15 = vsel %vm589_vm0, %v3429_v42, %v3431_v31  ;;  %v3581_v13 = vsel %vm739_vm10, %v7260_v16, %v7275_v45  ;;  %v3432_v16 = vsel %vm589_vm0, %v7497_v41, %v7535_v8  ;;  %v8360_v59 = vld [vmem:[#allocation17_spill] sm:$0xff] }
 0x6bd   : > { %3668 = vmatprep.subr.mxu1 %v3583_v35  ;;  %3749 = vmatprep.subr.mxu0 %v3439_v15  ;;  %v3398_v41 = vsel %vm548_vm1, %v7621_v21, %v3389_v30  ;;  %v3397_v8 = vsel %vm548_vm1, %v7613_v14, %v7615_v62  ;;  %v3974_v21 = vsel %vm589_vm0, %v7521_v23, %v7542_v44 }
 0x6be   : > { %3669 = vmatpush1.msra.mxu1 %v3582_v40  ;;  %3750 = vmatpush1.msra.mxu0 %v3438_v3  ;;  %v3394_v62 = vsel %vm548_vm1, %v7627_v4, %v7593_v60  ;;  %v3393_v23 = vsel %vm548_vm1, %v7629_v9, %v7652_v34  ;;  %v4474_v60 = vld [vmem:[%s8035_s3 + $0x28] sm:$0xff]  ;;  %v8353_v34 = vld [vmem:[#allocation62_spill] sm:$0xff] }
 0x6bf   : > { %v3973_v12 = vpop.permute.xlu1 %3972  ;;  %3670 = vmatprep.subr.mxu1 %v3581_v13  ;;  %3751 = vmatprep.subr.mxu0 %v3437_v53  ;;  %v3931_v55 = vpop.permute.xlu0 %3930  ;;  %v8361_v3 = vld [vmem:[#allocation50_spill] sm:$0xff]  ;;  %v3449_v40 = vld [vmem:[%s8035_s3 + $0x8] sm:$0xff]  ;;  %v8366_v53 = vld [vmem:[#allocation69_spill] sm:$0xff] }
 0x6c0   : > { %3671 = vmatpush1.msra.mxu1 %v3580_v6  ;;  %3752 = vmatpush1.msra.mxu0 %v3436_v33  ;;  %v3981_v45 = vsel %vm589_vm0, %v3971_v47, %v3973_v12  ;;  %v3448_v47 = vld [vmem:[%s8035_s3] sm:$0xff]  ;;  %v8365_v13 = vld [vmem:[#allocation32_spill] sm:$0xff]  ;;  %v8367_v12 = vld [vmem:[#allocation34_spill] sm:$0xff] }
 0x6c1   : > { %3753 = vmatprep.subr.mxu0 %v7585_v2  ;;  %4014 = vmatprep.subr.mxu1 %v3981_v45  ;;  %v3979_v2 = vsel %vm589_vm0, %v7609_v28, %v7611_v24  ;;  %v3396_v28 = vsel %vm548_vm1, %v7603_v1, %v7613_v14  ;;  %v3940_v14 = vsel %vm548_vm1, %v7625_v54, %v3931_v55  ;;  %v8346_v1 = vmov 0.0   ;;  %v4493_v33 = vld [vmem:[%s8035_s3 + $0x40] sm:$0xff]  ;;  %v8368_v45 = vld [vmem:[#allocation76_spill] sm:$0xff] }
 0x6c2   : > { %4477 = vmatmul.mubr.msk.f32.vlgmr.msra.gmra.mxu1 %vm589_vm0, %v4473_v32  ;;  %3754 = vmatpush1.msra.mxu0 %v7582_v46  ;;  %v3938_v54 = vsel %vm548_vm1, %v7635_v22, %v8345_v17  ;;  %v3937_v22 = vsel %vm548_vm1, %v7637_v48, %v7663_v37  ;;  %v4476_v37 = vld [vmem:[%s8035_s3 + $0x38] sm:$0xff]  ;;  %v3450_v32 = vld [vmem:[%s8035_s3 + $0x10] sm:$0xff] }
 0x6c3   : > { %4015 = vmatpush1.msra.mxu1 %v3980_v29  ;;  %v3391_v49 = vpop.permute.xlu1 %3390  ;;  %3755 = vmatprep.subr.mxu0 %v7552_v7  ;;  %v8369_v29 = vld [vmem:[#allocation57_spill] sm:$0xff] }
 0x6c4   : > { %4016 = vmatprep.subr.mxu1 %v3979_v2  ;;  %3756 = vmatpush1.msra.mxu0 %v3432_v16  ;;  %v3399_v46 = vsel %vm548_vm1, %v3389_v30, %v3391_v49  ;;  %v8364_v30 = vld [vmem:[#allocation59_spill] sm:$0xff]  ;;  %v8370_v49 = vld [vmem:[#allocation9_spill] sm:$0xff] }
 0x6c5   : > { %4017 = vmatpush1.msra.mxu1 %v3978_v57  ;;  %3757 = vmatprep.subr.mxu0 %v3399_v46 }
 0x6c6   : > { %4018 = vmatprep.subr.mxu1 %v7591_v25  ;;  %3758 = vmatpush1.msra.mxu0 %v3398_v41  ;;  %v3451_v41 = vld [vmem:[%s8035_s3 + $0x18] sm:$0xff] }
 0x6c7   : > { %4019 = vmatpush1.msra.mxu1 %v7588_v26  ;;  %v3933_v7 = vpop.permute.xlu1 %3932  ;;  %3759 = vmatprep.subr.mxu0 %v3397_v8  ;;  %v3913_v26 = vpop.permute.xlu0 %3912  ;;  %v4495_v8 = vld [vmem:[%s8035_s3 + $0x50] sm:$0xff] }
 0x6c8   : > { %4020 = vmatprep.subr.mxu1 %v7558_v20  ;;  %3760 = vmatpush1.msra.mxu0 %v3396_v28  ;;  %v3941_v25 = vsel %vm548_vm1, %v3931_v55, %v3933_v7  ;;  %v8344_v20 = vld [vmem:[#allocation40_spill] sm:$0xff]  ;;  %v8371_v7 = vld [vmem:[#allocation45_spill] sm:$0xff] }
 0x6c9   : > { %4021 = vmatpush1.msra.mxu1 %v3974_v21  ;;  %3761 = vmatprep.subr.mxu0 %v7597_v5  ;;  %v3939_v4 = vsel %vm548_vm1, %v8345_v17, %v8344_v20  ;;  %v3392_v5 = vsel %vm548_vm1, %v7645_v50, %v7629_v9  ;;  %v8349_v9 = vld [vmem:[#allocation56_spill] sm:$0xff] }
 0x6ca   : > { %4022 = vmatprep.subr.mxu1 %v3941_v25  ;;  %3762 = vmatpush1.msra.mxu0 %v3394_v62  ;;  %v4494_v55 = vld [vmem:[%s8035_s3 + $0x48] sm:$0xff]  ;;  %v8372_v25 = vld [vmem:[#allocation42_spill] sm:$0xff] }
 0x6cb   : > { %4023 = vmatpush1.msra.mxu1 %v3940_v14  ;;  %v3917_v44 = vpop.permute.xlu1 %3916  ;;  %3763 = vmatprep.subr.mxu0 %v3393_v23  ;;  %v3911_v19 = vpop.permute.xlu0 %3910 }
 0x6cc   : > { %4024 = vmatprep.subr.mxu1 %v3939_v4  ;;  %3710 = vmatprep.mubr.f32.mxu1 %v8346_v1  ;;  %v3936_v24 = vsel %vm548_vm1, %v3917_v44, %v7637_v48  ;;  %v8352_v48 = vld [vmem:[#allocation30_spill] sm:$0xff]  ;;  %v3934_v31 = vsel %vm548_vm1, %v3911_v19, %v3913_v26 }
 0x6cd   : > { %3764 = vmatpush1.msra.mxu0 %v3392_v5  ;;  %4025 = vmatpush1.msra.mxu1 %v3938_v54 }
 0x6ce   : > { %4478 = vmatmul.mubr.msk.f32.gmra.mxu1 %vm589_vm0, %v4474_v60  ;;  %4481 = vmatprep.subr.msk.mxu0 %vm5081_vm4, %v8347_v63 }
 0x6cf   : > { %4026 = vmatprep.subr.mxu1 %v3937_v22  ;;  %4482 = vmatpush1.msk.msra.mxu0 %vm5105_vm5, %v8349_v9  ;;  %v3915_v50 = vpop.permute.xlu1 %3914 }
 0x6d0   : > { %4027 = vmatpush1.msra.mxu1 %v3936_v24  ;;  %4483 = vmatprep.subr.msk.mxu0 %vm5081_vm4, %v8351_v0  ;;  %v3935_v51 = vsel %vm548_vm1, %v3913_v26, %v3915_v50  ;;  %v4496_v26 = vld [vmem:[%s8035_s3 + $0x58] sm:$0xff] }
 0x6d1   : > { %3716 = vmatprep.mubr.f32.mxu1 %v8346_v1  ;;  %4484 = vmatpush1.msk.msra.mxu0 %vm5105_vm5, %v8352_v48 }
 0x6d2   : > { %4479 = vmatmul.mubr.msk.f32.gmra.mxu1 %vm589_vm0, %v4475_v36  ;;  %4485 = vmatprep.subr.msk.mxu0 %vm5081_vm4, %v8353_v34 }
 0x6d3   : > { %4028 = vmatprep.subr.mxu1 %v3935_v51  ;;  %4486 = vmatpush1.msk.msra.mxu0 %vm5105_vm5, %v8354_v56  ;;  %v8374_v56 = vld [vmem:[#allocation83_spill] sm:$0xff] }
 0x6d4   : > { %4029 = vmatpush1.msra.mxu1 %v3934_v31  ;;  %4487 = vmatprep.subr.msk.mxu0 %vm5081_vm4, %v8355_v18  ;;  %v2174_v52 = vpop.permute.xlu0 %2173  ;;  %v8373_v31 = vld [vmem:[#allocation53_spill] sm:$0xff] }
 0x6d5   : > { %4497 = vmatprep.subr.msk.mxu1 %vm5125_vm7, %v8356_v38  ;;  %3722 = vmatprep.mubr.f32.mxu1 %v8346_v1  ;;  %v7798_v58 = vadd.f32 %v2174_v52, %v8358_v27  ;;  %v7801_v42 = vadd.f32 %v2174_v52, %v8359_v39  ;;  %v2161_v18 = vadd.f32 %v8374_v56, %v8373_v31 }
 0x6d6   : > { %4488 = vmatpush1.msk.msra.mxu0 %vm5105_vm5, %v8360_v59  ;;  %4498 = vmatpush1.msk.msra.mxu1 %vm5171_vm9, %v8361_v3  ;;  %v8375_v59 = vld [vmem:[#allocation39_spill] sm:$0xff] }
 0x6d7   : > { %v2197_v15 = vadd.f32 %v7801_v42, %v7798_v58  ;;  %4480 = vmatmul.mubr.msk.f32.gmra.mxu1 %vm589_vm0, %v4476_v37  ;;  %4489 = vmatmul.mubr.msk.f32.vlgmr.msra.gmra.mxu0 %vm589_vm0, %v3448_v47 }
 0x6d8   : > { %4499 = vmatprep.subr.msk.mxu1 %vm5125_vm7, %v8363_v11  ;;  %3811 = vmatprep.mubr.f32.mxu0 %v8346_v1  ;;  %v4115_v52 = vpop.permute.xlu0 %4114 }
 0x6d9   : > { %4500 = vmatpush1.msk.msra.mxu1 %vm5171_vm9, %v8364_v30  ;;  %2198 = vadd.xlane.f32.xlu0 %v2197_v15 }
 0x6da   : > { %4501 = vmatprep.subr.msk.mxu1 %vm5125_vm7, %v8365_v13  ;;  %4070 = vmatprep.mubr.f32.mxu1 %v8346_v1 }
 0x6db   : > { %4502 = vmatpush1.msk.msra.mxu1 %vm5171_vm9, %v8366_v53  ;;  %4490 = vmatmul.mubr.msk.f32.gmra.mxu0 %vm589_vm0, %v3449_v40 }
 0x6dc   : > { %4503 = vmatprep.subr.msk.mxu1 %vm5125_vm7, %v8367_v12  ;;  %v2169_v6 = vpop.permute.xlu1 %2168  ;;  %3817 = vmatprep.mubr.f32.mxu0 %v8346_v1 }
 0x6dd   : > { %4504 = vmatpush1.msk.msra.mxu1 %vm5171_vm9, %v8368_v45  ;;  %v7845_v16 = vadd.f32 %v2169_v6, %v8369_v29  ;;  %v7848_v2 = vadd.f32 %v2169_v6, %v8370_v49  ;;  %v4120_v45 = vpop.permute.xlu0 %4119 }
 0x6de   : > { %4505 = vmatmul.mubr.msk.f32.vlgmr.msra.gmra.mxu1 %vm589_vm0, %v4493_v33 }
 0x6df   : > { %v2194_v57 = vadd.f32 %v7848_v2, %v7845_v16  ;;  %4491 = vmatmul.mubr.msk.f32.gmra.mxu0 %vm589_vm0, %v3450_v32  ;;  %4076 = vmatprep.mubr.f32.mxu1 %v8346_v1 }
 0x6e0   : > { %v4110_v46 = vpop.permute.xlu1 %4109  ;;  %3823 = vmatprep.mubr.f32.mxu0 %v8346_v1 }
 0x6e1   : > { %2195 = vadd.xlane.f32.xlu1 %v2194_v57 }
 0x6e2   : > { %4506 = vmatmul.mubr.msk.f32.gmra.mxu1 %vm589_vm0, %v4494_v55 }
 0x6e3   : > { %4492 = vmatmul.mubr.msk.f32.gmra.mxu0 %vm589_vm0, %v3451_v41  ;;  %4082 = vmatprep.mubr.f32.mxu1 %v8346_v1 }
 0x6e4   : > { %v2179_v28 = vpop.permute.xlu1 %2178 }
 0x6e5   : > { %v7869_v21 = vadd.f32 %v2179_v28, %v8371_v7  ;;  %v7872_v62 = vadd.f32 %v2179_v28, %v8372_v25 }
 0x6e6   : > { %4507 = vmatmul.mubr.msk.f32.gmra.mxu1 %vm589_vm0, %v4495_v8 }
 0x6e7   : > { %v2200_v14 = vadd.f32 %v7872_v62, %v7869_v21  ;;  %4088 = vmatprep.mubr.f32.mxu1 %v8346_v1 }
 0x6e8   : > { %v2184_v0 = vpop.permute.xlu1 %2183 }
 0x6e9   : > { %2201 = vadd.xlane.f32.xlu0 %v2200_v14  ;;  %v7889_v3 = vadd.f32 %v2184_v0, %v8375_v59  ;;  %v7891_v15 = vadd.f32 %v2184_v0, %v2161_v18 }
 0x6ea   : > { %4508 = vmatmul.mubr.msk.f32.gmra.mxu1 %vm589_vm0, %v4496_v26 }
 0x6eb   : > { %v2203_v49 = vadd.f32 %v7891_v15, %v7889_v3 }
 0x782   : > { %v3706_v23 = vpop.f32.mrf.mxu1 }
 0x784   : > { %v3708_v44 = vpop.f32.mrf.mxu1 }
 0x78e   : > { %v3712_v20 = vpop.f32.mrf.mxu1 }
 0x790   : > { %v3714_v17 = vpop.f32.mrf.mxu1 }
 0x792   : > { %v3718_v4 = vpop.f32.mrf.mxu1 }
 0x794   : > { %v3720_v60 = vpop.f32.mrf.mxu1 }
 0x797   : > { %v3807_v54 = vpop.f32.mrf.mxu0  ;;  %v3724_v5 = vpop.f32.mrf.mxu1 }
 0x798   : > { %v3808_v22 = vadd.f32 %v3807_v54, %v3706_v23  ;;  %v2196_v54 = vpop.xlane.xlu1 %2195 }
 0x799   : > { %v3809_v24 = vpop.f32.mrf.mxu0  ;;  %v3726_v61 = vpop.f32.mrf.mxu1 }
 0x79a   : > { %v3810_v43 = vadd.f32 %v3809_v24, %v3708_v44  ;;  %v4125_v44 = vpop.permute.xlu0 %4124  ;;  %v2207_v24 = vmul.f32 0.00390625, %v2196_v54 }
 0x79b   : > { %v3813_v63 = vpop.f32.mrf.mxu0 }
 0x79c   : > { %v3814_v51 = vadd.f32 %v3813_v63, %v3712_v20 }
 0x79d   : > { %v3815_v1 = vpop.f32.mrf.mxu0 }
 0x79e   : > { %v4072_v9 = vpop.f32.mrf.mxu1  ;;  %v3816_v47 = vadd.f32 %v3815_v1, %v3714_v17 }
 0x79f   : > { %v4095_v50 = vadd.f32 %v4072_v9, %v3808_v22  ;;  %v3819_v36 = vpop.f32.mrf.mxu0  ;;  %v2212_v22 = vld [vmem:[%s8037_s5 + $0x8] sm:$0xff]  ;;  %v2213_v9 = vld [vmem:[%s8037_s5 + $0x10] sm:$0xff] }
 0x7a0   : > { %v4074_v19 = vpop.f32.mrf.mxu1  ;;  %v3820_v11 = vadd.f32 %v3819_v36, %v3718_v4 }
 0x7a1   : > { %v4096_v48 = vadd.f32 %v4074_v19, %v3810_v43  ;;  %v3821_v34 = vpop.f32.mrf.mxu0  ;;  %v7884_v38 = vadd.f32 %v4110_v46, %v4095_v50 }
 0x7a2   : > { %v4078_v37 = vpop.f32.mrf.mxu1  ;;  %v3822_v53 = vadd.f32 %v3821_v34, %v3720_v60  ;;  %v2199_v60 = vpop.xlane.xlu0 %2198  ;;  %v2214_v34 = vld [vmem:[%s8037_s5 + $0x18] sm:$0xff] }
 0x7a3   : > { %v7886_v10 = vadd.f32 %v4110_v46, %v4096_v48  ;;  %v4097_v27 = vadd.f32 %v4078_v37, %v3814_v51  ;;  %v3825_v39 = vpop.f32.mrf.mxu0  ;;  %v2208_v63 = vmul.f32 0.00390625, %v2199_v60  ;;  %v8376_v60 = vlaneseq }
 0x7a4   : > { %v4080_v35 = vpop.f32.mrf.mxu1  ;;  %v3826_v57 = vadd.f32 %v3825_v39, %v3724_v5 }
 0x7a5   : > { %v4098_v40 = vadd.f32 %v4080_v35, %v3816_v47  ;;  %v4135_v30 = vadd.f32 %v7886_v10, %v7884_v38  ;;  %v7895_v33 = vadd.f32 %v4115_v52, %v4097_v27  ;;  %v3827_v6 = vpop.f32.mrf.mxu0  ;;  %v2216_v50 = vmul.f32 %v2212_v22, %v2208_v63 }
 0x7a6   : > { %v4084_v13 = vpop.f32.mrf.mxu1  ;;  %v3828_v41 = vadd.f32 %v3827_v6, %v3726_v61  ;;  %v2202_v5 = vpop.xlane.xlu0 %2201  ;;  %v2211_v61 = vld [vmem:[%s8037_s5] sm:$0xff]  ;;  %v2241_v54 = vshrl.u32 %v8376_v60, 7 }
 0x7a7   : > { %v7897_v12 = vadd.f32 %v4115_v52, %v4098_v40  ;;  %v4099_v32 = vadd.f32 %v4084_v13, %v3820_v11  ;;  %4136 = vadd.xlane.f32.xlu0 %v4135_v30  ;;  %v2209_v1 = vmul.f32 0.00390625, %v2202_v5  ;;  %v2215_v43 = vmul.f32 %v2211_v61, %v2207_v24  ;;  %v2233_v5 = vld [vmem:[%s8038_s6] sm:$0x1] }
 0x7a8   : > { %v4086_v29 = vpop.f32.mrf.mxu1  ;;  %v2221_v51 = vsel %vm2219_vm11, %v2216_v50, 0.0  ;;  %v2237_v50 = vld [vmem:[%s8039_s7 + $0x8] sm:$0xff] }
 0x7a9   : > { %v4100_v55 = vadd.f32 %v4086_v29, %v3822_v53  ;;  %v4138_v46 = vadd.f32 %v7897_v12, %v7895_v33  ;;  %v7903_v28 = vadd.f32 %v4120_v45, %v4099_v32  ;;  %v2217_v19 = vmul.f32 %v2213_v9, %v2209_v1 }
 0x7aa   : > { %v4090_v8 = vpop.f32.mrf.mxu1  ;;  %v2220_v0 = vsel %vm2219_vm11, %v2215_v43, 0.0  ;;  %v2242_v1 = vsub.s32 0, %v2241_v54 }
 0x7ab   : > { %v7905_v7 = vadd.f32 %v4120_v45, %v4100_v55  ;;  %v4101_v25 = vadd.f32 %v4090_v8, %v3826_v57  ;;  %2204 = vadd.xlane.f32.xlu0 %v2203_v49  ;;  %4139 = vadd.xlane.f32.xlu1 %v4138_v46  ;;  %v2223_v56 = vsel %vm2219_vm11, %v2217_v19, 0.0  ;;  %v2222_v47 = vadd.f32 %v2221_v51, %v2220_v0  ;;  %v2239_v51 = vld [vmem:[%s8039_s7 + $0x18] sm:$0xff] }
 0x7ac   : > { %v4092_v14 = vpop.f32.mrf.mxu1 }
 0x7ad   : > { %v4102_v26 = vadd.f32 %v4092_v14, %v3828_v41  ;;  %v4141_v23 = vadd.f32 %v7905_v7, %v7903_v28  ;;  %v7909_v20 = vadd.f32 %v4125_v44, %v4101_v25  ;;  %v2224_v59 = vadd.f32 %v2223_v56, %v2222_v47 }
 0x7af   : > { %v7911_v17 = vadd.f32 %v4125_v44, %v4102_v26  ;;  %4142 = vadd.xlane.f32.xlu1 %v4141_v23 }
 0x7b1   : > { %v4144_v4 = vadd.f32 %v7911_v17, %v7909_v20 }
 0x7b3   : > { %4145 = vadd.xlane.f32.xlu1 %v4144_v4 }
 0x830   : > { %v4137_v36 = vpop.xlane.xlu0 %4136 }
 0x831   : > { %v4147_v18 = vmul.f32 0.00390625, %v4137_v36  ;;  %v2236_v36 = vld [vmem:[%s8039_s7] sm:$0xff] }
 0x833   : > { %v4155_v11 = vmul.f32 %v4147_v18, %v2211_v61 }
 0x834   : > { %v4140_v48 = vpop.xlane.xlu1 %4139  ;;  %v2205_v31 = vpop.xlane.xlu0 %2204 }
 0x835   : > { %v4148_v52 = vmul.f32 0.00390625, %v4140_v48  ;;  %v2210_v37 = vmul.f32 0.00390625, %v2205_v31  ;;  %v4159_v29 = vsel %vm2219_vm11, %v4155_v11, 0.0  ;;  %v4172_v48 = vld [vmem:[%s8038_s6] sm:$0x1] }
 0x837   : > { %v4156_v27 = vmul.f32 %v4148_v52, %v2212_v22  ;;  %v2218_v39 = vmul.f32 %v2214_v34, %v2210_v37 }
 0x838   : > { %v4143_v35 = vpop.xlane.xlu1 %4142 }
 0x839   : > { %v2225_v40 = vsel %vm2219_vm11, %v2218_v39, 0.0  ;;  %v4149_v30 = vmul.f32 0.00390625, %v4143_v35  ;;  %v4160_v53 = vsel %vm2219_vm11, %v4156_v27, 0.0 }
 0x83a   : > { %v2226_v13 = vadd.f32 %v2225_v40, %v2224_v59  ;;  %v4161_v55 = vadd.f32 %v4160_v53, %v4159_v29 }
 0x83b   : > { %v4157_v6 = vmul.f32 %v4149_v30, %v2213_v9 }
 0x83c   : > { %v2227_v32 = vrot.slane %v2226_v13, 4  ;;  %v4146_v45 = vpop.xlane.xlu1 %4145 }
 0x83d   : > { %v4162_v49 = vsel %vm2219_vm11, %v4157_v6, 0.0  ;;  %v4150_v57 = vmul.f32 0.00390625, %v4146_v45 }
 0x83e   : > { %v2228_v46 = vadd.f32 %v2227_v32, %v2226_v13  ;;  %v4163_v25 = vadd.f32 %v4162_v49, %v4161_v55  ;;  %v2260_v55 = vld [vmem:[%s8040_s8] sm:$0xff] }
 0x83f   : > { %v4158_v41 = vmul.f32 %v4150_v57, %v2214_v34  ;;  %v2238_v34 = vld [vmem:[%s8039_s7 + $0x10] sm:$0xff]  ;;  %v2261_v57 = vld [vmem:[%s8040_s8 + $0x8] sm:$0xff] }
 0x840   : > { %v2229_v8 = vrot.slane %v2228_v46, 2 }
 0x841   : > { %v4164_v14 = vsel %vm2219_vm11, %v4158_v41, 0.0 }
 0x842   : > { %v2230_v26 = vadd.f32 %v2229_v8, %v2228_v46  ;;  %v4165_v23 = vadd.f32 %v4164_v14, %v4163_v25  ;;  %v2263_v14 = vld [vmem:[%s8040_s8 + $0x18] sm:$0xff] }
 0x844   : > { %v2231_v44 = vrot.slane %v2230_v26, 1  ;;  %v4166_v4 = vrot.slane %v4165_v23, 4 }
 0x846   : > { %v2232_v24 = vadd.f32 %v2231_v44, %v2230_v26  ;;  %v4167_v63 = vadd.f32 %v4166_v4, %v4165_v23  ;;  %v2262_v26 = vld [vmem:[%s8040_s8 + $0x10] sm:$0xff] }
 0x848   : > { %v2234_v61 = vadd.f32 %v2233_v5, %v2232_v24  ;;  %v4168_v22 = vrot.slane %v4167_v63, 2 }
 0x84a   : > { %v4169_v9 = vadd.f32 %v4168_v22, %v4167_v63  ;;  %v2235_v43 = vmax.f32 %v2234_v61, 0.0 }
 0x84c   : > { %v4170_v19 = vrot.slane %v4169_v9, 1  ;;  %v2243_v0 = vrot.slane %v2235_v43, %v2242_v1 }
 0x84e   : > { %v4171_v31 = vadd.f32 %v4170_v19, %v4169_v9  ;;  %v2245_v56 = vmul.f32 %v2243_v0, %v2237_v50  ;;  %v2244_v18 = vmul.f32 %v2243_v0, %v2236_v36  ;;  %v2247_v52 = vmul.f32 %v2243_v0, %v2239_v51 }
 0x84f   : > { %v2246_v39 = vmul.f32 %v2243_v0, %v2238_v34 }
 0x850   : > { %v4173_v37 = vadd.f32 %v4172_v48, %v4171_v31  ;;  %v2251_v47 = vsel %vm2219_vm11, %v2245_v56, 0.0  ;;  %v2248_v27 = vsel %vm2219_vm11, %v2244_v18, 0.0  ;;  %v2257_v35 = vsel %vm2219_vm11, %v2247_v52, 0.0 }
 0x851   : > { %2252 = vadd.xlane.f32.xlu1 %v2251_v47  ;;  %2249 = vadd.xlane.f32.xlu0 %v2248_v27  ;;  %v2254_v11 = vsel %vm2219_vm11, %v2246_v39, 0.0 }
 0x852   : > { %v4174_v59 = vmax.f32 %v4173_v37, 0.0 }
 0x854   : > { %v4182_v40 = vrot.slane %v4174_v59, %v2242_v1 }
 0x855   : > { %2258 = vadd.xlane.f32.xlu1 %v2257_v35  ;;  %2255 = vadd.xlane.f32.xlu0 %v2254_v11 }
 0x856   : > { %v4184_v30 = vmul.f32 %v4182_v40, %v2237_v50  ;;  %v4183_v13 = vmul.f32 %v4182_v40, %v2236_v36  ;;  %v4186_v32 = vmul.f32 %v4182_v40, %v2239_v51  ;;  %v4185_v45 = vmul.f32 %v4182_v40, %v2238_v34 }
 0x858   : > { %v4190_v53 = vsel %vm2219_vm11, %v4184_v30, 0.0  ;;  %v4187_v6 = vsel %vm2219_vm11, %v4183_v13, 0.0  ;;  %v4196_v29 = vsel %vm2219_vm11, %v4186_v32, 0.0  ;;  %v4193_v49 = vsel %vm2219_vm11, %v4185_v45, 0.0 }
 0x859   : > { %4191 = vadd.xlane.f32.xlu1 %v4190_v53  ;;  %4188 = vadd.xlane.f32.xlu0 %v4187_v6 }
 0x85d   : > { %4197 = vadd.xlane.f32.xlu1 %v4196_v29  ;;  %4194 = vadd.xlane.f32.xlu0 %v4193_v49 }
 0x8da   : > { %v2253_v46 = vpop.xlane.xlu1 %2252  ;;  %v2250_v41 = vpop.xlane.xlu0 %2249 }
 0x8db   : > { %v2265_v8 = vadd.f32 %v2261_v57, %v2253_v46  ;;  %v2264_v25 = vadd.f32 %v2260_v55, %v2250_v41 }
 0x8dd   : > { %v4426_v23 = vmul.f32 -1.442695, %v2265_v8  ;;  %v4425_v44 = vmul.f32 -1.442695, %v2264_v25  ;;  %v2322_v8 = vld [vmem:[%s4915_s16 + $0x10] sm:$0xff]  ;;  %v2323_v25 = vld [vmem:[%s4915_s16 + $0x18] sm:$0xff] }
 0x8de   : > { %v2259_v4 = vpop.xlane.xlu1 %2258  ;;  %v2256_v60 = vpop.xlane.xlu0 %2255 }
 0x8df   : > { %4790 = vpow2.f32 %v4426_v23  ;;  %v2267_v54 = vadd.f32 %v2263_v14, %v2259_v4  ;;  %v2266_v5 = vadd.f32 %v2262_v26, %v2256_v60  ;;  %v2321_v4 = vld [vmem:[%s4915_s16 + $0x8] sm:$0xff] }
 0x8e0   : > { %4792 = vpow2.f32 %v4425_v44  ;;  %v2320_v44 = vld [vmem:[%s4915_s16] sm:$0xff] }
 0x8e1   : > { %v4428_v24 = vmul.f32 -1.442695, %v2267_v54  ;;  %v4427_v63 = vmul.f32 -1.442695, %v2266_v5 }
 0x8e2   : > { %v4192_v61 = vpop.xlane.xlu1 %4191  ;;  %v4189_v22 = vpop.xlane.xlu0 %4188 }
 0x8e3   : > { %4794 = vpow2.f32 %v4428_v24  ;;  %v4204_v1 = vadd.f32 %v4192_v61, %v2261_v57  ;;  %v4203_v9 = vadd.f32 %v4189_v22, %v2260_v55  ;;  %v2324_v61 = vld [vmem:[%s4915_s16 + $0x20] sm:$0xff]  ;;  %v2325_v22 = vld [vmem:[%s4915_s16 + $0x28] sm:$0xff] }
 0x8e4   : > { %4796 = vpow2.f32 %v4427_v63 }
 0x8e5   : > { %v4510_v43 = vmul.f32 -1.442695, %v4204_v1  ;;  %v4509_v50 = vmul.f32 -1.442695, %v4203_v9  ;;  %v2326_v9 = vld [vmem:[%s4915_s16 + $0x30] sm:$0xff] }
 0x8e6   : > { %v4198_v36 = vpop.xlane.xlu1 %4197  ;;  %v4195_v19 = vpop.xlane.xlu0 %4194 }
 0x8e7   : > { %4798 = vpow2.f32 %v4510_v43  ;;  %v4206_v0 = vadd.f32 %v4198_v36, %v2263_v14  ;;  %v4205_v51 = vadd.f32 %v4195_v19, %v2262_v26  ;;  %v2327_v43 = vld [vmem:[%s4915_s16 + $0x38] sm:$0xff] }
 0x8e8   : > { %4800 = vpow2.f32 %v4509_v50 }
 0x8e9   : > { %v4512_v48 = vmul.f32 -1.442695, %v4206_v0  ;;  %v4511_v34 = vmul.f32 -1.442695, %v4205_v51 }
 0x8eb   : > { %4802 = vpow2.f32 %v4512_v48 }
 0x8ec   : > { %v4791_v31 = vpop.eup %4790  ;;  %4804 = vpow2.f32 %v4511_v34 }
 0x8ed   : > { %v4793_v56 = vpop.eup %4792  ;;  %v2281_v18 = vadd.f32 1.0, %v4791_v31  ;;  %v4513_v31 = vld [vmem:[%s4915_s16 + $0x40] sm:$0xff] }
 0x8ee   : > { %v2280_v52 = vadd.f32 1.0, %v4793_v56  ;;  %v4514_v56 = vld [vmem:[%s4915_s16 + $0x48] sm:$0xff] }
 0x8ef   : > { %4806 = vrcp.f32 %v2281_v18 }
 0x8f0   : > { %v4795_v37 = vpop.eup %4794  ;;  %4808 = vrcp.f32 %v2280_v52  ;;  %v4515_v52 = vld [vmem:[%s4915_s16 + $0x50] sm:$0xff] }
 0x8f1   : > { %v4797_v47 = vpop.eup %4796  ;;  %v2283_v27 = vadd.f32 1.0, %v4795_v37  ;;  %v4516_v37 = vld [vmem:[%s4915_s16 + $0x58] sm:$0xff] }
 0x8f2   : > { %v2282_v39 = vadd.f32 1.0, %v4797_v47 }
 0x8f3   : > { %4810 = vrcp.f32 %v2283_v27 }
 0x8f4   : > { %v4799_v59 = vpop.eup %4798  ;;  %4812 = vrcp.f32 %v2282_v39 }
 0x8f5   : > { %v4801_v35 = vpop.eup %4800  ;;  %v4220_v11 = vadd.f32 1.0, %v4799_v59 }
 0x8f6   : > { %v4219_v40 = vadd.f32 1.0, %v4801_v35 }
 0x8f7   : > { %4814 = vrcp.f32 %v4220_v11  ;;  %v4517_v11 = vld [vmem:[%s4915_s16 + $0x60] sm:$0xff] }
 0x8f8   : > { %v4803_v30 = vpop.eup %4802  ;;  %4816 = vrcp.f32 %v4219_v40  ;;  %v4518_v40 = vld [vmem:[%s4915_s16 + $0x68] sm:$0xff] }
 0x8f9   : > { %v4805_v13 = vpop.eup %4804  ;;  %v4222_v53 = vadd.f32 1.0, %v4803_v30 }
 0x8fa   : > { %v4221_v6 = vadd.f32 1.0, %v4805_v13  ;;  %v4519_v13 = vld [vmem:[%s4915_s16 + $0x70] sm:$0xff] }
 0x8fb   : > { %4818 = vrcp.f32 %v4222_v53  ;;  %v4520_v53 = vld [vmem:[%s4915_s16 + $0x78] sm:$0xff] }
 0x8fc   : > { %v4807_v32 = vpop.eup %4806  ;;  %4820 = vrcp.f32 %v4221_v6 }
 0x8fd   : > { %v4809_v45 = vpop.eup %4808  ;;  %2299 = vperm.xlu1 %4609, %v4807_v32  }
 0x8fe   : > { %2294 = vperm.xlu0 %4608, %v4809_v45  }
 0x900   : > { %v4811_v29 = vpop.eup %4810 }
 0x901   : > { %v4813_v49 = vpop.eup %4812 }
 0x902   : > { %2309 = vperm.xlu0 %4608, %v4811_v29   ;;  %2304 = vperm.xlu1 %4609, %v4813_v49  }
 0x904   : > { %v4815_v57 = vpop.eup %4814 }
 0x905   : > { %v4817_v55 = vpop.eup %4816 }
 0x906   : > { %4238 = vperm.xlu0 %4608, %v4815_v57   ;;  %4233 = vperm.xlu1 %4609, %v4817_v55  }
 0x908   : > { %v4819_v46 = vpop.eup %4818 }
 0x909   : > { %v4821_v41 = vpop.eup %4820 }
 0x90a   : > { %4248 = vperm.xlu0 %4608, %v4819_v46   ;;  %4243 = vperm.xlu1 %4609, %v4821_v41  }
 0x978   : > { %v2300_v14 = vpop.permute.xlu1 %2299 }
 0x979   : > { %v2314_v26 = vmul.f32 %v2300_v14, %v7798_v58  ;;  %v2315_v23 = vmul.f32 %v2300_v14, %v7801_v42  ;;  %v2295_v60 = vpop.permute.xlu0 %2294 }
 0x97a   : > { %v2312_v54 = vmul.f32 %v2295_v60, %v7845_v16  ;;  %v2313_v58 = vmul.f32 %v2295_v60, %v7848_v2 }
 0x97b   : > { %v2330_v42 = vadd.f32 %v2322_v8, %v2314_v26  ;;  %v2331_v5 = vadd.f32 %v2323_v25, %v2315_v23 }
 0x97c   : > { %v2328_v24 = vadd.f32 %v2320_v44, %v2312_v54  ;;  %v2329_v63 = vadd.f32 %v2321_v4, %v2313_v58 }
 0x97d   : > { %2338 = vst [vmem:[%s7985_s14 + $0x10] sm:$0xff] %v2330_v42  ;;  %2339 = vst [vmem:[%s7985_s14 + $0x18] sm:$0xff] %v2331_v5  ;;  %v2305_v1 = vpop.permute.xlu1 %2304  ;;  %v2310_v50 = vpop.permute.xlu0 %2309 }
 0x97e   : > { %2336 = vst [vmem:[%s7985_s14] sm:$0xff] %v2328_v24  ;;  %2337 = vst [vmem:[%s7985_s14 + $0x8] sm:$0xff] %v2329_v63  ;;  %v2316_v16 = vmul.f32 %v2305_v1, %v7869_v21  ;;  %v2317_v2 = vmul.f32 %v2305_v1, %v7872_v62  ;;  %v2318_v36 = vmul.f32 %v2310_v50, %v7889_v3 }
 0x97f   : > { %v2319_v19 = vmul.f32 %v2310_v50, %v7891_v15 }
 0x980   : > { %v2332_v0 = vadd.f32 %v2324_v61, %v2316_v16  ;;  %v2333_v51 = vadd.f32 %v2325_v22, %v2317_v2  ;;  %v2334_v48 = vadd.f32 %v2326_v9, %v2318_v36 }
 0x981   : > { %v2335_v34 = vadd.f32 %v2327_v43, %v2319_v19  ;;  %v4234_v18 = vpop.permute.xlu1 %4233  ;;  %v4239_v21 = vpop.permute.xlu0 %4238 }
 0x982   : > { %2340 = vst [vmem:[%s7985_s14 + $0x20] sm:$0xff] %v2332_v0  ;;  %2341 = vst [vmem:[%s7985_s14 + $0x28] sm:$0xff] %v2333_v51  ;;  %v4251_v62 = vmul.f32 %v4234_v18, %v7884_v38  ;;  %v4252_v3 = vmul.f32 %v4234_v18, %v7886_v10  ;;  %v4253_v15 = vmul.f32 %v4239_v21, %v7895_v33 }
 0x983   : > { %2342 = vst [vmem:[%s7985_s14 + $0x30] sm:$0xff] %v2334_v48  ;;  %2343 = vst [vmem:[%s7985_s14 + $0x38] sm:$0xff] %v2335_v34  ;;  %v4254_v47 = vmul.f32 %v4239_v21, %v7897_v12 }
 0x984   : > { %v4267_v27 = vadd.f32 %v4513_v31, %v4251_v62  ;;  %v4268_v39 = vadd.f32 %v4514_v56, %v4252_v3  ;;  %v4269_v59 = vadd.f32 %v4515_v52, %v4253_v15 }
 0x985   : > { %v4270_v35 = vadd.f32 %v4516_v37, %v4254_v47  ;;  %v4244_v30 = vpop.permute.xlu1 %4243  ;;  %v4249_v38 = vpop.permute.xlu0 %4248 }
 0x986   : > { %4521 = vst [vmem:[%s7985_s14 + $0x40] sm:$0xff] %v4267_v27  ;;  %4522 = vst [vmem:[%s7985_s14 + $0x48] sm:$0xff] %v4268_v39  ;;  %v4255_v10 = vmul.f32 %v4244_v30, %v7903_v28  ;;  %v4256_v33 = vmul.f32 %v4244_v30, %v7905_v7  ;;  %v4257_v12 = vmul.f32 %v4249_v38, %v7909_v20 }
 0x987   : > { %4523 = vst [vmem:[%s7985_s14 + $0x50] sm:$0xff] %v4269_v59  ;;  %4524 = vst [vmem:[%s7985_s14 + $0x58] sm:$0xff] %v4270_v35  ;;  %v4258_v6 = vmul.f32 %v4249_v38, %v7911_v17 }
 0x988   : > { %v4271_v32 = vadd.f32 %v4517_v11, %v4255_v10  ;;  %v4272_v45 = vadd.f32 %v4518_v40, %v4256_v33  ;;  %v4273_v29 = vadd.f32 %v4519_v13, %v4257_v12 }
 0x989   : > { %v4274_v49 = vadd.f32 %v4520_v53, %v4258_v6 }
 0x98a   : > { %4525 = vst [vmem:[%s7985_s14 + $0x60] sm:$0xff] %v4271_v32  ;;  %4526 = vst [vmem:[%s7985_s14 + $0x68] sm:$0xff] %v4272_v45 }
 0x98b   : > { %4527 = vst [vmem:[%s7985_s14 + $0x70] sm:$0xff] %v4273_v29  ;;  %4528 = vst [vmem:[%s7985_s14 + $0x78] sm:$0xff] %v4274_v49 }
 0x98c PF: > { %s19_s30 = sadd.s32 1, %s4836_s30  }
 0x98d   : > { %p16_p4 = scmp.ge.s32.totalorder %s19_s30, 4  }
 0x98f   :  { %18 = sbr.rel (!%p16_p4) target bundleno = 1 (0x1), region = 92 }

</bundles_post_ra>
